<compile_context>
chip_gen: v7x
topology: tpu7x:2x2x1
jax: 0.10.0
libtpu: 0.0.40
codegen_flags: <defaults>
</compile_context>

<pallas_src>
import jax
import jax.numpy as jnp
from jax.experimental import pallas as pl
from jax.experimental.pallas import tpu as pltpu


_MXU_DTYPE = jnp.bfloat16   # MXU input dtype (accumulation stays f32).
_TILE_M = 512               # rows per grid step: 512-1024 ~ HBM roofline on
                            # v5e/v6e, small enough for v7x's 64 MiB VMEM.


# ---------------------------------------------------------------------------
# Pallas kernel: one MXU matmul + bias per (TILE_M, K) x (K, Cout) tile.
# ---------------------------------------------------------------------------

def _conv_mm_kernel(xcol_ref, w_ref, b_ref, o_ref):
    acc = jnp.dot(xcol_ref[...], w_ref[...], preferred_element_type=jnp.float32)
    o_ref[...] = (acc + b_ref[...]).astype(o_ref.dtype)


def _round_up(x, m):
    return ((x + m - 1) // m) * m


def _conv_matmul(xcol, w_mat, bias, out_dtype=jnp.float32, tile_m=_TILE_M):
    """(M, K) @ (K, Cout) + bias with an M-tiled, pipelined Pallas grid."""
    M, K = xcol.shape
    Cout = w_mat.shape[1]

    tile_m = min(tile_m, _round_up(M, 16))
    m_pad = _round_up(M, tile_m)
    if m_pad != M:
        xcol = jnp.pad(xcol, ((0, m_pad - M), (0, 0)))

    xcol = xcol.astype(_MXU_DTYPE)
    w_mat = w_mat.astype(_MXU_DTYPE)
    bias = bias.reshape(1, Cout).astype(jnp.float32)

    # Explicit VMEM budget: double-buffered inputs + double-buffered output,
    # 2x headroom, clamped to [4 MiB, 32 MiB] (safe on all generations).
    in_bytes = 2 * (tile_m * K + K * Cout) * xcol.dtype.itemsize
    out_bytes = 2 * tile_m * Cout * jnp.dtype(out_dtype).itemsize
    vmem_bytes = int(min(32 * 1024 * 1024,
                         max(4 * 1024 * 1024, 2 * (in_bytes + out_bytes))))

    out = pl.pallas_call(
        _conv_mm_kernel,
        out_shape=jax.ShapeDtypeStruct((m_pad, Cout), out_dtype),
        grid_spec=pltpu.PrefetchScalarGridSpec(
            num_scalar_prefetch=0,
            grid=(m_pad // tile_m,),
            in_specs=[
                pl.BlockSpec((tile_m, K), lambda m: (m, 0)),
                pl.BlockSpec((K, Cout), lambda m: (0, 0)),
                pl.BlockSpec((1, Cout), lambda m: (0, 0)),
            ],
            out_specs=pl.BlockSpec((tile_m, Cout), lambda m: (m, 0)),
        ),
        compiler_params=pltpu.CompilerParams(
            dimension_semantics=("parallel",),
            vmem_limit_bytes=vmem_bytes,
        ),
    )(xcol, w_mat, bias)

    return out[:M] if m_pad != M else out


# ---------------------------------------------------------------------------
# JAX glue: patch extraction and weight layout.
# ---------------------------------------------------------------------------

def _im2col(x_nhwc, k, pad):
    """(N,H,W,C) -> (N*H*W, k*k*C) patches for a stride-1 conv.

    Column order is (kh, kw, c), matching _torch_weight_to_matrix.
    """
    N, H, W, C = x_nhwc.shape
    xp = jnp.pad(x_nhwc, ((0, 0), (pad, pad), (pad, pad), (0, 0)))
    cols = [xp[:, i:i + H, j:j + W, :] for i in range(k) for j in range(k)]
    return jnp.concatenate(cols, axis=-1).reshape(N * H * W, k * k * C)


def _torch_weight_to_matrix(w):
    """(Cout, Cin, KH, KW) PyTorch conv weight -> (KH*KW*Cin, Cout)."""
    cout, cin, kh, kw = w.shape
    return jnp.transpose(w, (2, 3, 1, 0)).reshape(kh * kw * cin, cout)


def _stage1_fused_weights(params):
    """Fuse branch1x1 / branch5x5_1 / branch3x3dbl_1 / (avg_pool3x3+branch_pool)
    into one 3x3 conv: the 1x1 weights sit on the center tap only, and the
    pool branch's 1x1 weight divided by 9 is replicated over all 9 taps
    (exact rewrite of avg_pool2d(3,1,1), count_include_pad=True, then 1x1)."""

    def center3x3(w):                       # (Cout, Cin, 1, 1) -> (Cout, Cin, 3, 3)
        z = jnp.zeros(w.shape[:2] + (3, 3), w.dtype)
        return z.at[:, :, 1, 1].set(w[:, :, 0, 0])

    w1, b1 = params["branch1x1"]
    w5, b5 = params["branch5x5_1"]
    w3, b3 = params["branch3x3dbl_1"]
    wp, bp = params["branch_pool"]
    wp3 = jnp.tile(wp / 9.0, (1, 1, 3, 3))  # (pf, Cin, 3, 3)

    w_all = jnp.concatenate([center3x3(w1), center3x3(w5), center3x3(w3), wp3], axis=0)
    b_all = jnp.concatenate([b1, b5, b3, bp], axis=0)
    return _torch_weight_to_matrix(w_all), b_all


# ---------------------------------------------------------------------------
# InceptionA forward
# ---------------------------------------------------------------------------

def inception_a_forward_nhwc(params, x_nhwc):
    """InceptionA forward, NHWC in / NHWC out (C_out = 16+32+32+pool_features)."""
    N, H, W, _ = x_nhwc.shape
    x = x_nhwc.astype(_MXU_DTYPE)

    # -- stage 1: every conv that reads x, fused into one matmul -----------
    # TODO(synk): avoid materializing the 9x/25x im2col in HBM by DMA-ing a
    # padded row band to VMEM and forming the shifted taps in-kernel.
    w_s1, b_s1 = _stage1_fused_weights(params)
    y1 = _conv_matmul(_im2col(x, 3, 1), w_s1, b_s1)          # (M, 72+pf) f32

    branch1x1 = y1[:, 0:16]
    b5x5_in = y1[:, 16:40].astype(_MXU_DTYPE).reshape(N, H, W, 24)
    b3x3_in = y1[:, 40:72].astype(_MXU_DTYPE).reshape(N, H, W, 32)
    branch_pool = y1[:, 72:]

    # -- stage 2 ------------------------------------------------------------
    w, b = params["branch5x5_2"]
    branch5x5 = _conv_matmul(_im2col(b5x5_in, 5, 2), _torch_weight_to_matrix(w), b)

    w, b = params["branch3x3dbl_2"]
    b3x3_mid = _conv_matmul(_im2col(b3x3_in, 3, 1), _torch_weight_to_matrix(w), b,
                            out_dtype=_MXU_DTYPE).reshape(N, H, W, 32)

    # -- stage 3 ------------------------------------------------------------
    w, b = params["branch3x3dbl_3"]
    branch3x3dbl = _conv_matmul(_im2col(b3x3_mid, 3, 1), _torch_weight_to_matrix(w), b)

    out = jnp.concatenate([branch1x1, branch5x5, branch3x3dbl, branch_pool], axis=-1)
    return out.reshape(N, H, W, out.shape[-1])


@jax.jit
def inception_a_forward(params, x_nchw):
    # NCHW in/out for PyTorch parity. NHWC-native callers should use
    # inception_a_forward_nhwc directly and skip both layout transposes.
    x = jnp.transpose(x_nchw, (0, 2, 3, 1))
    y = inception_a_forward_nhwc(params, x)
    return jnp.transpose(y, (0, 3, 1, 2))


# ---------------------------------------------------------------------------
# Parameter init (PyTorch Conv2d layout and uniform bounds)
# ---------------------------------------------------------------------------

def _init_conv(key, cin, cout, k):
    fan_in = cin * k * k
    bound = 1.0 / (fan_in ** 0.5)
    kw, kb = jax.random.split(key)
    w = jax.random.uniform(kw, (cout, cin, k, k), jnp.float32, -bound, bound)
    b = jax.random.uniform(kb, (cout,), jnp.float32, -bound, bound)
    return w, b


def init_inception_a_params(key, in_channels, pool_features):
    ks = jax.random.split(key, 7)
    return {
        "branch1x1":      _init_conv(ks[0], in_channels, 16, 1),
        "branch5x5_1":    _init_conv(ks[1], in_channels, 24, 1),
        "branch5x5_2":    _init_conv(ks[2], 24, 32, 5),
        "branch3x3dbl_1": _init_conv(ks[3], in_channels, 32, 1),
        "branch3x3dbl_2": _init_conv(ks[4], 32, 32, 3),
        "branch3x3dbl_3": _init_conv(ks[5], 32, 32, 3),
        "branch_pool":    _init_conv(ks[6], in_channels, pool_features, 1),
    }


# ---------------------------------------------------------------------------
# Main
# ---------------------------------------------------------------------------

if __name__ == "__main__":
    key = jax.random.PRNGKey(0)
    k_params, k_x = jax.random.split(key)

    in_channels = 4
    pool_features = 8
    N, H, W = 2, 16, 16

    params = init_inception_a_params(k_params, in_channels, pool_features)
    x = jax.random.normal(k_x, (N, in_channels, H, W), jnp.float32)

    out = jax.block_until_ready(inception_a_forward(params, x))

    expected_c = 16 + 32 + 32 + pool_features
    assert out.shape == (N, expected_c, H, W), out.shape
    assert out.dtype == jnp.float32, out.dtype
    assert bool(jnp.all(jnp.isfinite(out)))

    print("KERNEL_OK")
</pallas_src>

<mosaic_0001>
module attributes {stable_mosaic.version = 11 : i64} {
  func.func @_conv_mm_kernel(%arg0: i32, %arg1: memref<512x36xbf16, #tpu.memory_space<vmem>>, %arg2: memref<36x80xbf16, #tpu.memory_space<vmem>>, %arg3: memref<1x80xf32, #tpu.memory_space<vmem>>, %arg4: memref<512x80xf32, #tpu.memory_space<vmem>>) attributes {dimension_semantics = [#tpu.dimension_semantics<parallel>], iteration_bounds = array<i64: 1>, scalar_prefetch = 0 : i64, scratch_operands = 0 : i64, tpu.core_type = #tpu.core_type<tc>, window_params = [{transform_indices = @transform_0, window_bounds = array<i64: 512, 36>}, {pipeline_mode = #tpu.pipeline_mode<synchronous>, transform_indices = @transform_1, window_bounds = array<i64: 36, 80>}, {pipeline_mode = #tpu.pipeline_mode<synchronous>, transform_indices = @transform_2, window_bounds = array<i64: 1, 80>}, {transform_indices = @transform_3, window_bounds = array<i64: 512, 80>}]} {
    %c0 = arith.constant 0 : index
    %c0_0 = arith.constant 0 : index
    %0 = vector.load %arg1[%c0, %c0_0] : memref<512x36xbf16, #tpu.memory_space<vmem>>, vector<512x36xbf16>
    %c0_1 = arith.constant 0 : index
    %c0_2 = arith.constant 0 : index
    %1 = vector.load %arg2[%c0_1, %c0_2] : memref<36x80xbf16, #tpu.memory_space<vmem>>, vector<36x80xbf16>
    %cst = arith.constant dense<0.000000e+00> : vector<512x80xf32>
    %2 = tpu.matmul %0, %1, %cst {dimension_numbers = #tpu.dot_dimension_numbers<[1], [0], [0], [1], [0, 0, 1, 1], [], []>} : vector<512x36xbf16>, vector<36x80xbf16>, vector<512x80xf32> -> vector<512x80xf32>
    %c0_3 = arith.constant 0 : index
    %c0_4 = arith.constant 0 : index
    %3 = vector.load %arg3[%c0_3, %c0_4] : memref<1x80xf32, #tpu.memory_space<vmem>>, vector<1x80xf32>
    %4 = vector.broadcast %3 : vector<1x80xf32> to vector<512x80xf32>
    %5 = arith.addf %2, %4 : vector<512x80xf32>
    %c0_5 = arith.constant 0 : index
    %c0_6 = arith.constant 0 : index
    %6 = vector.load %arg4[%c0_5, %c0_6] : memref<512x80xf32, #tpu.memory_space<vmem>>, vector<512x80xf32>
    tpu.vector_store %arg4[%c0_5, %c0_6], %5 {strides = array<i32>} : memref<512x80xf32, #tpu.memory_space<vmem>>, vector<512x80xf32>,
    return
  }
  func.func @transform_0(%arg0: i32) -> (i32, i32) {
    %c0_i32 = arith.constant 0 : i32
    %c0_i32_0 = arith.constant 0 : i32
    return %arg0, %c0_i32 : i32, i32
  }
  func.func @transform_1(%arg0: i32) -> (i32, i32) {
    %c0_i32 = arith.constant 0 : i32
    %c0_i32_0 = arith.constant 0 : i32
    %c0_i32_1 = arith.constant 0 : i32
    return %c0_i32, %c0_i32_0 : i32, i32
  }
  func.func @transform_2(%arg0: i32) -> (i32, i32) {
    %c0_i32 = arith.constant 0 : i32
    %c0_i32_0 = arith.constant 0 : i32
    %c0_i32_1 = arith.constant 0 : i32
    return %c0_i32, %c0_i32_0 : i32, i32
  }
  func.func @transform_3(%arg0: i32) -> (i32, i32) {
    %c0_i32 = arith.constant 0 : i32
    %c0_i32_0 = arith.constant 0 : i32
    return %arg0, %c0_i32 : i32, i32
  }
}

module attributes {stable_mosaic.version = 11 : i64} {
  func.func @_conv_mm_kernel(%arg0: i32, %arg1: memref<512x600xbf16, #tpu.memory_space<vmem>>, %arg2: memref<600x32xbf16, #tpu.memory_space<vmem>>, %arg3: memref<1x32xf32, #tpu.memory_space<vmem>>, %arg4: memref<512x32xf32, #tpu.memory_space<vmem>>) attributes {dimension_semantics = [#tpu.dimension_semantics<parallel>], iteration_bounds = array<i64: 1>, scalar_prefetch = 0 : i64, scratch_operands = 0 : i64, tpu.core_type = #tpu.core_type<tc>, window_params = [{transform_indices = @transform_0, window_bounds = array<i64: 512, 600>}, {pipeline_mode = #tpu.pipeline_mode<synchronous>, transform_indices = @transform_1, window_bounds = array<i64: 600, 32>}, {pipeline_mode = #tpu.pipeline_mode<synchronous>, transform_indices = @transform_2, window_bounds = array<i64: 1, 32>}, {transform_indices = @transform_3, window_bounds = array<i64: 512, 32>}]} {
    %c0 = arith.constant 0 : index
    %c0_0 = arith.constant 0 : index
    %0 = vector.load %arg1[%c0, %c0_0] : memref<512x600xbf16, #tpu.memory_space<vmem>>, vector<512x600xbf16>
    %c0_1 = arith.constant 0 : index
    %c0_2 = arith.constant 0 : index
    %1 = vector.load %arg2[%c0_1, %c0_2] : memref<600x32xbf16, #tpu.memory_space<vmem>>, vector<600x32xbf16>
    %cst = arith.constant dense<0.000000e+00> : vector<512x32xf32>
    %2 = tpu.matmul %0, %1, %cst {dimension_numbers = #tpu.dot_dimension_numbers<[1], [0], [0], [1], [0, 0, 1, 1], [], []>} : vector<512x600xbf16>, vector<600x32xbf16>, vector<512x32xf32> -> vector<512x32xf32>
    %c0_3 = arith.constant 0 : index
    %c0_4 = arith.constant 0 : index
    %3 = vector.load %arg3[%c0_3, %c0_4] : memref<1x32xf32, #tpu.memory_space<vmem>>, vector<1x32xf32>
    %4 = vector.broadcast %3 : vector<1x32xf32> to vector<512x32xf32>
    %5 = arith.addf %2, %4 : vector<512x32xf32>
    %c0_5 = arith.constant 0 : index
    %c0_6 = arith.constant 0 : index
    %6 = vector.load %arg4[%c0_5, %c0_6] : memref<512x32xf32, #tpu.memory_space<vmem>>, vector<512x32xf32>
    tpu.vector_store %arg4[%c0_5, %c0_6], %5 {strides = array<i32>} : memref<512x32xf32, #tpu.memory_space<vmem>>, vector<512x32xf32>,
    return
  }
  func.func @transform_0(%arg0: i32) -> (i32, i32) {
    %c0_i32 = arith.constant 0 : i32
    %c0_i32_0 = arith.constant 0 : i32
    return %arg0, %c0_i32 : i32, i32
  }
  func.func @transform_1(%arg0: i32) -> (i32, i32) {
    %c0_i32 = arith.constant 0 : i32
    %c0_i32_0 = arith.constant 0 : i32
    %c0_i32_1 = arith.constant 0 : i32
    return %c0_i32, %c0_i32_0 : i32, i32
  }
  func.func @transform_2(%arg0: i32) -> (i32, i32) {
    %c0_i32 = arith.constant 0 : i32
    %c0_i32_0 = arith.constant 0 : i32
    %c0_i32_1 = arith.constant 0 : i32
    return %c0_i32, %c0_i32_0 : i32, i32
  }
  func.func @transform_3(%arg0: i32) -> (i32, i32) {
    %c0_i32 = arith.constant 0 : i32
    %c0_i32_0 = arith.constant 0 : i32
    return %arg0, %c0_i32 : i32, i32
  }
}

module attributes {stable_mosaic.version = 11 : i64} {
  func.func @_conv_mm_kernel(%arg0: i32, %arg1: memref<512x288xbf16, #tpu.memory_space<vmem>>, %arg2: memref<288x32xbf16, #tpu.memory_space<vmem>>, %arg3: memref<1x32xf32, #tpu.memory_space<vmem>>, %arg4: memref<512x32xbf16, #tpu.memory_space<vmem>>) attributes {dimension_semantics = [#tpu.dimension_semantics<parallel>], iteration_bounds = array<i64: 1>, scalar_prefetch = 0 : i64, scratch_operands = 0 : i64, tpu.core_type = #tpu.core_type<tc>, window_params = [{transform_indices = @transform_0, window_bounds = array<i64: 512, 288>}, {pipeline_mode = #tpu.pipeline_mode<synchronous>, transform_indices = @transform_1, window_bounds = array<i64: 288, 32>}, {pipeline_mode = #tpu.pipeline_mode<synchronous>, transform_indices = @transform_2, window_bounds = array<i64: 1, 32>}, {transform_indices = @transform_3, window_bounds = array<i64: 512, 32>}]} {
    %c0 = arith.constant 0 : index
    %c0_0 = arith.constant 0 : index
    %0 = vector.load %arg1[%c0, %c0_0] : memref<512x288xbf16, #tpu.memory_space<vmem>>, vector<512x288xbf16>
    %c0_1 = arith.constant 0 : index
    %c0_2 = arith.constant 0 : index
    %1 = vector.load %arg2[%c0_1, %c0_2] : memref<288x32xbf16, #tpu.memory_space<vmem>>, vector<288x32xbf16>
    %cst = arith.constant dense<0.000000e+00> : vector<512x32xf32>
    %2 = tpu.matmul %0, %1, %cst {dimension_numbers = #tpu.dot_dimension_numbers<[1], [0], [0], [1], [0, 0, 1, 1], [], []>} : vector<512x288xbf16>, vector<288x32xbf16>, vector<512x32xf32> -> vector<512x32xf32>
    %c0_3 = arith.constant 0 : index
    %c0_4 = arith.constant 0 : index
    %3 = vector.load %arg3[%c0_3, %c0_4] : memref<1x32xf32, #tpu.memory_space<vmem>>, vector<1x32xf32>
    %4 = vector.broadcast %3 : vector<1x32xf32> to vector<512x32xf32>
    %5 = arith.addf %2, %4 : vector<512x32xf32>
    %6 = arith.truncf %5 : vector<512x32xf32> to vector<512x32xbf16>
    %c0_5 = arith.constant 0 : index
    %c0_6 = arith.constant 0 : index
    %7 = vector.load %arg4[%c0_5, %c0_6] : memref<512x32xbf16, #tpu.memory_space<vmem>>, vector<512x32xbf16>
    tpu.vector_store %arg4[%c0_5, %c0_6], %6 {strides = array<i32>} : memref<512x32xbf16, #tpu.memory_space<vmem>>, vector<512x32xbf16>,
    return
  }
  func.func @transform_0(%arg0: i32) -> (i32, i32) {
    %c0_i32 = arith.constant 0 : i32
    %c0_i32_0 = arith.constant 0 : i32
    return %arg0, %c0_i32 : i32, i32
  }
  func.func @transform_1(%arg0: i32) -> (i32, i32) {
    %c0_i32 = arith.constant 0 : i32
    %c0_i32_0 = arith.constant 0 : i32
    %c0_i32_1 = arith.constant 0 : i32
    return %c0_i32, %c0_i32_0 : i32, i32
  }
  func.func @transform_2(%arg0: i32) -> (i32, i32) {
    %c0_i32 = arith.constant 0 : i32
    %c0_i32_0 = arith.constant 0 : i32
    %c0_i32_1 = arith.constant 0 : i32
    return %c0_i32, %c0_i32_0 : i32, i32
  }
  func.func @transform_3(%arg0: i32) -> (i32, i32) {
    %c0_i32 = arith.constant 0 : i32
    %c0_i32_0 = arith.constant 0 : i32
    return %arg0, %c0_i32 : i32, i32
  }
}

module attributes {stable_mosaic.version = 11 : i64} {
  func.func @_conv_mm_kernel(%arg0: i32, %arg1: memref<512x288xbf16, #tpu.memory_space<vmem>>, %arg2: memref<288x32xbf16, #tpu.memory_space<vmem>>, %arg3: memref<1x32xf32, #tpu.memory_space<vmem>>, %arg4: memref<512x32xf32, #tpu.memory_space<vmem>>) attributes {dimension_semantics = [#tpu.dimension_semantics<parallel>], iteration_bounds = array<i64: 1>, scalar_prefetch = 0 : i64, scratch_operands = 0 : i64, tpu.core_type = #tpu.core_type<tc>, window_params = [{transform_indices = @transform_0, window_bounds = array<i64: 512, 288>}, {pipeline_mode = #tpu.pipeline_mode<synchronous>, transform_indices = @transform_1, window_bounds = array<i64: 288, 32>}, {pipeline_mode = #tpu.pipeline_mode<synchronous>, transform_indices = @transform_2, window_bounds = array<i64: 1, 32>}, {transform_indices = @transform_3, window_bounds = array<i64: 512, 32>}]} {
    %c0 = arith.constant 0 : index
    %c0_0 = arith.constant 0 : index
    %0 = vector.load %arg1[%c0, %c0_0] : memref<512x288xbf16, #tpu.memory_space<vmem>>, vector<512x288xbf16>
    %c0_1 = arith.constant 0 : index
    %c0_2 = arith.constant 0 : index
    %1 = vector.load %arg2[%c0_1, %c0_2] : memref<288x32xbf16, #tpu.memory_space<vmem>>, vector<288x32xbf16>
    %cst = arith.constant dense<0.000000e+00> : vector<512x32xf32>
    %2 = tpu.matmul %0, %1, %cst {dimension_numbers = #tpu.dot_dimension_numbers<[1], [0], [0], [1], [0, 0, 1, 1], [], []>} : vector<512x288xbf16>, vector<288x32xbf16>, vector<512x32xf32> -> vector<512x32xf32>
    %c0_3 = arith.constant 0 : index
    %c0_4 = arith.constant 0 : index
    %3 = vector.load %arg3[%c0_3, %c0_4] : memref<1x32xf32, #tpu.memory_space<vmem>>, vector<1x32xf32>
    %4 = vector.broadcast %3 : vector<1x32xf32> to vector<512x32xf32>
    %5 = arith.addf %2, %4 : vector<512x32xf32>
    %c0_5 = arith.constant 0 : index
    %c0_6 = arith.constant 0 : index
    %6 = vector.load %arg4[%c0_5, %c0_6] : memref<512x32xf32, #tpu.memory_space<vmem>>, vector<512x32xf32>
    tpu.vector_store %arg4[%c0_5, %c0_6], %5 {strides = array<i32>} : memref<512x32xf32, #tpu.memory_space<vmem>>, vector<512x32xf32>,
    return
  }
  func.func @transform_0(%arg0: i32) -> (i32, i32) {
    %c0_i32 = arith.constant 0 : i32
    %c0_i32_0 = arith.constant 0 : i32
    return %arg0, %c0_i32 : i32, i32
  }
  func.func @transform_1(%arg0: i32) -> (i32, i32) {
    %c0_i32 = arith.constant 0 : i32
    %c0_i32_0 = arith.constant 0 : i32
    %c0_i32_1 = arith.constant 0 : i32
    return %c0_i32, %c0_i32_0 : i32, i32
  }
  func.func @transform_2(%arg0: i32) -> (i32, i32) {
    %c0_i32 = arith.constant 0 : i32
    %c0_i32_0 = arith.constant 0 : i32
    %c0_i32_1 = arith.constant 0 : i32
    return %c0_i32, %c0_i32_0 : i32, i32
  }
  func.func @transform_3(%arg0: i32) -> (i32, i32) {
    %c0_i32 = arith.constant 0 : i32
    %c0_i32_0 = arith.constant 0 : i32
    return %arg0, %c0_i32 : i32, i32
  }
}

</mosaic_0001>

<bundles_post_ra>
// kernel: inception_a_forward.4
= control target key start
LH: loop header
LB: loop body
LE: loop exit
PB: predicated region body
PF: predicated region fallthrough
CT: control target
= control target key end

     0   :  { %vm266_vm0 = vcmask 293888   ;;  %vm363_vm1 = vcmask 1041408   ;;  %vm656_vm2 = vcmask 654336   ;;  %s1423_s1 = inlined_call_operand.vmem [shape: bf16[36,80], index: 1, kind: input, shape index: {}]   ;;  %s1424_s0 = inlined_call_operand.vmem [shape: bf16[512,36], index: 0, kind: input, shape index: {}]   ;;  %s1425_s2 = inlined_call_operand.vmem [shape: f32[1,80], index: 2, kind: input, shape index: {}]   ;;  %s1426_s3 = inlined_call_operand.vmem [shape: f32[512,80], index: 3, kind: output, shape index: {}]  }
   0x1   :  { %v906_v0 = vld [vmem:[%s1423_s1] sm:$0xff]   ;;  %v907_v1 = vld [vmem:[%s1423_s1 + $0x8] sm:$0xff]   ;;  %v908_v2 = vld [vmem:[%s1423_s1 + $0x10] ss:$0 sps:$4 sm:$0x33]  }
   0x2   :  { %828 = vmatprep.subr.bf16.mxu0 %v906_v0  ;;  %898 = vmatprep.subr.bf16.mxu1 %v906_v0  ;;  %v909_v3 = vld [vmem:[%s1424_s0] sm:$0xff]   ;;  %v365_v5 = vsel %vm363_vm1, %v908_v2, 0  ;;  %v911_v6 = vld [vmem:[%s1424_s0 + $0x8] sm:$0xff]   ;;  %v913_v8 = vld [vmem:[%s1424_s0 + $0x10] sm:$0xff]  }
   0x3   :  { %829 = vmatpush3.bf16.msra.mxu0 %v906_v0  ;;  %901 = vmatpush3.bf16.msra.mxu1 %v906_v0  ;;  %v910_v4 = vld [vmem:[%s1424_s0 + $0x80] sm:$0xff]   ;;  %v912_v7 = vld [vmem:[%s1424_s0 + $0x88] sm:$0xff]   ;;  %v914_v9 = vld [vmem:[%s1424_s0 + $0x90] sm:$0xff]  }
   0x4   :  { %830 = vmatprep.subr.bf16.mxu0 %v907_v1  ;;  %899 = vmatprep.subr.bf16.mxu1 %v907_v1  ;;  %v915_v10 = vld [vmem:[%s1424_s0 + $0x18] sm:$0xff]   ;;  %v917_v12 = vld [vmem:[%s1424_s0 + $0x20] sm:$0xff]   ;;  %v919_v14 = vld [vmem:[%s1424_s0 + $0x28] sm:$0xff]  }
   0x5   :  { %834 = vmatprep.mubr.msk.bf16.mxu0 %vm266_vm0, %v909_v3  ;;  %866 = vmatprep.mubr.msk.bf16.mxu1 %vm266_vm0, %v910_v4  ;;  %v916_v11 = vld [vmem:[%s1424_s0 + $0x98] sm:$0xff]   ;;  %v918_v13 = vld [vmem:[%s1424_s0 + $0xa0] sm:$0xff]   ;;  %v920_v15 = vld [vmem:[%s1424_s0 + $0xa8] sm:$0xff]  }
   0x6   :  { %v921_v16 = vld [vmem:[%s1424_s0 + $0x30] sm:$0xff]   ;;  %v923_v18 = vld [vmem:[%s1424_s0 + $0x38] sm:$0xff]   ;;  %v925_v20 = vld [vmem:[%s1424_s0 + $0x40] sm:$0xff]  }
   0x7   :  { %831 = vmatpush3.bf16.msra.mxu0 %v907_v1  ;;  %902 = vmatpush3.bf16.msra.mxu1 %v907_v1  ;;  %v922_v17 = vld [vmem:[%s1424_s0 + $0xb0] sm:$0xff]   ;;  %v924_v19 = vld [vmem:[%s1424_s0 + $0xb8] sm:$0xff]   ;;  %v926_v21 = vld [vmem:[%s1424_s0 + $0xc0] sm:$0xff]  }
   0x8   :  { %904 = vmatprep.subr.msk.bf16.mxu0 %vm363_vm1, %v908_v2  ;;  %905 = vmatprep.subr.msk.bf16.mxu1 %vm363_vm1, %v908_v2  ;;  %v927_v22 = vld [vmem:[%s1424_s0 + $0x48] sm:$0xff]   ;;  %v929_v24 = vld [vmem:[%s1424_s0 + $0x50] sm:$0xff]   ;;  %v931_v26 = vld [vmem:[%s1424_s0 + $0x58] sm:$0xff]  }
   0x9   :  { %v928_v23 = vld [vmem:[%s1424_s0 + $0xc8] sm:$0xff]   ;;  %v930_v25 = vld [vmem:[%s1424_s0 + $0xd0] sm:$0xff]   ;;  %v932_v27 = vld [vmem:[%s1424_s0 + $0xd8] sm:$0xff]  }
   0xa   :  { %v933_v28 = vld [vmem:[%s1424_s0 + $0x60] sm:$0xff]   ;;  %v935_v30 = vld [vmem:[%s1424_s0 + $0x68] sm:$0xff]   ;;  %v937_v32 = vld [vmem:[%s1424_s0 + $0x70] sm:$0xff]  }
   0xb   :  { %833 = vmatpush3.bf16.msra.mxu0 %v365_v5  ;;  %903 = vmatpush3.bf16.msra.mxu1 %v365_v5  ;;  %v934_v29 = vld [vmem:[%s1424_s0 + $0xe0] sm:$0xff]   ;;  %v936_v31 = vld [vmem:[%s1424_s0 + $0xe8] sm:$0xff]   ;;  %v938_v33 = vld [vmem:[%s1424_s0 + $0xf0] sm:$0xff]  }
   0xc   :  { %v939_v34 = vld [vmem:[%s1424_s0 + $0x78] sm:$0xff]   ;;  %v1101_v36 = vld [vmem:[%s1425_s2] ss:$0 sm:$0xff] }
   0xd   :  { %v940_v35 = vld [vmem:[%s1424_s0 + $0xf8] sm:$0xff]  }
   0xe   :  { %835 = vmatmul.mubr.msk.bf16.vlgmr.msra.gmra.mrb[0].mxu0 %vm266_vm0, %v911_v6  ;;  %867 = vmatmul.mubr.msk.bf16.vlgmr.msra.gmra.mrb[0].mxu1 %vm266_vm0, %v912_v7 }
   0xf   :  { %838 = vmatprep.mubr.msk.bf16.mxu0 %vm266_vm0, %v913_v8  ;;  %870 = vmatprep.mubr.msk.bf16.mxu1 %vm266_vm0, %v914_v9 }
  0x16   :  { %839 = vmatmul.mubr.msk.bf16.gmra.mrb[4].mxu0 %vm266_vm0, %v915_v10  ;;  %871 = vmatmul.mubr.msk.bf16.gmra.mrb[4].mxu1 %vm266_vm0, %v916_v11 }
  0x17   :  { %842 = vmatprep.mubr.msk.bf16.mxu0 %vm266_vm0, %v917_v12  ;;  %874 = vmatprep.mubr.msk.bf16.mxu1 %vm266_vm0, %v918_v13 }
  0x1e   :  { %843 = vmatmul.mubr.msk.bf16.gmra.mrb[8].mxu0 %vm266_vm0, %v919_v14  ;;  %875 = vmatmul.mubr.msk.bf16.gmra.mrb[8].mxu1 %vm266_vm0, %v920_v15 }
  0x1f   :  { %846 = vmatprep.mubr.msk.bf16.mxu0 %vm266_vm0, %v921_v16  ;;  %878 = vmatprep.mubr.msk.bf16.mxu1 %vm266_vm0, %v922_v17 }
  0x26   :  { %847 = vmatmul.mubr.msk.bf16.gmra.mrb[12].mxu0 %vm266_vm0, %v923_v18  ;;  %879 = vmatmul.mubr.msk.bf16.gmra.mrb[12].mxu1 %vm266_vm0, %v924_v19 }
  0x27   :  { %850 = vmatprep.mubr.msk.bf16.mxu0 %vm266_vm0, %v925_v20  ;;  %882 = vmatprep.mubr.msk.bf16.mxu1 %vm266_vm0, %v926_v21 }
  0x2e   :  { %851 = vmatmul.mubr.msk.bf16.gmra.mrb[16].mxu0 %vm266_vm0, %v927_v22  ;;  %883 = vmatmul.mubr.msk.bf16.gmra.mrb[16].mxu1 %vm266_vm0, %v928_v23 }
  0x2f   :  { %854 = vmatprep.mubr.msk.bf16.mxu0 %vm266_vm0, %v929_v24  ;;  %886 = vmatprep.mubr.msk.bf16.mxu1 %vm266_vm0, %v930_v25 }
  0x36   :  { %855 = vmatmul.mubr.msk.bf16.gmra.mrb[20].mxu0 %vm266_vm0, %v931_v26  ;;  %887 = vmatmul.mubr.msk.bf16.gmra.mrb[20].mxu1 %vm266_vm0, %v932_v27 }
  0x37   :  { %858 = vmatprep.mubr.msk.bf16.mxu0 %vm266_vm0, %v933_v28  ;;  %890 = vmatprep.mubr.msk.bf16.mxu1 %vm266_vm0, %v934_v29 }
  0x3e   :  { %859 = vmatmul.mubr.msk.bf16.gmra.mrb[24].mxu0 %vm266_vm0, %v935_v30  ;;  %891 = vmatmul.mubr.msk.bf16.gmra.mrb[24].mxu1 %vm266_vm0, %v936_v31 }
  0x3f   :  { %862 = vmatprep.mubr.msk.bf16.mxu0 %vm266_vm0, %v937_v32  ;;  %894 = vmatprep.mubr.msk.bf16.mxu1 %vm266_vm0, %v938_v33 }
  0x46   :  { %863 = vmatmul.mubr.msk.bf16.gmra.mrb[28].mxu0 %vm266_vm0, %v939_v34  ;;  %895 = vmatmul.mubr.msk.bf16.gmra.mrb[28].mxu1 %vm266_vm0, %v940_v35 }
  0xe1   :  { %v836_v37 = vpop.f32.mrb[0].mxu0  ;;  %v868_v38 = vpop.f32.mrb[0].mxu1 }
  0xe2   :  { %v410_v39 = vadd.f32 %v836_v37, %v1101_v36  ;;  %v538_v40 = vadd.f32 %v868_v38, %v1101_v36  ;;  %v401_v41 = vpop.f32.mrb[1].mxu0  ;;  %v529_v42 = vpop.f32.mrb[1].mxu1 }
  0xe3   :  { %v402_v43 = vadd.f32 %v1101_v36, %v401_v41  ;;  %v530_v44 = vadd.f32 %v1101_v36, %v529_v42  ;;  %v837_v45 = vpop.f32.mrb[2].mxu0  ;;  %v869_v46 = vpop.f32.mrb[2].mxu1 }
  0xe4   :  { %659 = vst.msk [vmem:[%s1426_s3 + $0x10] sm:$0xff] %vm656_vm2, %v410_v39  ;;  %691 = vst.msk [vmem:[%s1426_s3 + $0x110] sm:$0xff] %vm656_vm2, %v538_v40  ;;  %v413_v47 = vadd.f32 %v837_v45, %v1101_v36  ;;  %v541_v48 = vadd.f32 %v869_v46, %v1101_v36  ;;  %v404_v49 = vpop.f32.mrb[3].mxu0  ;;  %v532_v50 = vpop.f32.mrb[3].mxu1 }
  0xe5   :  { %657 = vst.msk [vmem:[%s1426_s3] sm:$0xff] %vm656_vm2, %v402_v43  ;;  %689 = vst.msk [vmem:[%s1426_s3 + $0x100] sm:$0xff] %vm656_vm2, %v530_v44  ;;  %v405_v51 = vadd.f32 %v1101_v36, %v404_v49  ;;  %v533_v52 = vadd.f32 %v1101_v36, %v532_v50 }
  0xe6   :  { %660 = vst.msk [vmem:[%s1426_s3 + $0x18] sm:$0xff] %vm656_vm2, %v413_v47  ;;  %692 = vst.msk [vmem:[%s1426_s3 + $0x118] sm:$0xff] %vm656_vm2, %v541_v48 }
  0xe7   :  { %658 = vst.msk [vmem:[%s1426_s3 + $0x8] sm:$0xff] %vm656_vm2, %v405_v51  ;;  %690 = vst.msk [vmem:[%s1426_s3 + $0x108] sm:$0xff] %vm656_vm2, %v533_v52 }
  0xe9   :  { %v840_v53 = vpop.f32.mrb[4].mxu0  ;;  %v872_v54 = vpop.f32.mrb[4].mxu1 }
  0xea   :  { %v426_v55 = vadd.f32 %v840_v53, %v1101_v36  ;;  %v554_v56 = vadd.f32 %v872_v54, %v1101_v36  ;;  %v417_v57 = vpop.f32.mrb[5].mxu0  ;;  %v545_v58 = vpop.f32.mrb[5].mxu1 }
  0xeb   :  { %v418_v59 = vadd.f32 %v1101_v36, %v417_v57  ;;  %v546_v60 = vadd.f32 %v1101_v36, %v545_v58  ;;  %v841_v61 = vpop.f32.mrb[6].mxu0  ;;  %v873_v62 = vpop.f32.mrb[6].mxu1 }
  0xec   :  { %663 = vst.msk [vmem:[%s1426_s3 + $0x30] sm:$0xff] %vm656_vm2, %v426_v55  ;;  %695 = vst.msk [vmem:[%s1426_s3 + $0x130] sm:$0xff] %vm656_vm2, %v554_v56  ;;  %v429_v63 = vadd.f32 %v841_v61, %v1101_v36  ;;  %v557_v0 = vadd.f32 %v873_v62, %v1101_v36  ;;  %v420_v1 = vpop.f32.mrb[7].mxu0  ;;  %v548_v2 = vpop.f32.mrb[7].mxu1 }
  0xed   :  { %661 = vst.msk [vmem:[%s1426_s3 + $0x20] sm:$0xff] %vm656_vm2, %v418_v59  ;;  %693 = vst.msk [vmem:[%s1426_s3 + $0x120] sm:$0xff] %vm656_vm2, %v546_v60  ;;  %v421_v3 = vadd.f32 %v1101_v36, %v420_v1  ;;  %v549_v4 = vadd.f32 %v1101_v36, %v548_v2 }
  0xee   :  { %664 = vst.msk [vmem:[%s1426_s3 + $0x38] sm:$0xff] %vm656_vm2, %v429_v63  ;;  %696 = vst.msk [vmem:[%s1426_s3 + $0x138] sm:$0xff] %vm656_vm2, %v557_v0 }
  0xef   :  { %662 = vst.msk [vmem:[%s1426_s3 + $0x28] sm:$0xff] %vm656_vm2, %v421_v3  ;;  %694 = vst.msk [vmem:[%s1426_s3 + $0x128] sm:$0xff] %vm656_vm2, %v549_v4 }
  0xf1   :  { %v844_v5 = vpop.f32.mrb[8].mxu0  ;;  %v876_v6 = vpop.f32.mrb[8].mxu1 }
  0xf2   :  { %v442_v7 = vadd.f32 %v844_v5, %v1101_v36  ;;  %v570_v8 = vadd.f32 %v876_v6, %v1101_v36  ;;  %v433_v9 = vpop.f32.mrb[9].mxu0  ;;  %v561_v10 = vpop.f32.mrb[9].mxu1 }
  0xf3   :  { %v434_v11 = vadd.f32 %v1101_v36, %v433_v9  ;;  %v562_v12 = vadd.f32 %v1101_v36, %v561_v10  ;;  %v845_v13 = vpop.f32.mrb[10].mxu0  ;;  %v877_v14 = vpop.f32.mrb[10].mxu1 }
  0xf4   :  { %667 = vst.msk [vmem:[%s1426_s3 + $0x50] sm:$0xff] %vm656_vm2, %v442_v7  ;;  %699 = vst.msk [vmem:[%s1426_s3 + $0x150] sm:$0xff] %vm656_vm2, %v570_v8  ;;  %v445_v15 = vadd.f32 %v845_v13, %v1101_v36  ;;  %v573_v16 = vadd.f32 %v877_v14, %v1101_v36  ;;  %v436_v17 = vpop.f32.mrb[11].mxu0  ;;  %v564_v18 = vpop.f32.mrb[11].mxu1 }
  0xf5   :  { %665 = vst.msk [vmem:[%s1426_s3 + $0x40] sm:$0xff] %vm656_vm2, %v434_v11  ;;  %697 = vst.msk [vmem:[%s1426_s3 + $0x140] sm:$0xff] %vm656_vm2, %v562_v12  ;;  %v437_v19 = vadd.f32 %v1101_v36, %v436_v17  ;;  %v565_v20 = vadd.f32 %v1101_v36, %v564_v18 }
  0xf6   :  { %668 = vst.msk [vmem:[%s1426_s3 + $0x58] sm:$0xff] %vm656_vm2, %v445_v15  ;;  %700 = vst.msk [vmem:[%s1426_s3 + $0x158] sm:$0xff] %vm656_vm2, %v573_v16 }
  0xf7   :  { %666 = vst.msk [vmem:[%s1426_s3 + $0x48] sm:$0xff] %vm656_vm2, %v437_v19  ;;  %698 = vst.msk [vmem:[%s1426_s3 + $0x148] sm:$0xff] %vm656_vm2, %v565_v20 }
  0xf9   :  { %v848_v21 = vpop.f32.mrb[12].mxu0  ;;  %v880_v22 = vpop.f32.mrb[12].mxu1 }
  0xfa   :  { %v458_v23 = vadd.f32 %v848_v21, %v1101_v36  ;;  %v586_v24 = vadd.f32 %v880_v22, %v1101_v36  ;;  %v449_v25 = vpop.f32.mrb[13].mxu0  ;;  %v577_v26 = vpop.f32.mrb[13].mxu1 }
  0xfb   :  { %v450_v27 = vadd.f32 %v1101_v36, %v449_v25  ;;  %v578_v28 = vadd.f32 %v1101_v36, %v577_v26  ;;  %v849_v29 = vpop.f32.mrb[14].mxu0  ;;  %v881_v30 = vpop.f32.mrb[14].mxu1 }
  0xfc   :  { %671 = vst.msk [vmem:[%s1426_s3 + $0x70] sm:$0xff] %vm656_vm2, %v458_v23  ;;  %703 = vst.msk [vmem:[%s1426_s3 + $0x170] sm:$0xff] %vm656_vm2, %v586_v24  ;;  %v461_v31 = vadd.f32 %v849_v29, %v1101_v36  ;;  %v589_v32 = vadd.f32 %v881_v30, %v1101_v36  ;;  %v452_v33 = vpop.f32.mrb[15].mxu0  ;;  %v580_v34 = vpop.f32.mrb[15].mxu1 }
  0xfd   :  { %669 = vst.msk [vmem:[%s1426_s3 + $0x60] sm:$0xff] %vm656_vm2, %v450_v27  ;;  %701 = vst.msk [vmem:[%s1426_s3 + $0x160] sm:$0xff] %vm656_vm2, %v578_v28  ;;  %v453_v35 = vadd.f32 %v1101_v36, %v452_v33  ;;  %v581_v37 = vadd.f32 %v1101_v36, %v580_v34 }
  0xfe   :  { %672 = vst.msk [vmem:[%s1426_s3 + $0x78] sm:$0xff] %vm656_vm2, %v461_v31  ;;  %704 = vst.msk [vmem:[%s1426_s3 + $0x178] sm:$0xff] %vm656_vm2, %v589_v32 }
  0xff   :  { %670 = vst.msk [vmem:[%s1426_s3 + $0x68] sm:$0xff] %vm656_vm2, %v453_v35  ;;  %702 = vst.msk [vmem:[%s1426_s3 + $0x168] sm:$0xff] %vm656_vm2, %v581_v37 }
 0x101   :  { %v852_v38 = vpop.f32.mrb[16].mxu0  ;;  %v884_v39 = vpop.f32.mrb[16].mxu1 }
 0x102   :  { %v474_v40 = vadd.f32 %v852_v38, %v1101_v36  ;;  %v602_v41 = vadd.f32 %v884_v39, %v1101_v36  ;;  %v465_v42 = vpop.f32.mrb[17].mxu0  ;;  %v593_v43 = vpop.f32.mrb[17].mxu1 }
 0x103   :  { %v466_v44 = vadd.f32 %v1101_v36, %v465_v42  ;;  %v594_v45 = vadd.f32 %v1101_v36, %v593_v43  ;;  %v853_v46 = vpop.f32.mrb[18].mxu0  ;;  %v885_v47 = vpop.f32.mrb[18].mxu1 }
 0x104   :  { %675 = vst.msk [vmem:[%s1426_s3 + $0x90] sm:$0xff] %vm656_vm2, %v474_v40  ;;  %707 = vst.msk [vmem:[%s1426_s3 + $0x190] sm:$0xff] %vm656_vm2, %v602_v41  ;;  %v477_v48 = vadd.f32 %v853_v46, %v1101_v36  ;;  %v605_v49 = vadd.f32 %v885_v47, %v1101_v36  ;;  %v468_v50 = vpop.f32.mrb[19].mxu0  ;;  %v596_v51 = vpop.f32.mrb[19].mxu1 }
 0x105   :  { %673 = vst.msk [vmem:[%s1426_s3 + $0x80] sm:$0xff] %vm656_vm2, %v466_v44  ;;  %705 = vst.msk [vmem:[%s1426_s3 + $0x180] sm:$0xff] %vm656_vm2, %v594_v45  ;;  %v469_v52 = vadd.f32 %v1101_v36, %v468_v50  ;;  %v597_v53 = vadd.f32 %v1101_v36, %v596_v51 }
 0x106   :  { %676 = vst.msk [vmem:[%s1426_s3 + $0x98] sm:$0xff] %vm656_vm2, %v477_v48  ;;  %708 = vst.msk [vmem:[%s1426_s3 + $0x198] sm:$0xff] %vm656_vm2, %v605_v49 }
 0x107   :  { %674 = vst.msk [vmem:[%s1426_s3 + $0x88] sm:$0xff] %vm656_vm2, %v469_v52  ;;  %706 = vst.msk [vmem:[%s1426_s3 + $0x188] sm:$0xff] %vm656_vm2, %v597_v53 }
 0x109   :  { %v856_v54 = vpop.f32.mrb[20].mxu0  ;;  %v888_v55 = vpop.f32.mrb[20].mxu1 }
 0x10a   :  { %v490_v56 = vadd.f32 %v856_v54, %v1101_v36  ;;  %v618_v57 = vadd.f32 %v888_v55, %v1101_v36  ;;  %v481_v58 = vpop.f32.mrb[21].mxu0  ;;  %v609_v59 = vpop.f32.mrb[21].mxu1 }
 0x10b   :  { %v482_v60 = vadd.f32 %v1101_v36, %v481_v58  ;;  %v610_v61 = vadd.f32 %v1101_v36, %v609_v59  ;;  %v857_v62 = vpop.f32.mrb[22].mxu0  ;;  %v889_v63 = vpop.f32.mrb[22].mxu1 }
 0x10c   :  { %679 = vst.msk [vmem:[%s1426_s3 + $0xb0] sm:$0xff] %vm656_vm2, %v490_v56  ;;  %711 = vst.msk [vmem:[%s1426_s3 + $0x1b0] sm:$0xff] %vm656_vm2, %v618_v57  ;;  %v493_v0 = vadd.f32 %v857_v62, %v1101_v36  ;;  %v621_v1 = vadd.f32 %v889_v63, %v1101_v36  ;;  %v484_v2 = vpop.f32.mrb[23].mxu0  ;;  %v612_v3 = vpop.f32.mrb[23].mxu1 }
 0x10d   :  { %677 = vst.msk [vmem:[%s1426_s3 + $0xa0] sm:$0xff] %vm656_vm2, %v482_v60  ;;  %709 = vst.msk [vmem:[%s1426_s3 + $0x1a0] sm:$0xff] %vm656_vm2, %v610_v61  ;;  %v485_v4 = vadd.f32 %v1101_v36, %v484_v2  ;;  %v613_v5 = vadd.f32 %v1101_v36, %v612_v3 }
 0x10e   :  { %680 = vst.msk [vmem:[%s1426_s3 + $0xb8] sm:$0xff] %vm656_vm2, %v493_v0  ;;  %712 = vst.msk [vmem:[%s1426_s3 + $0x1b8] sm:$0xff] %vm656_vm2, %v621_v1 }
 0x10f   :  { %678 = vst.msk [vmem:[%s1426_s3 + $0xa8] sm:$0xff] %vm656_vm2, %v485_v4  ;;  %710 = vst.msk [vmem:[%s1426_s3 + $0x1a8] sm:$0xff] %vm656_vm2, %v613_v5 }
 0x111   :  { %v860_v6 = vpop.f32.mrb[24].mxu0  ;;  %v892_v7 = vpop.f32.mrb[24].mxu1 }
 0x112   :  { %v506_v8 = vadd.f32 %v860_v6, %v1101_v36  ;;  %v634_v9 = vadd.f32 %v892_v7, %v1101_v36  ;;  %v497_v10 = vpop.f32.mrb[25].mxu0  ;;  %v625_v11 = vpop.f32.mrb[25].mxu1 }
 0x113   :  { %v498_v12 = vadd.f32 %v1101_v36, %v497_v10  ;;  %v626_v13 = vadd.f32 %v1101_v36, %v625_v11  ;;  %v861_v14 = vpop.f32.mrb[26].mxu0  ;;  %v893_v15 = vpop.f32.mrb[26].mxu1 }
 0x114   :  { %683 = vst.msk [vmem:[%s1426_s3 + $0xd0] sm:$0xff] %vm656_vm2, %v506_v8  ;;  %715 = vst.msk [vmem:[%s1426_s3 + $0x1d0] sm:$0xff] %vm656_vm2, %v634_v9  ;;  %v509_v16 = vadd.f32 %v861_v14, %v1101_v36  ;;  %v637_v17 = vadd.f32 %v893_v15, %v1101_v36  ;;  %v500_v18 = vpop.f32.mrb[27].mxu0  ;;  %v628_v19 = vpop.f32.mrb[27].mxu1 }
 0x115   :  { %681 = vst.msk [vmem:[%s1426_s3 + $0xc0] sm:$0xff] %vm656_vm2, %v498_v12  ;;  %713 = vst.msk [vmem:[%s1426_s3 + $0x1c0] sm:$0xff] %vm656_vm2, %v626_v13  ;;  %v501_v20 = vadd.f32 %v1101_v36, %v500_v18  ;;  %v629_v21 = vadd.f32 %v1101_v36, %v628_v19 }
 0x116   :  { %684 = vst.msk [vmem:[%s1426_s3 + $0xd8] sm:$0xff] %vm656_vm2, %v509_v16  ;;  %716 = vst.msk [vmem:[%s1426_s3 + $0x1d8] sm:$0xff] %vm656_vm2, %v637_v17 }
 0x117   :  { %682 = vst.msk [vmem:[%s1426_s3 + $0xc8] sm:$0xff] %vm656_vm2, %v501_v20  ;;  %714 = vst.msk [vmem:[%s1426_s3 + $0x1c8] sm:$0xff] %vm656_vm2, %v629_v21 }
 0x119   :  { %v864_v22 = vpop.f32.mrb[28].mxu0  ;;  %v896_v23 = vpop.f32.mrb[28].mxu1 }
 0x11a   :  { %v522_v24 = vadd.f32 %v864_v22, %v1101_v36  ;;  %v650_v25 = vadd.f32 %v896_v23, %v1101_v36  ;;  %v513_v26 = vpop.f32.mrb[29].mxu0  ;;  %v641_v27 = vpop.f32.mrb[29].mxu1 }
 0x11b   :  { %v514_v28 = vadd.f32 %v1101_v36, %v513_v26  ;;  %v642_v29 = vadd.f32 %v1101_v36, %v641_v27  ;;  %v865_v30 = vpop.f32.mrb[30].mxu0  ;;  %v897_v31 = vpop.f32.mrb[30].mxu1 }
 0x11c   :  { %687 = vst.msk [vmem:[%s1426_s3 + $0xf0] sm:$0xff] %vm656_vm2, %v522_v24  ;;  %719 = vst.msk [vmem:[%s1426_s3 + $0x1f0] sm:$0xff] %vm656_vm2, %v650_v25  ;;  %v525_v32 = vadd.f32 %v865_v30, %v1101_v36  ;;  %v653_v33 = vadd.f32 %v897_v31, %v1101_v36  ;;  %v516_v34 = vpop.f32.mrb[31].mxu0  ;;  %v644_v35 = vpop.f32.mrb[31].mxu1 }
 0x11d   :  { %685 = vst.msk [vmem:[%s1426_s3 + $0xe0] sm:$0xff] %vm656_vm2, %v514_v28  ;;  %717 = vst.msk [vmem:[%s1426_s3 + $0x1e0] sm:$0xff] %vm656_vm2, %v642_v29  ;;  %v517_v37 = vadd.f32 %v1101_v36, %v516_v34  ;;  %v645_v38 = vadd.f32 %v1101_v36, %v644_v35 }
 0x11e   :  { %688 = vst.msk [vmem:[%s1426_s3 + $0xf8] sm:$0xff] %vm656_vm2, %v525_v32  ;;  %720 = vst.msk [vmem:[%s1426_s3 + $0x1f8] sm:$0xff] %vm656_vm2, %v653_v33 }
 0x11f   :  { %686 = vst.msk [vmem:[%s1426_s3 + $0xe8] sm:$0xff] %vm656_vm2, %v517_v37  ;;  %718 = vst.msk [vmem:[%s1426_s3 + $0x1e8] sm:$0xff] %vm656_vm2, %v645_v38 }

// kernel: inception_a_forward.5
= control target key start
LH: loop header
LB: loop body
LE: loop exit
PB: predicated region body
PF: predicated region fallthrough
CT: control target
= control target key end

     0   :  { %v3136_v0 = vmov 0   ;;  %vm1411_vm0 = vcmask 1043456   ;;  %vm1314_vm1 = vcmask 719872   ;;  %vm2282_vm2 = vcmask 261120   ;;  %s4456_s1 = inlined_call_operand.vmem [shape: bf16[600,32], index: 1, kind: input, shape index: {}]   ;;  %s4457_s0 = inlined_call_operand.vmem [shape: bf16[512,600], index: 0, kind: input, shape index: {}]   ;;  %s4458_s2 = inlined_call_operand.vmem [shape: f32[1,32], index: 2, kind: input, shape index: {}]   ;;  %s4459_s3 = inlined_call_operand.vmem [shape: f32[512,32], index: 3, kind: output, shape index: {}]  }
   0x1   :  { %1415 = vmatprep.subr.bf16.mxu0 %v3136_v0  ;;  %2696 = vmatprep.subr.bf16.mxu1 %v3136_v0  ;;  %v2874_v1 = vld [vmem:[%s4456_s1] sm:$0xff]   ;;  %v2875_v2 = vld [vmem:[%s4456_s1 + $0x8] sm:$0xff]   ;;  %v2876_v3 = vld [vmem:[%s4456_s1 + $0x10] sm:$0xff]  }
   0x2   :  { %1416 = vmatpush1.bf16.msra.mxu0 %v2874_v1  ;;  %2712 = vmatpush1.bf16.msra.mxu1 %v2874_v1  ;;  %v2877_v4 = vld [vmem:[%s4456_s1 + $0x18] sm:$0xff]   ;;  %v2878_v5 = vld [vmem:[%s4456_s1 + $0x20] sm:$0xff]   ;;  %v2879_v7 = vld [vmem:[%s4456_s1 + $0x28] sm:$0xff]  }
   0x3   :  { %1417 = vmatprep.subr.bf16.mxu0 %v3136_v0  ;;  %2697 = vmatprep.subr.bf16.mxu1 %v3136_v0  ;;  %v2892_v6 = vld [vmem:[%s4457_s0 + $0x4] ss:$20 sps:$4 sm:$0xff]   ;;  %v2880_v9 = vld [vmem:[%s4456_s1 + $0x30] sm:$0xff]   ;;  %v2883_v12 = vld [vmem:[%s4456_s1 + $0x48] sm:$0xff]  }
   0x4   :  { %v2895_v8 = vld [vmem:[%s4457_s0 + $0x144] ss:$20 sps:$4 sm:$0xff]   ;;  %1447 = vmatprep.mubr.bf16.mxu0 %v2892_v6  ;;  %v2884_v13 = vld [vmem:[%s4456_s1 + $0x50] sm:$0xff]   ;;  %v2887_v16 = vld [vmem:[%s4456_s1 + $0x68] sm:$0xff]  }
   0x5   :  { %1511 = vmatprep.mubr.bf16.mxu1 %v2895_v8  ;;  %v2881_v10 = vld [vmem:[%s4456_s1 + $0x38] sm:$0xff]   ;;  %v2882_v11 = vld [vmem:[%s4456_s1 + $0x40] sm:$0xff]   ;;  %v2888_v17 = vld [vmem:[%s4456_s1 + $0x70] sm:$0xff]  }
   0x6   :  { %1418 = vmatpush1.bf16.msra.mxu0 %v2875_v2  ;;  %2713 = vmatpush1.bf16.msra.mxu1 %v2875_v2  ;;  %v2885_v14 = vld [vmem:[%s4456_s1 + $0x58] sm:$0xff]   ;;  %v2886_v15 = vld [vmem:[%s4456_s1 + $0x60] sm:$0xff]   ;;  %v2930_v25 = vld [vmem:[%s4456_s1 + $0x108] sm:$0xff]  }
   0x7   :  { %1419 = vmatprep.subr.bf16.mxu0 %v3136_v0  ;;  %2698 = vmatprep.subr.bf16.mxu1 %v3136_v0  ;;  %v2889_v18 = vld [vmem:[%s4456_s1 + $0x78] sm:$0xff]   ;;  %v2897_v19 = vld [vmem:[%s4456_s1 + $0x100] sm:$0xff]   ;;  %v2898_v26 = vld [vmem:[%s4456_s1 + $0x88] sm:$0xff]  }
   0x8   :  { %v2890_v20 = vld [vmem:[%s4457_s0] ss:$20 sps:$4 sm:$0xff]   ;;  %v2903_v28 = vld [vmem:[%s4457_s0 + $0x28] ss:$20 sps:$4 sm:$0xff]   ;;  %v2911_v35 = vld [vmem:[%s4457_s0 + $0x50] ss:$20 sps:$4 sm:$0xff]  }
   0x9   :  { %v2893_v21 = vld [vmem:[%s4457_s0 + $0x140] ss:$20 sps:$4 sm:$0xff]   ;;  %v2904_v29 = vld [vmem:[%s4457_s0 + $0x168] ss:$20 sps:$4 sm:$0xff]   ;;  %v2912_v36 = vld [vmem:[%s4457_s0 + $0x190] ss:$20 sps:$4 sm:$0xff]  }
   0xa   :  { %1420 = vmatpush1.bf16.msra.mxu0 %v2876_v3  ;;  %2714 = vmatpush1.bf16.msra.mxu1 %v2876_v3  ;;  %v2896_v22 = vld [vmem:[%s4456_s1 + $0x80] sm:$0xff]   ;;  %v2962_v27 = vld [vmem:[%s4456_s1 + $0x110] sm:$0xff]   ;;  %v2987_v33 = vld [vmem:[%s4456_s1 + $0x118] sm:$0xff]  }
   0xb   :  { %1421 = vmatprep.subr.bf16.mxu0 %v3136_v0  ;;  %2699 = vmatprep.subr.bf16.mxu1 %v3136_v0  ;;  %v2899_v23 = vld [vmem:[%s4457_s0 + $0x2c] ss:$20 sps:$4 sm:$0xff]   ;;  %v2905_v30 = vld [vmem:[%s4456_s1 + $0x90] sm:$0xff]   ;;  %v2906_v34 = vld [vmem:[%s4456_s1 + $0x98] sm:$0xff]  }
   0xc   :  { %v2901_v24 = vld [vmem:[%s4457_s0 + $0x16c] ss:$20 sps:$4 sm:$0xff]   ;;  %v2907_v31 = vld [vmem:[%s4457_s0 + $0x54] ss:$20 sps:$4 sm:$0xff]   ;;  %v2915_v38 = vld [vmem:[%s4457_s0 + $0x7c] ss:$20 sps:$4 sm:$0xff]  }
   0xd   :  { %v2909_v32 = vld [vmem:[%s4457_s0 + $0x194] ss:$20 sps:$4 sm:$0xff]   ;;  %v2913_v37 = vld [vmem:[%s4456_s1 + $0xa0] sm:$0xff]   ;;  %v2917_v39 = vld [vmem:[%s4457_s0 + $0x1bc] ss:$20 sps:$4 sm:$0xff]  }
   0xe   :  { %1422 = vmatpush1.bf16.msra.mxu0 %v2877_v4  ;;  %2715 = vmatpush1.bf16.msra.mxu1 %v2877_v4  ;;  %v2914_v40 = vld [vmem:[%s4456_s1 + $0xa8] sm:$0xff]   ;;  %v3012_v41 = vld [vmem:[%s4456_s1 + $0x120] sm:$0xff]   ;;  %v2921_v44 = vld [vmem:[%s4456_s1 + $0xb0] sm:$0xff]  }
   0xf   :  { %1423 = vmatprep.subr.bf16.mxu0 %v3136_v0  ;;  %2700 = vmatprep.subr.bf16.mxu1 %v3136_v0  ;;  %v2919_v42 = vld [vmem:[%s4457_s0 + $0x78] ss:$20 sps:$4 sm:$0xff]   ;;  %v2927_v48 = vld [vmem:[%s4457_s0 + $0xa0] ss:$20 sps:$4 sm:$0xff]   ;;  %v3037_v53 = vld [vmem:[%s4456_s1 + $0x128] ss:$0 sps:$4 sm:$0xff]  }
  0x10   :  { %v2920_v43 = vld [vmem:[%s4457_s0 + $0x1b8] ss:$20 sps:$4 sm:$0xff]   ;;  %v2928_v49 = vld [vmem:[%s4457_s0 + $0x1e0] ss:$20 sps:$4 sm:$0xff]   ;;  %v2936_v55 = vld [vmem:[%s4457_s0 + $0xc8] ss:$20 sps:$4 sm:$0xff]  }
  0x11   :  { %v2923_v45 = vld [vmem:[%s4457_s0 + $0xa4] ss:$20 sps:$4 sm:$0xff]   ;;  %v2932_v51 = vld [vmem:[%s4457_s0 + $0xcc] ss:$20 sps:$4 sm:$0xff]   ;;  %v2937_v56 = vld [vmem:[%s4457_s0 + $0x208] ss:$20 sps:$4 sm:$0xff]  }
  0x12   :  { %1424 = vmatpush1.bf16.msra.mxu0 %v2878_v5  ;;  %2716 = vmatpush1.bf16.msra.mxu1 %v2878_v5  ;;  %v2925_v46 = vld [vmem:[%s4457_s0 + $0x1e4] ss:$20 sps:$4 sm:$0xff]   ;;  %v2934_v52 = vld [vmem:[%s4457_s0 + $0x20c] ss:$20 sps:$4 sm:$0xff]   ;;  %v1413_v57 = vsel %vm1411_vm0, %v3037_v53, 0  ;;  %v2938_v58 = vld [vmem:[%s4456_s1 + $0xd0] sm:$0xff]  }
  0x13   :  { %1425 = vmatprep.subr.bf16.mxu0 %v3136_v0  ;;  %2701 = vmatprep.subr.bf16.mxu1 %v3136_v0  ;;  %v2922_v47 = vld [vmem:[%s4456_s1 + $0xb8] sm:$0xff]   ;;  %v2929_v50 = vld [vmem:[%s4456_s1 + $0xc0] sm:$0xff]   ;;  %v2931_v54 = vld [vmem:[%s4456_s1 + $0xc8] sm:$0xff]  }
  0x14   :  { %v2940_v59 = vld [vmem:[%s4457_s0 + $0xf4] ss:$20 sps:$4 sm:$0xff]   ;;  %v2939_v61 = vld [vmem:[%s4456_s1 + $0xd8] sm:$0xff]   ;;  %v2944_v62 = vld [vmem:[%s4457_s0 + $0xf0] ss:$20 sps:$4 sm:$0xff]  }
  0x15   :  { %v2942_v60 = vld [vmem:[%s4457_s0 + $0x234] ss:$20 sps:$4 sm:$0xff]   ;;  %v2945_v63 = vld [vmem:[%s4457_s0 + $0x230] ss:$20 sps:$4 sm:$0xff]   ;;  %v2952_v5 = vld [vmem:[%s4457_s0 + $0x118] ss:$20 sps:$4 sm:$0xff]  }
  0x16   :  { %1426 = vmatpush1.bf16.msra.mxu0 %v2879_v7  ;;  %2717 = vmatpush1.bf16.msra.mxu1 %v2879_v7  ;;  %v2946_v1 = vld [vmem:[%s4456_s1 + $0xe0] sm:$0xff]   ;;  %v2948_v2 = vld [vmem:[%s4457_s0 + $0x11c] ss:$20 sps:$4 sm:$0xff]   ;;  %v2947_v4 = vld [vmem:[%s4456_s1 + $0xe8] sm:$0xff]  }
  0x17   :  { %1427 = vmatprep.subr.bf16.mxu0 %v3136_v0  ;;  %2702 = vmatprep.subr.bf16.mxu1 %v3136_v0  ;;  %v2950_v3 = vld [vmem:[%s4457_s0 + $0x25c] ss:$20 sps:$4 sm:$0xff]   ;;  %v2953_v6 = vld [vmem:[%s4457_s0 + $0x258] ss:$20 sps:$4 sm:$0xff]  }
  0x18   :  { %v2954_v7 = vld [vmem:[%s4456_s1 + $0xf0] sm:$0xff]   ;;  %v2956_v8 = vld [vmem:[%s4457_s0 + $0x284] ss:$20 sps:$4 sm:$0xff]  }
  0x1a   :  { %1428 = vmatpush1.bf16.msra.mxu0 %v2880_v9  ;;  %2718 = vmatpush1.bf16.msra.mxu1 %v2880_v9  ;;  %v2960_v9 = vld [vmem:[%s4457_s0 + $0xc] ss:$20 sps:$4 sm:$0xff]  }
  0x1b   :  { %1429 = vmatprep.subr.bf16.mxu0 %v3136_v0  ;;  %2703 = vmatprep.subr.bf16.mxu1 %v3136_v0 }
  0x1e   :  { %1430 = vmatpush1.bf16.msra.mxu0 %v2881_v10  ;;  %2719 = vmatpush1.bf16.msra.mxu1 %v2881_v10  ;;  %v2955_v10 = vld [vmem:[%s4456_s1 + $0xf8] sm:$0xff]  }
  0x1f   :  { %1431 = vmatprep.subr.bf16.mxu0 %v3136_v0  ;;  %2704 = vmatprep.subr.bf16.mxu1 %v3136_v0 }
  0x22   :  { %1432 = vmatpush1.bf16.msra.mxu0 %v2882_v11  ;;  %2720 = vmatpush1.bf16.msra.mxu1 %v2882_v11  ;;  %v2958_v11 = vld [vmem:[%s4457_s0 + $0x8] ss:$20 sps:$4 sm:$0xff]  }
  0x23   :  { %1433 = vmatprep.subr.bf16.mxu0 %v3136_v0  ;;  %2705 = vmatprep.subr.bf16.mxu1 %v3136_v0 }
  0x26   :  { %1434 = vmatpush1.bf16.msra.mxu0 %v2883_v12  ;;  %2721 = vmatpush1.bf16.msra.mxu1 %v2883_v12  ;;  %v2961_v12 = vld [vmem:[%s4457_s0 + $0x280] ss:$20 sps:$4 sm:$0xff]  }
  0x27   :  { %1435 = vmatprep.subr.bf16.mxu0 %v3136_v0  ;;  %2706 = vmatprep.subr.bf16.mxu1 %v3136_v0 }
  0x2a   :  { %1436 = vmatpush1.bf16.msra.mxu0 %v2884_v13  ;;  %2722 = vmatpush1.bf16.msra.mxu1 %v2884_v13  ;;  %v2963_v13 = vld [vmem:[%s4457_s0 + $0x2ac] ss:$20 sps:$4 sm:$0xff]  }
  0x2b   :  { %1437 = vmatprep.subr.bf16.mxu0 %v3136_v0  ;;  %2707 = vmatprep.subr.bf16.mxu1 %v3136_v0 }
  0x2e   :  { %1438 = vmatpush1.bf16.msra.mxu0 %v2885_v14  ;;  %2723 = vmatpush1.bf16.msra.mxu1 %v2885_v14  ;;  %v2965_v14 = vld [vmem:[%s4457_s0 + $0x34] ss:$20 sps:$4 sm:$0xff]  }
  0x2f   :  { %1439 = vmatprep.subr.bf16.mxu0 %v3136_v0  ;;  %2708 = vmatprep.subr.bf16.mxu1 %v3136_v0 }
  0x32   :  { %1440 = vmatpush1.bf16.msra.mxu0 %v2886_v15  ;;  %2724 = vmatpush1.bf16.msra.mxu1 %v2886_v15  ;;  %v2968_v15 = vld [vmem:[%s4457_s0 + $0x30] ss:$20 sps:$4 sm:$0xff]  }
  0x33   :  { %1441 = vmatprep.subr.bf16.mxu0 %v3136_v0  ;;  %2709 = vmatprep.subr.bf16.mxu1 %v3136_v0 }
  0x36   :  { %1442 = vmatpush1.bf16.msra.mxu0 %v2887_v16  ;;  %2725 = vmatpush1.bf16.msra.mxu1 %v2887_v16  ;;  %v2969_v16 = vld [vmem:[%s4457_s0 + $0x2d4] ss:$20 sps:$4 sm:$0xff]  }
  0x37   :  { %1443 = vmatprep.subr.bf16.mxu0 %v3136_v0  ;;  %2710 = vmatprep.subr.bf16.mxu1 %v3136_v0 }
  0x3a   :  { %1444 = vmatpush1.bf16.msra.mxu0 %v2888_v17  ;;  %2726 = vmatpush1.bf16.msra.mxu1 %v2888_v17  ;;  %v2971_v17 = vld [vmem:[%s4457_s0 + $0x5c] ss:$20 sps:$4 sm:$0xff]  }
  0x3b   :  { %1445 = vmatprep.subr.bf16.mxu0 %v3136_v0  ;;  %2711 = vmatprep.subr.bf16.mxu1 %v3136_v0 }
  0x3e   :  { %1446 = vmatpush1.bf16.msra.mxu0 %v2889_v18  ;;  %2727 = vmatpush1.bf16.msra.mxu1 %v2889_v18  ;;  %v2973_v18 = vld [vmem:[%s4457_s0 + $0x2d0] ss:$20 sps:$4 sm:$0xff]  }
  0x3f   :  { %1704 = vmatprep.subr.bf16.mxu0 %v3136_v0  ;;  %2620 = vmatprep.subr.bf16.mxu1 %v2897_v19 }
  0x41   :  { %1448 = vmatmul.mubr.bf16.vlgmr.msra.gmra.mrb[0].mxu0 %v2890_v20  ;;  %1512 = vmatmul.mubr.bf16.vlgmr.msra.gmra.mrb[0].mxu1 %v2893_v21  ;;  %v2975_v20 = vld [vmem:[%s4457_s0 + $0x2fc] ss:$20 sps:$4 sm:$0xff]   ;;  %v2977_v21 = vld [vmem:[%s4457_s0 + $0x84] ss:$20 sps:$4 sm:$0xff]  }
  0x42   :  { %1705 = vmatpush1.bf16.msra.mxu0 %v2896_v22  ;;  %2621 = vmatpush3.bf16.msra.mxu1 %v2897_v19  ;;  %v2974_v19 = vld [vmem:[%s4457_s0 + $0x58] ss:$20 sps:$4 sm:$0xff]  }
  0x43   :  { %1706 = vmatprep.subr.bf16.mxu0 %v3136_v0  ;;  %1455 = vmatprep.mubr.bf16.mxu0 %v2899_v23  ;;  %v2979_v22 = vld [vmem:[%s4457_s0 + $0x2f8] ss:$20 sps:$4 sm:$0xff]   ;;  %v2980_v23 = vld [vmem:[%s4457_s0 + $0x80] ss:$20 sps:$4 sm:$0xff]  }
  0x44   :  { %1519 = vmatprep.mubr.bf16.mxu1 %v2901_v24  ;;  %2622 = vmatprep.subr.bf16.mxu1 %v2930_v25  ;;  %v2981_v24 = vld [vmem:[%s4457_s0 + $0x324] ss:$20 sps:$4 sm:$0xff]  }
  0x46   :  { %1707 = vmatpush1.bf16.msra.mxu0 %v2898_v26  ;;  %2623 = vmatpush3.bf16.msra.mxu1 %v2930_v25  ;;  %v2983_v25 = vld [vmem:[%s4457_s0 + $0xac] ss:$20 sps:$4 sm:$0xff]  }
  0x47   :  { %1708 = vmatprep.subr.bf16.mxu0 %v3136_v0  ;;  %2624 = vmatprep.subr.bf16.mxu1 %v2962_v27  ;;  %v2985_v26 = vld [vmem:[%s4457_s0 + $0x320] ss:$20 sps:$4 sm:$0xff]  }
  0x49   :  { %1456 = vmatmul.mubr.bf16.gmra.mrb[4].mxu0 %v2903_v28  ;;  %1520 = vmatmul.mubr.bf16.gmra.mrb[4].mxu1 %v2904_v29  ;;  %v2988_v28 = vld [vmem:[%s4457_s0 + $0x34c] ss:$20 sps:$4 sm:$0xff]   ;;  %v2990_v29 = vld [vmem:[%s4457_s0 + $0xd4] ss:$20 sps:$4 sm:$0xff]  }
  0x4a   :  { %1709 = vmatpush1.bf16.msra.mxu0 %v2905_v30  ;;  %1463 = vmatprep.mubr.bf16.mxu0 %v2907_v31  ;;  %v2992_v30 = vld [vmem:[%s4457_s0 + $0x348] ss:$20 sps:$4 sm:$0xff]   ;;  %v2993_v31 = vld [vmem:[%s4457_s0 + $0xd0] ss:$20 sps:$4 sm:$0xff]  }
  0x4b   :  { %1710 = vmatprep.subr.bf16.mxu0 %v3136_v0  ;;  %1527 = vmatprep.mubr.bf16.mxu1 %v2909_v32  ;;  %v2994_v32 = vld [vmem:[%s4457_s0 + $0x374] ss:$20 sps:$4 sm:$0xff]  }
  0x4c   :  { %2625 = vmatpush3.bf16.msra.mxu1 %v2962_v27  ;;  %v2986_v27 = vld [vmem:[%s4457_s0 + $0xa8] ss:$20 sps:$4 sm:$0xff]  }
  0x4d   :  { %2626 = vmatprep.subr.bf16.mxu1 %v2987_v33 }
  0x4e   :  { %1711 = vmatpush1.bf16.msra.mxu0 %v2906_v34  ;;  %v2998_v34 = vld [vmem:[%s4457_s0 + $0x370] ss:$20 sps:$4 sm:$0xff]  }
  0x4f   :  { %1712 = vmatprep.subr.bf16.mxu0 %v3136_v0 }
  0x50   :  { %2627 = vmatpush3.bf16.msra.mxu1 %v2987_v33  ;;  %v2996_v33 = vld [vmem:[%s4457_s0 + $0xfc] ss:$20 sps:$4 sm:$0xff]  }
  0x51   :  { %1464 = vmatmul.mubr.bf16.gmra.mrb[8].mxu0 %v2911_v35  ;;  %1528 = vmatmul.mubr.bf16.gmra.mrb[8].mxu1 %v2912_v36  ;;  %v2999_v35 = vld [vmem:[%s4457_s0 + $0xf8] ss:$20 sps:$4 sm:$0xff]   ;;  %v3000_v36 = vld [vmem:[%s4457_s0 + $0x39c] ss:$20 sps:$4 sm:$0xff]  }
  0x52   :  { %1713 = vmatpush1.bf16.msra.mxu0 %v2913_v37  ;;  %1471 = vmatprep.mubr.bf16.mxu0 %v2915_v38  ;;  %v3002_v37 = vld [vmem:[%s4457_s0 + $0x124] ss:$20 sps:$4 sm:$0xff]  }
  0x53   :  { %1714 = vmatprep.subr.bf16.mxu0 %v3136_v0  ;;  %1535 = vmatprep.mubr.bf16.mxu1 %v2917_v39  ;;  %v3004_v38 = vld [vmem:[%s4457_s0 + $0x398] ss:$20 sps:$4 sm:$0xff]   ;;  %v3005_v39 = vld [vmem:[%s4457_s0 + $0x120] ss:$20 sps:$4 sm:$0xff]  }
  0x54   :  { %2628 = vmatprep.subr.bf16.mxu1 %v3012_v41 }
  0x55   :  { %2629 = vmatpush3.bf16.msra.mxu1 %v3012_v41  ;;  %v3008_v41 = vld [vmem:[%s4457_s0 + $0x14c] ss:$20 sps:$4 sm:$0xff]  }
  0x56   :  { %1715 = vmatpush1.bf16.msra.mxu0 %v2914_v40  ;;  %2872 = vmatprep.subr.msk.bf16.mxu1 %vm1411_vm0, %v3037_v53  ;;  %v3006_v40 = vld [vmem:[%s4457_s0 + $0x3c4] ss:$20 sps:$4 sm:$0xff]  }
  0x57   :  { %1716 = vmatprep.subr.bf16.mxu0 %v3136_v0  ;;  %v3027_v53 = vld [vmem:[%s4457_s0 + $0x1c4] ss:$20 sps:$4 sm:$0xff]  }
  0x59   :  { %1472 = vmatmul.mubr.bf16.gmra.mrb[12].mxu0 %v2919_v42  ;;  %1536 = vmatmul.mubr.bf16.gmra.mrb[12].mxu1 %v2920_v43  ;;  %v3010_v42 = vld [vmem:[%s4457_s0 + $0x3c0] ss:$20 sps:$4 sm:$0xff]   ;;  %v3011_v43 = vld [vmem:[%s4457_s0 + $0x148] ss:$20 sps:$4 sm:$0xff]  }
  0x5a   :  { %1717 = vmatpush1.bf16.msra.mxu0 %v2921_v44  ;;  %1479 = vmatprep.mubr.bf16.mxu0 %v2923_v45  ;;  %v3013_v44 = vld [vmem:[%s4457_s0 + $0x3ec] ss:$20 sps:$4 sm:$0xff]   ;;  %v3015_v45 = vld [vmem:[%s4457_s0 + $0x174] ss:$20 sps:$4 sm:$0xff]  }
  0x5b   :  { %1718 = vmatprep.subr.bf16.mxu0 %v3136_v0  ;;  %1543 = vmatprep.mubr.bf16.mxu1 %v2925_v46  ;;  %v3017_v46 = vld [vmem:[%s4457_s0 + $0x3e8] ss:$20 sps:$4 sm:$0xff]  }
  0x5c   :  { %2631 = vmatpush3.bf16.msra.mxu1 %v1413_v57  ;;  %v3033_v57 = vld [vmem:[%s4457_s0 + $0x1ec] ss:$20 sps:$4 sm:$0xff]  }
  0x5e   :  { %1719 = vmatpush1.bf16.msra.mxu0 %v2922_v47  ;;  %v3018_v47 = vld [vmem:[%s4457_s0 + $0x170] ss:$20 sps:$4 sm:$0xff]  }
  0x5f   :  { %1720 = vmatprep.subr.bf16.mxu0 %v3136_v0 }
  0x61   :  { %1480 = vmatmul.mubr.bf16.gmra.mrb[16].mxu0 %v2927_v48  ;;  %1544 = vmatmul.mubr.bf16.gmra.mrb[16].mxu1 %v2928_v49  ;;  %v3019_v48 = vld [vmem:[%s4457_s0 + $0x414] ss:$20 sps:$4 sm:$0xff]   ;;  %v3021_v49 = vld [vmem:[%s4457_s0 + $0x19c] ss:$20 sps:$4 sm:$0xff]  }
  0x62   :  { %1721 = vmatpush1.bf16.msra.mxu0 %v2929_v50  ;;  %1487 = vmatprep.mubr.bf16.mxu0 %v2932_v51  ;;  %v3023_v50 = vld [vmem:[%s4457_s0 + $0x410] ss:$20 sps:$4 sm:$0xff]   ;;  %v3024_v51 = vld [vmem:[%s4457_s0 + $0x198] ss:$20 sps:$4 sm:$0xff]  }
  0x63   :  { %1722 = vmatprep.subr.bf16.mxu0 %v3136_v0  ;;  %1551 = vmatprep.mubr.bf16.mxu1 %v2934_v52  ;;  %v3025_v52 = vld [vmem:[%s4457_s0 + $0x43c] ss:$20 sps:$4 sm:$0xff]  }
  0x66   :  { %1723 = vmatpush1.bf16.msra.mxu0 %v2931_v54  ;;  %v3029_v54 = vld [vmem:[%s4457_s0 + $0x438] ss:$20 sps:$4 sm:$0xff]  }
  0x67   :  { %1724 = vmatprep.subr.bf16.mxu0 %v3136_v0 }
  0x69   :  { %1488 = vmatmul.mubr.bf16.gmra.mrb[20].mxu0 %v2936_v55  ;;  %1552 = vmatmul.mubr.bf16.gmra.mrb[20].mxu1 %v2937_v56  ;;  %v3030_v55 = vld [vmem:[%s4457_s0 + $0x1c0] ss:$20 sps:$4 sm:$0xff]   ;;  %v3031_v56 = vld [vmem:[%s4457_s0 + $0x464] ss:$20 sps:$4 sm:$0xff]  }
  0x6a   :  { %1725 = vmatpush1.bf16.msra.mxu0 %v2938_v58  ;;  %1495 = vmatprep.mubr.bf16.mxu0 %v2940_v59  ;;  %v3035_v58 = vld [vmem:[%s4457_s0 + $0x460] ss:$20 sps:$4 sm:$0xff]   ;;  %v3036_v59 = vld [vmem:[%s4457_s0 + $0x1e8] ss:$20 sps:$4 sm:$0xff]  }
  0x6b   :  { %1726 = vmatprep.subr.bf16.mxu0 %v3136_v0  ;;  %1559 = vmatprep.mubr.bf16.mxu1 %v2942_v60  ;;  %v3038_v60 = vld [vmem:[%s4457_s0 + $0x48c] ss:$20 sps:$4 sm:$0xff]  }
  0x6e   :  { %1727 = vmatpush1.bf16.msra.mxu0 %v2939_v61  ;;  %v3040_v61 = vld [vmem:[%s4457_s0 + $0x214] ss:$20 sps:$4 sm:$0xff]  }
  0x6f   :  { %1728 = vmatprep.subr.bf16.mxu0 %v3136_v0 }
  0x71   :  { %1496 = vmatmul.mubr.bf16.gmra.mrb[24].mxu0 %v2944_v62  ;;  %1560 = vmatmul.mubr.bf16.gmra.mrb[24].mxu1 %v2945_v63  ;;  %v3042_v62 = vld [vmem:[%s4457_s0 + $0x488] ss:$20 sps:$4 sm:$0xff]   ;;  %v3043_v63 = vld [vmem:[%s4457_s0 + $0x210] ss:$20 sps:$4 sm:$0xff]  }
  0x72   :  { %1729 = vmatpush1.bf16.msra.mxu0 %v2946_v1  ;;  %1503 = vmatprep.mubr.bf16.mxu0 %v2948_v2  ;;  %v3044_v1 = vld [vmem:[%s4457_s0 + $0x4b4] ss:$20 sps:$4 sm:$0xff]   ;;  %v3046_v2 = vld [vmem:[%s4457_s0 + $0x23c] ss:$20 sps:$4 sm:$0xff]  }
  0x73   :  { %1730 = vmatprep.subr.bf16.mxu0 %v3136_v0  ;;  %1567 = vmatprep.mubr.bf16.mxu1 %v2950_v3  ;;  %v3048_v3 = vld [vmem:[%s4457_s0 + $0x4b0] ss:$20 sps:$4 sm:$0xff]  }
  0x76   :  { %1731 = vmatpush1.bf16.msra.mxu0 %v2947_v4  ;;  %v3049_v4 = vld [vmem:[%s4457_s0 + $0x238] ss:$20 sps:$4 sm:$0xff]  }
  0x77   :  { %1732 = vmatprep.subr.bf16.mxu0 %v3136_v0 }
  0x79   :  { %1504 = vmatmul.mubr.bf16.gmra.mrb[28].mxu0 %v2952_v5  ;;  %1568 = vmatmul.mubr.bf16.gmra.mrb[28].mxu1 %v2953_v6  ;;  %v3050_v5 = vld [vmem:[%s4457_s0 + $0x4dc] ss:$20 sps:$4 sm:$0xff]   ;;  %v3052_v6 = vld [vmem:[%s4457_s0 + $0x264] ss:$20 sps:$4 sm:$0xff]  }
  0x7a   :  { %1733 = vmatpush1.bf16.msra.mxu0 %v2954_v7  ;;  %1575 = vmatprep.mubr.bf16.mxu1 %v2956_v8  ;;  %v3054_v7 = vld [vmem:[%s4457_s0 + $0x4d8] ss:$20 sps:$4 sm:$0xff]   ;;  %v3055_v8 = vld [vmem:[%s4457_s0 + $0x260] ss:$20 sps:$4 sm:$0xff]  }
  0x7b   :  { %1734 = vmatprep.subr.bf16.mxu0 %v3136_v0  ;;  %1736 = vmatprep.mubr.bf16.mxu0 %v2960_v9  ;;  %v2967_v0 = vld [vmem:[%s4457_s0 + $0x2a8] ss:$20 sps:$4 sm:$0xff]   ;;  %v3056_v9 = vld [vmem:[%s4457_s0 + $0x28c] ss:$20 sps:$4 sm:$0xff]  }
  0x7e   :  { %1735 = vmatpush1.bf16.msra.mxu0 %v2955_v10  ;;  %v3058_v10 = vld [vmem:[%s4457_s0 + $0x10] ss:$20 sps:$4 sm:$0xff]  }
  0x81   :  { %1576 = vmatmul.mubr.bf16.gmra.mrb[32].mxu1 %v2961_v12  ;;  %1737 = vmatmul.mubr.bf16.vlgmr.msra.gmra.mrb[0].mxu0 %v2958_v11  ;;  %v3059_v11 = vld [vmem:[%s4457_s0 + $0x288] ss:$20 sps:$4 sm:$0xff]   ;;  %v3060_v12 = vld [vmem:[%s4457_s0 + $0x38] ss:$20 sps:$4 sm:$0xff]  }
  0x82   :  { %1583 = vmatprep.mubr.bf16.mxu1 %v2963_v13  ;;  %1744 = vmatprep.mubr.bf16.mxu0 %v2965_v14  ;;  %v3061_v13 = vld [vmem:[%s4457_s0 + $0x2b4] ss:$20 sps:$4 sm:$0xff]  }
  0x83   :  { %v3063_v14 = vld [vmem:[%s4457_s0 + $0x60] ss:$20 sps:$4 sm:$0xff]  }
  0x89   :  { %1584 = vmatmul.mubr.bf16.gmra.mrb[36].mxu1 %v2967_v0  ;;  %1745 = vmatmul.mubr.bf16.gmra.mrb[4].mxu0 %v2968_v15  ;;  %v3064_v0 = vld [vmem:[%s4457_s0 + $0x2b0] ss:$20 sps:$4 sm:$0xff]   ;;  %v3065_v15 = vld [vmem:[%s4457_s0 + $0x88] ss:$20 sps:$4 sm:$0xff]  }
  0x8a   :  { %1591 = vmatprep.mubr.bf16.mxu1 %v2969_v16  ;;  %1752 = vmatprep.mubr.bf16.mxu0 %v2971_v17  ;;  %v3066_v16 = vld [vmem:[%s4457_s0 + $0x2dc] ss:$20 sps:$4 sm:$0xff]  }
  0x8b   :  { %v3068_v17 = vld [vmem:[%s4457_s0 + $0xb0] ss:$20 sps:$4 sm:$0xff]  }
  0x91   :  { %1592 = vmatmul.mubr.bf16.gmra.mrb[40].mxu1 %v2973_v18  ;;  %1753 = vmatmul.mubr.bf16.gmra.mrb[8].mxu0 %v2974_v19  ;;  %v3069_v18 = vld [vmem:[%s4457_s0 + $0x2d8] ss:$20 sps:$4 sm:$0xff]  }
  0x92   :  { %1599 = vmatprep.mubr.bf16.mxu1 %v2975_v20  ;;  %1760 = vmatprep.mubr.bf16.mxu0 %v2977_v21  ;;  %v3070_v19 = vld [vmem:[%s4457_s0 + $0xd8] ss:$20 sps:$4 sm:$0xff]   ;;  %v3073_v21 = vld [vmem:[%s4457_s0 + $0x100] ss:$20 sps:$4 sm:$0xff]  }
  0x93   :  { %v3071_v20 = vld [vmem:[%s4457_s0 + $0x304] ss:$20 sps:$4 sm:$0xff]  }
  0x99   :  { %1600 = vmatmul.mubr.bf16.gmra.mrb[44].mxu1 %v2979_v22  ;;  %1761 = vmatmul.mubr.bf16.gmra.mrb[12].mxu0 %v2980_v23 }
  0x9a   :  { %1607 = vmatprep.mubr.bf16.mxu1 %v2981_v24  ;;  %1768 = vmatprep.mubr.bf16.mxu0 %v2983_v25  ;;  %v3074_v24 = vld [vmem:[%s4457_s0 + $0x300] ss:$20 sps:$4 sm:$0xff]   ;;  %v3075_v25 = vld [vmem:[%s4457_s0 + $0x128] ss:$20 sps:$4 sm:$0xff]  }
  0xa1   :  { %1608 = vmatmul.mubr.bf16.gmra.mrb[48].mxu1 %v2985_v26  ;;  %1769 = vmatmul.mubr.bf16.gmra.mrb[16].mxu0 %v2986_v27  ;;  %v3076_v27 = vld [vmem:[%s4457_s0 + $0x32c] ss:$20 sps:$4 sm:$0xff]  }
  0xa2   :  { %1615 = vmatprep.mubr.bf16.mxu1 %v2988_v28  ;;  %1776 = vmatprep.mubr.bf16.mxu0 %v2990_v29  ;;  %v3078_v28 = vld [vmem:[%s4457_s0 + $0x150] ss:$20 sps:$4 sm:$0xff]  }
  0xa9   :  { %1616 = vmatmul.mubr.bf16.gmra.mrb[52].mxu1 %v2992_v30  ;;  %1777 = vmatmul.mubr.bf16.gmra.mrb[20].mxu0 %v2993_v31 }
  0xaa   :  { %1623 = vmatprep.mubr.bf16.mxu1 %v2994_v32  ;;  %1784 = vmatprep.mubr.bf16.mxu0 %v2996_v33  ;;  %v3079_v32 = vld [vmem:[%s4457_s0 + $0x328] ss:$20 sps:$4 sm:$0xff]   ;;  %v3080_v33 = vld [vmem:[%s4457_s0 + $0x178] ss:$20 sps:$4 sm:$0xff]  }
  0xb1   :  { %1624 = vmatmul.mubr.bf16.gmra.mrb[56].mxu1 %v2998_v34  ;;  %1785 = vmatmul.mubr.bf16.gmra.mrb[24].mxu0 %v2999_v35  ;;  %v3081_v35 = vld [vmem:[%s4457_s0 + $0x354] ss:$20 sps:$4 sm:$0xff]  }
  0xb2   :  { %1631 = vmatprep.mubr.bf16.mxu1 %v3000_v36  ;;  %1792 = vmatprep.mubr.bf16.mxu0 %v3002_v37  ;;  %v3083_v36 = vld [vmem:[%s4457_s0 + $0x1a0] ss:$20 sps:$4 sm:$0xff]  }
  0xb9   :  { %1632 = vmatmul.mubr.bf16.gmra.mrb[60].mxu1 %v3004_v38  ;;  %1793 = vmatmul.mubr.bf16.gmra.mrb[28].mxu0 %v3005_v39 }
  0xba   :  { %1639 = vmatprep.mubr.bf16.mxu1 %v3006_v40  ;;  %1800 = vmatprep.mubr.bf16.mxu0 %v3008_v41  ;;  %v3084_v40 = vld [vmem:[%s4457_s0 + $0x350] ss:$20 sps:$4 sm:$0xff]   ;;  %v3085_v41 = vld [vmem:[%s4457_s0 + $0x1c8] ss:$20 sps:$4 sm:$0xff]  }
  0xc1   :  { %1640 = vmatmul.mubr.bf16.gmra.mrb[64].mxu1 %v3010_v42  ;;  %1801 = vmatmul.mubr.bf16.gmra.mrb[32].mxu0 %v3011_v43  ;;  %v3086_v43 = vld [vmem:[%s4457_s0 + $0x37c] ss:$20 sps:$4 sm:$0xff]  }
  0xc2   :  { %1647 = vmatprep.mubr.bf16.mxu1 %v3013_v44  ;;  %1808 = vmatprep.mubr.bf16.mxu0 %v3015_v45  ;;  %v3088_v44 = vld [vmem:[%s4457_s0 + $0x1f0] ss:$20 sps:$4 sm:$0xff]  }
  0xc9   :  { %1648 = vmatmul.mubr.bf16.gmra.mrb[68].mxu1 %v3017_v46  ;;  %1809 = vmatmul.mubr.bf16.gmra.mrb[36].mxu0 %v3018_v47 }
  0xca   :  { %1655 = vmatprep.mubr.bf16.mxu1 %v3019_v48  ;;  %1816 = vmatprep.mubr.bf16.mxu0 %v3021_v49  ;;  %v3089_v48 = vld [vmem:[%s4457_s0 + $0x378] ss:$20 sps:$4 sm:$0xff]  }
  0xcb   :  { %v3090_v49 = vld [vmem:[%s4457_s0 + $0x218] ss:$20 sps:$4 sm:$0xff]  }
  0xd1   :  { %1656 = vmatmul.mubr.bf16.gmra.mrb[72].mxu1 %v3023_v50  ;;  %1817 = vmatmul.mubr.bf16.gmra.mrb[40].mxu0 %v3024_v51  ;;  %v3091_v51 = vld [vmem:[%s4457_s0 + $0x3a4] ss:$20 sps:$4 sm:$0xff]  }
  0xd2   :  { %1663 = vmatprep.mubr.bf16.mxu1 %v3025_v52  ;;  %1824 = vmatprep.mubr.bf16.mxu0 %v3027_v53  ;;  %v3093_v52 = vld [vmem:[%s4457_s0 + $0x240] ss:$20 sps:$4 sm:$0xff]  }
  0xd9   :  { %1664 = vmatmul.mubr.bf16.gmra.mrb[76].mxu1 %v3029_v54  ;;  %1825 = vmatmul.mubr.bf16.gmra.mrb[44].mxu0 %v3030_v55 }
  0xda   :  { %1671 = vmatprep.mubr.bf16.mxu1 %v3031_v56  ;;  %1832 = vmatprep.mubr.bf16.mxu0 %v3033_v57  ;;  %v3094_v56 = vld [vmem:[%s4457_s0 + $0x3a0] ss:$20 sps:$4 sm:$0xff]   ;;  %v3095_v57 = vld [vmem:[%s4457_s0 + $0x268] ss:$20 sps:$4 sm:$0xff]  }
  0xe1   :  { %1672 = vmatmul.mubr.bf16.gmra.mrb[80].mxu1 %v3035_v58  ;;  %1833 = vmatmul.mubr.bf16.gmra.mrb[48].mxu0 %v3036_v59  ;;  %v3096_v59 = vld [vmem:[%s4457_s0 + $0x3cc] ss:$20 sps:$4 sm:$0xff]  }
  0xe2   :  { %1679 = vmatprep.mubr.bf16.mxu1 %v3038_v60  ;;  %1840 = vmatprep.mubr.bf16.mxu0 %v3040_v61  ;;  %v3098_v60 = vld [vmem:[%s4457_s0 + $0x290] ss:$20 sps:$4 sm:$0xff]  }
  0xe9   :  { %1680 = vmatmul.mubr.bf16.gmra.mrb[84].mxu1 %v3042_v62  ;;  %1841 = vmatmul.mubr.bf16.gmra.mrb[52].mxu0 %v3043_v63 }
  0xea   :  { %1687 = vmatprep.mubr.bf16.mxu1 %v3044_v1  ;;  %1848 = vmatprep.mubr.bf16.mxu0 %v3046_v2  ;;  %v3099_v1 = vld [vmem:[%s4457_s0 + $0x3c8] ss:$20 sps:$4 sm:$0xff]   ;;  %v3100_v2 = vld [vmem:[%s4457_s0 + $0x2b8] ss:$20 sps:$4 sm:$0xff]  }
  0xf1   :  { %1688 = vmatmul.mubr.bf16.gmra.mrb[88].mxu1 %v3048_v3  ;;  %1849 = vmatmul.mubr.bf16.gmra.mrb[56].mxu0 %v3049_v4  ;;  %v3101_v4 = vld [vmem:[%s4457_s0 + $0x3f4] ss:$20 sps:$4 sm:$0xff]  }
  0xf2   :  { %1695 = vmatprep.mubr.bf16.mxu1 %v3050_v5  ;;  %1856 = vmatprep.mubr.bf16.mxu0 %v3052_v6  ;;  %v3103_v5 = vld [vmem:[%s4457_s0 + $0x2e0] ss:$20 sps:$4 sm:$0xff]  }
  0xf9   :  { %1696 = vmatmul.mubr.bf16.gmra.mrb[92].mxu1 %v3054_v7  ;;  %1857 = vmatmul.mubr.bf16.gmra.mrb[60].mxu0 %v3055_v8 }
  0xfa   :  { %1864 = vmatprep.mubr.bf16.mxu0 %v3056_v9  ;;  %2632 = vmatprep.mubr.msk.bf16.mxu1 %vm1314_vm1, %v3058_v10  ;;  %v3104_v9 = vld [vmem:[%s4457_s0 + $0x3f0] ss:$20 sps:$4 sm:$0xff]   ;;  %v3105_v10 = vld [vmem:[%s4457_s0 + $0x308] ss:$20 sps:$4 sm:$0xff]  }
 0x101   :  { %1865 = vmatmul.mubr.bf16.gmra.mrb[64].mxu0 %v3059_v11  ;;  %2633 = vmatmul.mubr.msk.bf16.vlgmr.msra.gmra.mrb[96].mxu1 %vm1314_vm1, %v3060_v12  ;;  %v3106_v12 = vld [vmem:[%s4457_s0 + $0x41c] ss:$20 sps:$4 sm:$0xff]  }
 0x102   :  { %1872 = vmatprep.mubr.bf16.mxu0 %v3061_v13  ;;  %2636 = vmatprep.mubr.msk.bf16.mxu1 %vm1314_vm1, %v3063_v14  ;;  %v3108_v13 = vld [vmem:[%s4457_s0 + $0x330] ss:$20 sps:$4 sm:$0xff]  }
 0x109   :  { %1873 = vmatmul.mubr.bf16.gmra.mrb[68].mxu0 %v3064_v0  ;;  %2637 = vmatmul.mubr.msk.bf16.gmra.mrb[100].mxu1 %vm1314_vm1, %v3065_v15 }
 0x10a   :  { %1880 = vmatprep.mubr.bf16.mxu0 %v3066_v16  ;;  %2640 = vmatprep.mubr.msk.bf16.mxu1 %vm1314_vm1, %v3068_v17  ;;  %v3109_v16 = vld [vmem:[%s4457_s0 + $0x418] ss:$20 sps:$4 sm:$0xff]  }
 0x10b   :  { %v3110_v17 = vld [vmem:[%s4457_s0 + $0x358] ss:$20 sps:$4 sm:$0xff]  }
 0x111   :  { %1881 = vmatmul.mubr.bf16.gmra.mrb[72].mxu0 %v3069_v18  ;;  %2641 = vmatmul.mubr.msk.bf16.gmra.mrb[104].mxu1 %vm1314_vm1, %v3070_v19  ;;  %v3111_v19 = vld [vmem:[%s4457_s0 + $0x444] ss:$20 sps:$4 sm:$0xff]  }
 0x112   :  { %1888 = vmatprep.mubr.bf16.mxu0 %v3071_v20  ;;  %2644 = vmatprep.mubr.msk.bf16.mxu1 %vm1314_vm1, %v3073_v21  ;;  %v3113_v20 = vld [vmem:[%s4457_s0 + $0x380] ss:$20 sps:$4 sm:$0xff]  }
 0x114   :  { %v3656_v22 = vpop.f32.mrb[0].mxu1 }
 0x115   :  { %v1515_v23 = vpop.f32.mrb[1].mxu1 }
 0x116   :  { %v3664_v26 = vpop.f32.mrb[2].mxu1 }
 0x117   :  { %v1518_v29 = vpop.f32.mrb[3].mxu1 }
 0x118   :  { %v3115_v29 = vld [vmem:[%s4457_s0 + $0x3a8] ss:$20 sps:$4 sm:$0xff]  }
 0x119   :  { %1889 = vmatmul.mubr.bf16.gmra.mrb[76].mxu0 %v3074_v24  ;;  %2645 = vmatmul.mubr.msk.bf16.gmra.mrb[108].mxu1 %vm1314_vm1, %v3075_v25 }
 0x11a   :  { %1896 = vmatprep.mubr.bf16.mxu0 %v3076_v27  ;;  %2648 = vmatprep.mubr.msk.bf16.mxu1 %vm1314_vm1, %v3078_v28  ;;  %v3114_v28 = vld [vmem:[%s4457_s0 + $0x440] ss:$20 sps:$4 sm:$0xff]  }
 0x11c   :  { %v3674_v30 = vpop.f32.mrb[4].mxu1 }
 0x11d   :  { %v1523_v31 = vpop.f32.mrb[5].mxu1 }
 0x11e   :  { %v3682_v34 = vpop.f32.mrb[6].mxu1 }
 0x11f   :  { %v1526_v37 = vpop.f32.mrb[7].mxu1 }
 0x121   :  { %1897 = vmatmul.mubr.bf16.gmra.mrb[80].mxu0 %v3079_v32  ;;  %2649 = vmatmul.mubr.msk.bf16.gmra.mrb[112].mxu1 %vm1314_vm1, %v3080_v33  ;;  %v3116_v33 = vld [vmem:[%s4457_s0 + $0x46c] ss:$20 sps:$4 sm:$0xff]  }
 0x122   :  { %1904 = vmatprep.mubr.bf16.mxu0 %v3081_v35  ;;  %2652 = vmatprep.mubr.msk.bf16.mxu1 %vm1314_vm1, %v3083_v36  ;;  %v3118_v35 = vld [vmem:[%s4457_s0 + $0x3d0] ss:$20 sps:$4 sm:$0xff]  }
 0x124   :  { %v3692_v38 = vpop.f32.mrb[8].mxu1 }
 0x125   :  { %v1531_v39 = vpop.f32.mrb[9].mxu1 }
 0x126   :  { %v3700_v42 = vpop.f32.mrb[10].mxu1 }
 0x127   :  { %v1534_v45 = vpop.f32.mrb[11].mxu1 }
 0x128   :  { %v3120_v45 = vld [vmem:[%s4457_s0 + $0x3f8] ss:$20 sps:$4 sm:$0xff]  }
 0x129   :  { %1905 = vmatmul.mubr.bf16.gmra.mrb[84].mxu0 %v3084_v40  ;;  %2653 = vmatmul.mubr.msk.bf16.gmra.mrb[116].mxu1 %vm1314_vm1, %v3085_v41 }
 0x12a   :  { %1912 = vmatprep.mubr.bf16.mxu0 %v3086_v43  ;;  %2656 = vmatprep.mubr.msk.bf16.mxu1 %vm1314_vm1, %v3088_v44  ;;  %v3119_v44 = vld [vmem:[%s4457_s0 + $0x468] ss:$20 sps:$4 sm:$0xff]  }
 0x12c   :  { %v3710_v46 = vpop.f32.mrb[12].mxu1 }
 0x12d   :  { %v1539_v47 = vpop.f32.mrb[13].mxu1 }
 0x12e   :  { %v3718_v50 = vpop.f32.mrb[14].mxu1 }
 0x12f   :  { %v1542_v53 = vpop.f32.mrb[15].mxu1 }
 0x131   :  { %1913 = vmatmul.mubr.bf16.gmra.mrb[88].mxu0 %v3089_v48  ;;  %2657 = vmatmul.mubr.msk.bf16.gmra.mrb[120].mxu1 %vm1314_vm1, %v3090_v49  ;;  %v3121_v49 = vld [vmem:[%s4457_s0 + $0x494] ss:$20 sps:$4 sm:$0xff]  }
 0x132   :  { %1920 = vmatprep.mubr.bf16.mxu0 %v3091_v51  ;;  %2660 = vmatprep.mubr.msk.bf16.mxu1 %vm1314_vm1, %v3093_v52  ;;  %v3123_v51 = vld [vmem:[%s4457_s0 + $0x420] ss:$20 sps:$4 sm:$0xff]  }
 0x134   :  { %v3728_v54 = vpop.f32.mrb[16].mxu1 }
 0x135   :  { %v1547_v55 = vpop.f32.mrb[17].mxu1 }
 0x136   :  { %v3736_v58 = vpop.f32.mrb[18].mxu1 }
 0x137   :  { %v1550_v61 = vpop.f32.mrb[19].mxu1 }
 0x138   :  { %v3125_v61 = vld [vmem:[%s4457_s0 + $0x448] ss:$20 sps:$4 sm:$0xff]  }
 0x139   :  { %1921 = vmatmul.mubr.bf16.gmra.mrb[92].mxu0 %v3094_v56  ;;  %2661 = vmatmul.mubr.msk.bf16.gmra.mrb[124].mxu1 %vm1314_vm1, %v3095_v57 }
 0x13a   :  { %1928 = vmatprep.mubr.bf16.mxu0 %v3096_v59  ;;  %2664 = vmatprep.mubr.msk.bf16.mxu1 %vm1314_vm1, %v3098_v60  ;;  %v3124_v60 = vld [vmem:[%s4457_s0 + $0x490] ss:$20 sps:$4 sm:$0xff]  }
 0x13c   :  { %v3746_v62 = vpop.f32.mrb[20].mxu1 }
 0x13d   :  { %v1555_v63 = vpop.f32.mrb[21].mxu1 }
 0x13e   :  { %v3754_v3 = vpop.f32.mrb[22].mxu1 }
 0x13f   :  { %v1558_v6 = vpop.f32.mrb[23].mxu1 }
 0x141   :  { %1929 = vmatmul.mubr.bf16.gmra.mrb[96].mxu0 %v3099_v1  ;;  %2665 = vmatmul.mubr.msk.bf16.gmra.mrb[128].mxu1 %vm1314_vm1, %v3100_v2  ;;  %v3126_v2 = vld [vmem:[%s4457_s0 + $0x4bc] ss:$20 sps:$4 sm:$0xff]  }
 0x142   :  { %1936 = vmatprep.mubr.bf16.mxu0 %v3101_v4  ;;  %2668 = vmatprep.mubr.msk.bf16.mxu1 %vm1314_vm1, %v3103_v5  ;;  %v3128_v4 = vld [vmem:[%s4457_s0 + $0x470] ss:$20 sps:$4 sm:$0xff]  }
 0x144   :  { %v3764_v7 = vpop.f32.mrb[24].mxu1 }
 0x145   :  { %v1563_v8 = vpop.f32.mrb[25].mxu1 }
 0x146   :  { %v3772_v11 = vpop.f32.mrb[26].mxu1 }
 0x147   :  { %v1566_v14 = vpop.f32.mrb[27].mxu1 }
 0x148   :  { %v3130_v14 = vld [vmem:[%s4457_s0 + $0x498] ss:$20 sps:$4 sm:$0xff]  }
 0x149   :  { %1937 = vmatmul.mubr.bf16.gmra.mrb[100].mxu0 %v3104_v9  ;;  %2669 = vmatmul.mubr.msk.bf16.gmra.mrb[132].mxu1 %vm1314_vm1, %v3105_v10 }
 0x14a   :  { %1944 = vmatprep.mubr.bf16.mxu0 %v3106_v12  ;;  %2672 = vmatprep.mubr.msk.bf16.mxu1 %vm1314_vm1, %v3108_v13  ;;  %v3129_v13 = vld [vmem:[%s4457_s0 + $0x4b8] ss:$20 sps:$4 sm:$0xff]  }
 0x14c   :  { %v3782_v0 = vpop.f32.mrb[28].mxu1 }
 0x14d   :  { %v1571_v15 = vpop.f32.mrb[29].mxu1 }
 0x14e   :  { %v3790_v18 = vpop.f32.mrb[30].mxu1 }
 0x14f   :  { %v1574_v21 = vpop.f32.mrb[31].mxu1 }
 0x151   :  { %1945 = vmatmul.mubr.bf16.gmra.mrb[104].mxu0 %v3109_v16  ;;  %2673 = vmatmul.mubr.msk.bf16.gmra.mrb[136].mxu1 %vm1314_vm1, %v3110_v17  ;;  %v3131_v17 = vld [vmem:[%s4457_s0 + $0x4e4] ss:$20 sps:$4 sm:$0xff]  }
 0x152   :  { %1952 = vmatprep.mubr.bf16.mxu0 %v3111_v19  ;;  %2676 = vmatprep.mubr.msk.bf16.mxu1 %vm1314_vm1, %v3113_v20  ;;  %v3133_v19 = vld [vmem:[%s4457_s0 + $0x4c0] ss:$20 sps:$4 sm:$0xff]  }
 0x154   :  { %v3800_v23 = vpop.f32.mrb[32].mxu1  ;;  %v3802_v24 = vpop.f32.mrb[0].mxu0 }
 0x155   :  { %v1579_v25 = vpop.f32.mrb[33].mxu1  ;;  %v1740_v27 = vpop.f32.mrb[1].mxu0 }
 0x156   :  { %v3810_v31 = vpop.f32.mrb[34].mxu1  ;;  %v3812_v32 = vpop.f32.mrb[2].mxu0 }
 0x157   :  { %v1582_v36 = vpop.f32.mrb[35].mxu1  ;;  %v1743_v37 = vpop.f32.mrb[3].mxu0 }
 0x159   :  { %1953 = vmatmul.mubr.bf16.gmra.mrb[108].mxu0 %v3114_v28  ;;  %2677 = vmatmul.mubr.msk.bf16.gmra.mrb[140].mxu1 %vm1314_vm1, %v3115_v29 }
 0x15a   :  { %1960 = vmatprep.mubr.bf16.mxu0 %v3116_v33  ;;  %2680 = vmatprep.mubr.msk.bf16.mxu1 %vm1314_vm1, %v3118_v35  ;;  %v3134_v33 = vld [vmem:[%s4457_s0 + $0x4e0] ss:$20 sps:$4 sm:$0xff]   ;;  %v3135_v35 = vld [vmem:[%s4457_s0 + $0x4e8] ss:$20 sps:$4 sm:$0xff]  }
 0x15c   :  { %v3822_v39 = vpop.f32.mrb[36].mxu1  ;;  %v3824_v40 = vpop.f32.mrb[4].mxu0 }
 0x15d   :  { %v1587_v41 = vpop.f32.mrb[37].mxu1  ;;  %v1748_v43 = vpop.f32.mrb[5].mxu0 }
 0x15e   :  { %v3832_v47 = vpop.f32.mrb[38].mxu1  ;;  %v3834_v48 = vpop.f32.mrb[6].mxu0 }
 0x15f   :  { %v1590_v52 = vpop.f32.mrb[39].mxu1  ;;  %v1751_v53 = vpop.f32.mrb[7].mxu0 }
 0x161   :  { %1961 = vmatmul.mubr.bf16.gmra.mrb[112].mxu0 %v3119_v44  ;;  %2681 = vmatmul.mubr.msk.bf16.gmra.mrb[144].mxu1 %vm1314_vm1, %v3120_v45 }
 0x162   :  { %1968 = vmatprep.mubr.bf16.mxu0 %v3121_v49  ;;  %2684 = vmatprep.mubr.msk.bf16.mxu1 %vm1314_vm1, %v3123_v51 }
 0x164   :  { %v3844_v55 = vpop.f32.mrb[40].mxu1  ;;  %v3846_v56 = vpop.f32.mrb[8].mxu0 }
 0x165   :  { %v1595_v57 = vpop.f32.mrb[41].mxu1  ;;  %v1756_v59 = vpop.f32.mrb[9].mxu0 }
 0x166   :  { %v3854_v63 = vpop.f32.mrb[42].mxu1  ;;  %v3856_v1 = vpop.f32.mrb[10].mxu0 }
 0x167   :  { %v1598_v5 = vpop.f32.mrb[43].mxu1  ;;  %v1759_v6 = vpop.f32.mrb[11].mxu0 }
 0x169   :  { %1969 = vmatmul.mubr.bf16.gmra.mrb[116].mxu0 %v3124_v60  ;;  %2685 = vmatmul.mubr.msk.bf16.gmra.mrb[148].mxu1 %vm1314_vm1, %v3125_v61 }
 0x16a   :  { %1976 = vmatprep.mubr.bf16.mxu0 %v3126_v2  ;;  %2688 = vmatprep.mubr.msk.bf16.mxu1 %vm1314_vm1, %v3128_v4 }
 0x16c   :  { %v3866_v8 = vpop.f32.mrb[44].mxu1  ;;  %v3868_v9 = vpop.f32.mrb[12].mxu0 }
 0x16d   :  { %v1603_v10 = vpop.f32.mrb[45].mxu1  ;;  %v1764_v12 = vpop.f32.mrb[13].mxu0 }
 0x16e   :  { %v3876_v15 = vpop.f32.mrb[46].mxu1  ;;  %v3878_v16 = vpop.f32.mrb[14].mxu0 }
 0x16f   :  { %v1606_v20 = vpop.f32.mrb[47].mxu1  ;;  %v1767_v21 = vpop.f32.mrb[15].mxu0 }
 0x171   :  { %1977 = vmatmul.mubr.bf16.gmra.mrb[120].mxu0 %v3129_v13  ;;  %2689 = vmatmul.mubr.msk.bf16.gmra.mrb[152].mxu1 %vm1314_vm1, %v3130_v14 }
 0x172   :  { %1984 = vmatprep.mubr.bf16.mxu0 %v3131_v17  ;;  %2692 = vmatprep.mubr.msk.bf16.mxu1 %vm1314_vm1, %v3133_v19 }
 0x174   :  { %v3888_v25 = vpop.f32.mrb[48].mxu1  ;;  %v3890_v27 = vpop.f32.mrb[16].mxu0 }
 0x175   :  { %v1611_v28 = vpop.f32.mrb[49].mxu1  ;;  %v1772_v29 = vpop.f32.mrb[17].mxu0 }
 0x176   :  { %v3898_v36 = vpop.f32.mrb[50].mxu1  ;;  %v3900_v37 = vpop.f32.mrb[18].mxu0 }
 0x177   :  { %v1614_v41 = vpop.f32.mrb[51].mxu1  ;;  %v1775_v43 = vpop.f32.mrb[19].mxu0 }
 0x179   :  { %1985 = vmatmul.mubr.bf16.gmra.mrb[124].mxu0 %v3134_v33  ;;  %2693 = vmatmul.mubr.msk.bf16.gmra.mrb[156].mxu1 %vm1314_vm1, %v3135_v35  ;;  %v3930_v33 = vld [vmem:[%s4458_s2] ss:$0 sm:$0xff] }
 0x17a   :  { %v1514_v35 = vadd.f32 %v3930_v33, %v3656_v22  ;;  %v1522_v22 = vadd.f32 %v3930_v33, %v3674_v30  ;;  %v1530_v30 = vadd.f32 %v3930_v33, %v3692_v38  ;;  %v1538_v38 = vadd.f32 %v3930_v33, %v3710_v46 }
 0x17b   :  { %v1546_v46 = vadd.f32 %v3930_v33, %v3728_v54  ;;  %v1554_v54 = vadd.f32 %v3930_v33, %v3746_v62  ;;  %v1562_v62 = vadd.f32 %v3930_v33, %v3764_v7  ;;  %v1570_v7 = vadd.f32 %v3930_v33, %v3782_v0 }
 0x17c   :  { %v3903_v44 = vpop.f32.mrb[52].mxu1  ;;  %v3905_v45 = vpop.f32.mrb[20].mxu0  ;;  %v1578_v0 = vadd.f32 %v3930_v33, %v3800_v23 }
 0x17d   :  { %v1619_v49 = vpop.f32.mrb[53].mxu1  ;;  %v1780_v51 = vpop.f32.mrb[21].mxu0 }
 0x17e   :  { %v3907_v52 = vpop.f32.mrb[54].mxu1  ;;  %v3909_v53 = vpop.f32.mrb[22].mxu0  ;;  %v1517_v49 = vadd.f32 %v3930_v33, %v3664_v26  ;;  %v1525_v26 = vadd.f32 %v3930_v33, %v3682_v34  ;;  %v1533_v34 = vadd.f32 %v3930_v33, %v3700_v42  ;;  %v1541_v42 = vadd.f32 %v3930_v33, %v3718_v50 }
 0x17f   :  { %v1622_v57 = vpop.f32.mrb[55].mxu1  ;;  %v1783_v59 = vpop.f32.mrb[23].mxu0  ;;  %v1549_v50 = vadd.f32 %v3930_v33, %v3736_v58  ;;  %v1557_v58 = vadd.f32 %v3930_v33, %v3754_v3  ;;  %v1565_v3 = vadd.f32 %v3930_v33, %v3772_v11  ;;  %v1573_v11 = vadd.f32 %v3930_v33, %v3790_v18 }
 0x180   :  { %v2728_v18 = vadd.f32 %v3930_v33, %v3802_v24 }
 0x184   :  { %v3911_v60 = vpop.f32.mrb[56].mxu1  ;;  %v3913_v61 = vpop.f32.mrb[24].mxu0 }
 0x185   :  { %v1627_v2 = vpop.f32.mrb[57].mxu1  ;;  %v1788_v4 = vpop.f32.mrb[25].mxu0 }
 0x186   :  { %v3915_v5 = vpop.f32.mrb[58].mxu1  ;;  %v3917_v6 = vpop.f32.mrb[26].mxu0 }
 0x187   :  { %v1630_v10 = vpop.f32.mrb[59].mxu1  ;;  %v1791_v12 = vpop.f32.mrb[27].mxu0 }
 0x18c   :  { %v3919_v13 = vpop.f32.mrb[60].mxu1  ;;  %v3921_v14 = vpop.f32.mrb[28].mxu0 }
 0x18d   :  { %v1635_v17 = vpop.f32.mrb[61].mxu1  ;;  %v1796_v19 = vpop.f32.mrb[29].mxu0 }
 0x18e   :  { %v3923_v20 = vpop.f32.mrb[62].mxu1  ;;  %v3925_v21 = vpop.f32.mrb[30].mxu0 }
 0x18f   :  { %v1638_v28 = vpop.f32.mrb[63].mxu1  ;;  %v1799_v29 = vpop.f32.mrb[31].mxu0 }
 0x194   :  { %v3934_v41 = vpop.f32.mrb[64].mxu1  ;;  %v1802_v43 = vpop.f32.mrb[32].mxu0 }
 0x195   :  { %v3938_v51 = vadd.f32 %v1802_v43, %v1514_v35  ;;  %v1643_v57 = vpop.f32.mrb[65].mxu1  ;;  %v1804_v59 = vpop.f32.mrb[33].mxu0 }
 0x196   :  { %v3940_v2 = vpop.f32.mrb[66].mxu1  ;;  %v1805_v4 = vpop.f32.mrb[34].mxu0 }
 0x197   :  { %v3942_v10 = vadd.f32 %v1805_v4, %v1517_v49  ;;  %v1646_v12 = vpop.f32.mrb[67].mxu1  ;;  %v1807_v17 = vpop.f32.mrb[35].mxu0 }
 0x19c   :  { %v3946_v19 = vpop.f32.mrb[68].mxu1  ;;  %v1810_v28 = vpop.f32.mrb[36].mxu0 }
 0x19d   :  { %4460 = vst [vmem:[#allocation2_spill] sm:$0xff] %v3946_v19  ;;  %v3950_v29 = vadd.f32 %v1810_v28, %v1522_v22  ;;  %v1651_v35 = vpop.f32.mrb[69].mxu1  ;;  %v1812_v43 = vpop.f32.mrb[37].mxu0 }
 0x19e   :  { %v3952_v57 = vpop.f32.mrb[70].mxu1  ;;  %v1813_v59 = vpop.f32.mrb[38].mxu0 }
 0x19f   :  { %4461 = vst [vmem:[#allocation3_spill] sm:$0xff] %v3952_v57  ;;  %v3954_v49 = vadd.f32 %v1813_v59, %v1525_v26  ;;  %v1654_v4 = vpop.f32.mrb[71].mxu1  ;;  %v1815_v12 = vpop.f32.mrb[39].mxu0 }
 0x1a4   :  { %v3958_v17 = vpop.f32.mrb[72].mxu1  ;;  %v1818_v19 = vpop.f32.mrb[40].mxu0 }
 0x1a5   :  { %4462 = vst [vmem:[#allocation4_spill] sm:$0xff] %v3958_v17  ;;  %v3962_v22 = vadd.f32 %v1818_v19, %v1530_v30  ;;  %v1659_v28 = vpop.f32.mrb[73].mxu1  ;;  %v1820_v35 = vpop.f32.mrb[41].mxu0 }
 0x1a6   :  { %v3964_v43 = vpop.f32.mrb[74].mxu1  ;;  %v1821_v57 = vpop.f32.mrb[42].mxu0 }
 0x1a7   :  { %4463 = vst [vmem:[#allocation5_spill] sm:$0xff] %v3964_v43  ;;  %v3966_v26 = vadd.f32 %v1821_v57, %v1533_v34  ;;  %v1662_v59 = vpop.f32.mrb[75].mxu1  ;;  %v1823_v4 = vpop.f32.mrb[43].mxu0 }
 0x1ac   :  { %v3970_v12 = vpop.f32.mrb[76].mxu1  ;;  %v1826_v17 = vpop.f32.mrb[44].mxu0 }
 0x1ad   :  { %4464 = vst [vmem:[#allocation6_spill] sm:$0xff] %v3970_v12  ;;  %v3974_v19 = vadd.f32 %v1826_v17, %v1538_v38  ;;  %v1667_v30 = vpop.f32.mrb[77].mxu1  ;;  %v1828_v28 = vpop.f32.mrb[45].mxu0 }
 0x1ae   :  { %v3976_v35 = vpop.f32.mrb[78].mxu1  ;;  %v1829_v43 = vpop.f32.mrb[46].mxu0 }
 0x1af   :  { %4465 = vst [vmem:[#allocation7_spill] sm:$0xff] %v3976_v35  ;;  %v3978_v57 = vadd.f32 %v1829_v43, %v1541_v42  ;;  %v1670_v34 = vpop.f32.mrb[79].mxu1  ;;  %v1831_v59 = vpop.f32.mrb[47].mxu0 }
 0x1b4   :  { %v3982_v4 = vpop.f32.mrb[80].mxu1  ;;  %v1834_v12 = vpop.f32.mrb[48].mxu0 }
 0x1b5   :  { %4466 = vst [vmem:[#allocation8_spill] sm:$0xff] %v3982_v4  ;;  %v3986_v17 = vadd.f32 %v1834_v12, %v1546_v46  ;;  %v1675_v38 = vpop.f32.mrb[81].mxu1  ;;  %v1836_v30 = vpop.f32.mrb[49].mxu0 }
 0x1b6   :  { %v3988_v28 = vpop.f32.mrb[82].mxu1  ;;  %v1837_v35 = vpop.f32.mrb[50].mxu0 }
 0x1b7   :  { %4467 = vst [vmem:[#allocation9_spill] sm:$0xff] %v3988_v28  ;;  %v3990_v43 = vadd.f32 %v1837_v35, %v1549_v50  ;;  %v1678_v42 = vpop.f32.mrb[83].mxu1  ;;  %v1839_v34 = vpop.f32.mrb[51].mxu0 }
 0x1bc   :  { %v3994_v59 = vpop.f32.mrb[84].mxu1  ;;  %v1842_v4 = vpop.f32.mrb[52].mxu0 }
 0x1bd   :  { %4468 = vst [vmem:[#allocation10_spill] sm:$0xff] %v3994_v59  ;;  %v3998_v12 = vadd.f32 %v1842_v4, %v1554_v54  ;;  %v1683_v46 = vpop.f32.mrb[85].mxu1  ;;  %v1844_v38 = vpop.f32.mrb[53].mxu0 }
 0x1be   :  { %v4000_v30 = vpop.f32.mrb[86].mxu1  ;;  %v1845_v28 = vpop.f32.mrb[54].mxu0 }
 0x1bf   :  { %4469 = vst [vmem:[#allocation11_spill] sm:$0xff] %v4000_v30  ;;  %v4002_v35 = vadd.f32 %v1845_v28, %v1557_v58  ;;  %v1686_v50 = vpop.f32.mrb[87].mxu1  ;;  %v1847_v42 = vpop.f32.mrb[55].mxu0 }
 0x1c4   :  { %v4006_v34 = vpop.f32.mrb[88].mxu1  ;;  %v1850_v59 = vpop.f32.mrb[56].mxu0 }
 0x1c5   :  { %4470 = vst [vmem:[#allocation12_spill] sm:$0xff] %v4006_v34  ;;  %v4010_v4 = vadd.f32 %v1850_v59, %v1562_v62  ;;  %v1691_v54 = vpop.f32.mrb[89].mxu1  ;;  %v1852_v46 = vpop.f32.mrb[57].mxu0 }
 0x1c6   :  { %v4012_v38 = vpop.f32.mrb[90].mxu1  ;;  %v1853_v30 = vpop.f32.mrb[58].mxu0 }
 0x1c7   :  { %4471 = vst [vmem:[#allocation13_spill] sm:$0xff] %v4012_v38  ;;  %v4014_v28 = vadd.f32 %v1853_v30, %v1565_v3  ;;  %v1694_v58 = vpop.f32.mrb[91].mxu1  ;;  %v1855_v50 = vpop.f32.mrb[59].mxu0 }
 0x1c8   :  { %v2730_v50 = vadd.f32 %v3930_v33, %v3824_v40  ;;  %v2729_v40 = vadd.f32 %v3930_v33, %v3812_v32  ;;  %v1586_v32 = vadd.f32 %v3930_v33, %v3822_v39  ;;  %v2733_v39 = vadd.f32 %v3930_v33, %v3856_v1 }
 0x1c9   :  { %v1594_v1 = vadd.f32 %v3930_v33, %v3844_v55  ;;  %v2737_v55 = vadd.f32 %v3930_v33, %v3900_v37  ;;  %v1602_v37 = vadd.f32 %v3930_v33, %v3866_v8  ;;  %v2741_v8 = vadd.f32 %v3930_v33, %v3917_v6 }
 0x1ca   :  { %v1610_v6 = vadd.f32 %v3930_v33, %v3888_v25 }
 0x1cc   :  { %v4018_v42 = vpop.f32.mrb[92].mxu1  ;;  %v1858_v34 = vpop.f32.mrb[60].mxu0 }
 0x1cd   :  { %4472 = vst [vmem:[#allocation14_spill] sm:$0xff] %v4018_v42  ;;  %v4022_v59 = vadd.f32 %v1858_v34, %v1570_v7  ;;  %v1699_v62 = vpop.f32.mrb[93].mxu1  ;;  %v1860_v54 = vpop.f32.mrb[61].mxu0 }
 0x1ce   :  { %v4024_v46 = vpop.f32.mrb[94].mxu1  ;;  %v1861_v38 = vpop.f32.mrb[62].mxu0  ;;  %v1581_v62 = vadd.f32 %v3930_v33, %v3810_v31 }
 0x1cf   :  { %4473 = vst [vmem:[#allocation15_spill] sm:$0xff] %v4024_v46  ;;  %v4026_v30 = vadd.f32 %v1861_v38, %v1573_v11  ;;  %v1702_v3 = vpop.f32.mrb[95].mxu1  ;;  %v1863_v58 = vpop.f32.mrb[63].mxu0  ;;  %v2731_v38 = vadd.f32 %v3930_v33, %v3834_v48 }
 0x1d4   :  { %v1866_v34 = vpop.f32.mrb[64].mxu0  ;;  %v2634_v7 = vpop.f32.mrb[96].mxu1 }
 0x1d5   :  { %v4038_v11 = vadd.f32 %v1866_v34, %v1578_v0  ;;  %v2036_v54 = vadd.f32 %v2730_v50, %v2634_v7  ;;  %v1868_v3 = vpop.f32.mrb[65].mxu0  ;;  %v2027_v23 = vpop.f32.mrb[97].mxu1 }
 0x1d6   :  { %v2028_v58 = vadd.f32 %v2728_v18, %v2027_v23  ;;  %v1869_v46 = vpop.f32.mrb[66].mxu0  ;;  %v2635_v24 = vpop.f32.mrb[98].mxu1  ;;  %v2732_v18 = vadd.f32 %v3930_v33, %v3846_v56 }
 0x1d7   :  { %2285 = vst.msk [vmem:[%s4459_s3 + $0x10] sm:$0xff] %vm2282_vm2, %v2036_v54  ;;  %v4046_v31 = vadd.f32 %v1869_v46, %v1581_v62  ;;  %v2039_v42 = vadd.f32 %v2731_v38, %v2635_v24  ;;  %v1871_v48 = vpop.f32.mrb[67].mxu0  ;;  %v2030_v0 = vpop.f32.mrb[99].mxu1  ;;  %v2734_v46 = vadd.f32 %v3930_v33, %v3868_v9  ;;  %v1589_v62 = vadd.f32 %v3930_v33, %v3832_v47 }
 0x1d8   :  { %2283 = vst.msk [vmem:[%s4459_s3] sm:$0xff] %vm2282_vm2, %v2028_v58  ;;  %v2031_v50 = vadd.f32 %v2729_v40, %v2030_v0  ;;  %v2738_v0 = vadd.f32 %v3930_v33, %v3905_v45 }
 0x1d9   :  { %2286 = vst.msk [vmem:[%s4459_s3 + $0x18] sm:$0xff] %vm2282_vm2, %v2039_v42  ;;  %v2735_v42 = vadd.f32 %v3930_v33, %v3878_v16 }
 0x1da   :  { %2284 = vst.msk [vmem:[%s4459_s3 + $0x8] sm:$0xff] %vm2282_vm2, %v2031_v50  ;;  %v2736_v50 = vadd.f32 %v3930_v33, %v3890_v27 }
 0x1dc   :  { %v1874_v34 = vpop.f32.mrb[68].mxu0  ;;  %v2638_v7 = vpop.f32.mrb[100].mxu1 }
 0x1dd   :  { %v4070_v38 = vadd.f32 %v1874_v34, %v1586_v32  ;;  %v2052_v54 = vadd.f32 %v2734_v46, %v2638_v7  ;;  %v1876_v3 = vpop.f32.mrb[69].mxu0  ;;  %v2043_v23 = vpop.f32.mrb[101].mxu1  ;;  %v2739_v34 = vadd.f32 %v3930_v33, %v3909_v53 }
 0x1de   :  { %v2044_v9 = vadd.f32 %v2732_v18, %v2043_v23  ;;  %v1877_v40 = vpop.f32.mrb[70].mxu0  ;;  %v2639_v58 = vpop.f32.mrb[102].mxu1  ;;  %v1597_v18 = vadd.f32 %v3930_v33, %v3854_v63 }
 0x1df   :  { %2289 = vst.msk [vmem:[%s4459_s3 + $0x30] sm:$0xff] %vm2282_vm2, %v2052_v54  ;;  %v4078_v47 = vadd.f32 %v1877_v40, %v1589_v62  ;;  %v2055_v56 = vadd.f32 %v2735_v42, %v2639_v58  ;;  %v1879_v16 = vpop.f32.mrb[71].mxu0  ;;  %v2046_v24 = vpop.f32.mrb[103].mxu1  ;;  %v2742_v40 = vadd.f32 %v3930_v33, %v3921_v14  ;;  %v2740_v58 = vadd.f32 %v3930_v33, %v3913_v61 }
 0x1e0   :  { %2287 = vst.msk [vmem:[%s4459_s3 + $0x20] sm:$0xff] %vm2282_vm2, %v2044_v9  ;;  %v2047_v48 = vadd.f32 %v2733_v39, %v2046_v24  ;;  %v1605_v24 = vadd.f32 %v3930_v33, %v3876_v15 }
 0x1e1   :  { %2290 = vst.msk [vmem:[%s4459_s3 + $0x38] sm:$0xff] %vm2282_vm2, %v2055_v56 }
 0x1e2   :  { %2288 = vst.msk [vmem:[%s4459_s3 + $0x28] sm:$0xff] %vm2282_vm2, %v2047_v48  ;;  %v2743_v48 = vadd.f32 %v3930_v33, %v3925_v21 }
 0x1e4   :  { %v1882_v32 = vpop.f32.mrb[72].mxu0  ;;  %v2642_v46 = vpop.f32.mrb[104].mxu1 }
 0x1e5   :  { %v4102_v7 = vadd.f32 %v1882_v32, %v1594_v1  ;;  %v2068_v62 = vadd.f32 %v2738_v0, %v2642_v46  ;;  %v1884_v42 = vpop.f32.mrb[73].mxu0  ;;  %v2059_v54 = vpop.f32.mrb[105].mxu1 }
 0x1e6   :  { %v2060_v45 = vadd.f32 %v2736_v50, %v2059_v54  ;;  %v1885_v3 = vpop.f32.mrb[74].mxu0  ;;  %v2643_v23 = vpop.f32.mrb[106].mxu1 }
 0x1e7   :  { %2293 = vst.msk [vmem:[%s4459_s3 + $0x50] sm:$0xff] %vm2282_vm2, %v2068_v62  ;;  %v4110_v63 = vadd.f32 %v1885_v3, %v1597_v18  ;;  %v2071_v27 = vadd.f32 %v2739_v34, %v2643_v23  ;;  %v1887_v53 = vpop.f32.mrb[75].mxu0  ;;  %v2062_v39 = vpop.f32.mrb[107].mxu1 }
 0x1e8   :  { %2291 = vst.msk [vmem:[%s4459_s3 + $0x40] sm:$0xff] %vm2282_vm2, %v2060_v45  ;;  %v2063_v9 = vadd.f32 %v2737_v55, %v2062_v39  ;;  %v1613_v55 = vadd.f32 %v3930_v33, %v3898_v36 }
 0x1e9   :  { %2294 = vst.msk [vmem:[%s4459_s3 + $0x58] sm:$0xff] %vm2282_vm2, %v2071_v27 }
 0x1ea   :  { %2292 = vst.msk [vmem:[%s4459_s3 + $0x48] sm:$0xff] %vm2282_vm2, %v2063_v9 }
 0x1ec   :  { %v1890_v56 = vpop.f32.mrb[76].mxu0  ;;  %v2646_v16 = vpop.f32.mrb[108].mxu1 }
 0x1ed   :  { %v4134_v1 = vadd.f32 %v1890_v56, %v1602_v37  ;;  %v2084_v0 = vadd.f32 %v2742_v40, %v2646_v16  ;;  %v1892_v50 = vpop.f32.mrb[77].mxu0  ;;  %v2075_v32 = vpop.f32.mrb[109].mxu1  ;;  %v1621_v56 = vadd.f32 %v3930_v33, %v3907_v52 }
 0x1ee   :  { %v2076_v14 = vadd.f32 %v2740_v58, %v2075_v32  ;;  %v1893_v46 = vpop.f32.mrb[78].mxu0  ;;  %v2647_v18 = vpop.f32.mrb[110].mxu1 }
 0x1ef   :  { %2297 = vst.msk [vmem:[%s4459_s3 + $0x70] sm:$0xff] %vm2282_vm2, %v2084_v0  ;;  %v4142_v15 = vadd.f32 %v1893_v46, %v1605_v24  ;;  %v2087_v61 = vadd.f32 %v2743_v48, %v2647_v18  ;;  %v1895_v21 = vpop.f32.mrb[79].mxu0  ;;  %v2078_v34 = vpop.f32.mrb[111].mxu1  ;;  %v1629_v18 = vadd.f32 %v3930_v33, %v3915_v5 }
 0x1f0   :  { %2295 = vst.msk [vmem:[%s4459_s3 + $0x60] sm:$0xff] %vm2282_vm2, %v2076_v14  ;;  %v2079_v62 = vadd.f32 %v2741_v8, %v2078_v34 }
 0x1f1   :  { %2298 = vst.msk [vmem:[%s4459_s3 + $0x78] sm:$0xff] %vm2282_vm2, %v2087_v61 }
 0x1f2   :  { %2296 = vst.msk [vmem:[%s4459_s3 + $0x68] sm:$0xff] %vm2282_vm2, %v2079_v62 }
 0x1f4   :  { %v1898_v42 = vpop.f32.mrb[80].mxu0  ;;  %v2650_v54 = vpop.f32.mrb[112].mxu1 }
 0x1f5   :  { %v4160_v45 = vadd.f32 %v1898_v42, %v1610_v6  ;;  %v2100_v3 = vadd.f32 %v2650_v54, %v3950_v29  ;;  %v1900_v23 = vpop.f32.mrb[81].mxu0  ;;  %v2091_v27 = vpop.f32.mrb[113].mxu1  ;;  %v1618_v29 = vadd.f32 %v3930_v33, %v3903_v44 }
 0x1f6   :  { %v2092_v53 = vadd.f32 %v2091_v27, %v3938_v51  ;;  %v1901_v39 = vpop.f32.mrb[82].mxu0  ;;  %v2651_v9 = vpop.f32.mrb[114].mxu1  ;;  %v1637_v23 = vadd.f32 %v3930_v33, %v3923_v20 }
 0x1f7   :  { %2301 = vst.msk [vmem:[%s4459_s3 + $0x90] sm:$0xff] %vm2282_vm2, %v2100_v3  ;;  %v4168_v25 = vadd.f32 %v1901_v39, %v1613_v55  ;;  %v2103_v37 = vadd.f32 %v2651_v9, %v3954_v49  ;;  %v1903_v36 = vpop.f32.mrb[83].mxu0  ;;  %v2094_v40 = vpop.f32.mrb[115].mxu1 }
 0x1f8   :  { %2299 = vst.msk [vmem:[%s4459_s3 + $0x80] sm:$0xff] %vm2282_vm2, %v2092_v53  ;;  %v2095_v51 = vadd.f32 %v2094_v40, %v3942_v10 }
 0x1f9   :  { %2302 = vst.msk [vmem:[%s4459_s3 + $0x98] sm:$0xff] %vm2282_vm2, %v2103_v37 }
 0x1fa   :  { %2300 = vst.msk [vmem:[%s4459_s3 + $0x88] sm:$0xff] %vm2282_vm2, %v2095_v51 }
 0x1fc   :  { %v1906_v49 = vpop.f32.mrb[84].mxu0  ;;  %v2654_v58 = vpop.f32.mrb[116].mxu1 }
 0x1fd   :  { %v4188_v16 = vadd.f32 %v1906_v49, %v1618_v29  ;;  %v2116_v10 = vadd.f32 %v2654_v58, %v3974_v19  ;;  %v1908_v24 = vpop.f32.mrb[85].mxu0  ;;  %v2107_v48 = vpop.f32.mrb[117].mxu1  ;;  %v1626_v19 = vadd.f32 %v3930_v33, %v3911_v60  ;;  %v1645_v49 = vadd.f32 %v3930_v33, %v3940_v2 }
 0x1fe   :  { %v2108_v0 = vadd.f32 %v2107_v48, %v3962_v22  ;;  %v1909_v50 = vpop.f32.mrb[86].mxu0  ;;  %v2655_v32 = vpop.f32.mrb[118].mxu1 }
 0x1ff   :  { %2305 = vst.msk [vmem:[%s4459_s3 + $0xb0] sm:$0xff] %vm2282_vm2, %v2116_v10  ;;  %v4196_v44 = vadd.f32 %v1909_v50, %v1621_v56  ;;  %v2119_v8 = vadd.f32 %v2655_v32, %v3978_v57  ;;  %v1911_v52 = vpop.f32.mrb[87].mxu0  ;;  %v2110_v14 = vpop.f32.mrb[119].mxu1 }
 0x200   :  { %2303 = vst.msk [vmem:[%s4459_s3 + $0xa0] sm:$0xff] %vm2282_vm2, %v2108_v0  ;;  %v2111_v22 = vadd.f32 %v2110_v14, %v3966_v26  ;;  %v4475_v14 = vld [vmem:[#allocation3_spill] sm:$0xff] }
 0x201   :  { %2306 = vst.msk [vmem:[%s4459_s3 + $0xb8] sm:$0xff] %vm2282_vm2, %v2119_v8 }
 0x202   :  { %2304 = vst.msk [vmem:[%s4459_s3 + $0xa8] sm:$0xff] %vm2282_vm2, %v2111_v22  ;;  %v1653_v22 = vadd.f32 %v3930_v33, %v4475_v14 }
 0x204   :  { %v1914_v57 = vpop.f32.mrb[88].mxu0  ;;  %v2658_v46 = vpop.f32.mrb[120].mxu1 }
 0x205   :  { %v4216_v61 = vadd.f32 %v1914_v57, %v1626_v19  ;;  %v2132_v26 = vadd.f32 %v2658_v46, %v3998_v12  ;;  %v1916_v21 = vpop.f32.mrb[89].mxu0  ;;  %v2123_v34 = vpop.f32.mrb[121].mxu1  ;;  %v1634_v12 = vadd.f32 %v3930_v33, %v3919_v13 }
 0x206   :  { %v2124_v62 = vadd.f32 %v2123_v34, %v3986_v17  ;;  %v1917_v6 = vpop.f32.mrb[90].mxu0  ;;  %v2659_v42 = vpop.f32.mrb[122].mxu1 }
 0x207   :  { %2309 = vst.msk [vmem:[%s4459_s3 + $0xd0] sm:$0xff] %vm2282_vm2, %v2132_v26  ;;  %v4224_v60 = vadd.f32 %v1917_v6, %v1629_v18  ;;  %v2135_v54 = vadd.f32 %v2659_v42, %v4002_v35  ;;  %v1919_v5 = vpop.f32.mrb[91].mxu0  ;;  %v2126_v55 = vpop.f32.mrb[123].mxu1 }
 0x208   :  { %2307 = vst.msk [vmem:[%s4459_s3 + $0xc0] sm:$0xff] %vm2282_vm2, %v2124_v62  ;;  %v2127_v17 = vadd.f32 %v2126_v55, %v3990_v43  ;;  %v4477_v55 = vld [vmem:[#allocation5_spill] sm:$0xff] }
 0x209   :  { %2310 = vst.msk [vmem:[%s4459_s3 + $0xd8] sm:$0xff] %vm2282_vm2, %v2135_v54 }
 0x20a   :  { %2308 = vst.msk [vmem:[%s4459_s3 + $0xc8] sm:$0xff] %vm2282_vm2, %v2127_v17  ;;  %v1661_v17 = vadd.f32 %v3930_v33, %v4477_v55 }
 0x20c   :  { %v1922_v35 = vpop.f32.mrb[92].mxu0  ;;  %v2662_v3 = vpop.f32.mrb[124].mxu1 }
 0x20d   :  { %v4244_v27 = vadd.f32 %v1922_v35, %v1634_v12  ;;  %v2148_v43 = vadd.f32 %v2662_v3, %v4022_v59  ;;  %v1924_v53 = vpop.f32.mrb[93].mxu0  ;;  %v2139_v39 = vpop.f32.mrb[125].mxu1  ;;  %v1642_v59 = vadd.f32 %v3930_v33, %v3934_v41 }
 0x20e   :  { %v2140_v9 = vadd.f32 %v2139_v39, %v4010_v4  ;;  %v1925_v37 = vpop.f32.mrb[94].mxu0  ;;  %v2663_v36 = vpop.f32.mrb[126].mxu1 }
 0x20f   :  { %2313 = vst.msk [vmem:[%s4459_s3 + $0xf0] sm:$0xff] %vm2282_vm2, %v2148_v43  ;;  %v4252_v13 = vadd.f32 %v1925_v37, %v1637_v23  ;;  %v2151_v40 = vadd.f32 %v2663_v36, %v4026_v30  ;;  %v1927_v20 = vpop.f32.mrb[95].mxu0  ;;  %v2142_v51 = vpop.f32.mrb[127].mxu1 }
 0x210   :  { %2311 = vst.msk [vmem:[%s4459_s3 + $0xe0] sm:$0xff] %vm2282_vm2, %v2140_v9  ;;  %v2143_v4 = vadd.f32 %v2142_v51, %v4014_v28  ;;  %v4479_v51 = vld [vmem:[#allocation7_spill] sm:$0xff] }
 0x211   :  { %2314 = vst.msk [vmem:[%s4459_s3 + $0xf8] sm:$0xff] %vm2282_vm2, %v2151_v40 }
 0x212   :  { %2312 = vst.msk [vmem:[%s4459_s3 + $0xe8] sm:$0xff] %vm2282_vm2, %v2143_v4  ;;  %v1669_v4 = vadd.f32 %v3930_v33, %v4479_v51 }
 0x214   :  { %v1930_v30 = vpop.f32.mrb[96].mxu0  ;;  %v2666_v29 = vpop.f32.mrb[128].mxu1 }
 0x215   :  { %v4272_v58 = vadd.f32 %v1930_v30, %v1642_v59  ;;  %v2164_v28 = vadd.f32 %v2666_v29, %v4070_v38  ;;  %v1932_v56 = vpop.f32.mrb[97].mxu0  ;;  %v2155_v10 = vpop.f32.mrb[129].mxu1  ;;  %v4474_v38 = vld [vmem:[#allocation2_spill] sm:$0xff] }
 0x216   :  { %v2156_v24 = vadd.f32 %v2155_v10, %v4038_v11  ;;  %v1933_v48 = vpop.f32.mrb[98].mxu0  ;;  %v2667_v0 = vpop.f32.mrb[130].mxu1 }
 0x217   :  { %2317 = vst.msk [vmem:[%s4459_s3 + $0x110] sm:$0xff] %vm2282_vm2, %v2164_v28  ;;  %v4280_v41 = vadd.f32 %v1933_v48, %v1645_v49  ;;  %v2167_v50 = vadd.f32 %v2667_v0, %v4078_v47  ;;  %v1935_v2 = vpop.f32.mrb[99].mxu0  ;;  %v2158_v32 = vpop.f32.mrb[131].mxu1  ;;  %v1650_v47 = vadd.f32 %v3930_v33, %v4474_v38 }
 0x218   :  { %2315 = vst.msk [vmem:[%s4459_s3 + $0x100] sm:$0xff] %vm2282_vm2, %v2156_v24  ;;  %v2159_v11 = vadd.f32 %v2158_v32, %v4046_v31  ;;  %v4481_v32 = vld [vmem:[#allocation9_spill] sm:$0xff] }
 0x219   :  { %2318 = vst.msk [vmem:[%s4459_s3 + $0x118] sm:$0xff] %vm2282_vm2, %v2167_v50 }
 0x21a   :  { %2316 = vst.msk [vmem:[%s4459_s3 + $0x108] sm:$0xff] %vm2282_vm2, %v2159_v11  ;;  %v1677_v11 = vadd.f32 %v3930_v33, %v4481_v32 }
 0x21c   :  { %v1938_v8 = vpop.f32.mrb[100].mxu0  ;;  %v2670_v52 = vpop.f32.mrb[132].mxu1 }
 0x21d   :  { %v1939_v19 = vadd.f32 %v1938_v8, %v1650_v47  ;;  %v2180_v31 = vadd.f32 %v2670_v52, %v4134_v1  ;;  %v1940_v57 = vpop.f32.mrb[101].mxu0  ;;  %v2171_v46 = vpop.f32.mrb[133].mxu1 }
 0x21e   :  { %v2172_v18 = vadd.f32 %v2171_v46, %v4102_v7  ;;  %v1941_v26 = vpop.f32.mrb[102].mxu0  ;;  %v2671_v21 = vpop.f32.mrb[134].mxu1  ;;  %v4476_v7 = vld [vmem:[#allocation4_spill] sm:$0xff] }
 0x21f   :  { %2321 = vst.msk [vmem:[%s4459_s3 + $0x130] sm:$0xff] %vm2282_vm2, %v2180_v31  ;;  %v1942_v34 = vadd.f32 %v1941_v26, %v1653_v22  ;;  %v2183_v62 = vadd.f32 %v2671_v21, %v4142_v15  ;;  %v1943_v6 = vpop.f32.mrb[103].mxu0  ;;  %v2174_v42 = vpop.f32.mrb[135].mxu1  ;;  %v1658_v15 = vadd.f32 %v3930_v33, %v4476_v7 }
 0x220   :  { %2319 = vst.msk [vmem:[%s4459_s3 + $0x120] sm:$0xff] %vm2282_vm2, %v2172_v18  ;;  %v2175_v1 = vadd.f32 %v2174_v42, %v4110_v63 }
 0x221   :  { %2322 = vst.msk [vmem:[%s4459_s3 + $0x138] sm:$0xff] %vm2282_vm2, %v2183_v62  ;;  %v4483_v62 = vld [vmem:[#allocation11_spill] sm:$0xff] }
 0x222   :  { %2320 = vst.msk [vmem:[%s4459_s3 + $0x128] sm:$0xff] %vm2282_vm2, %v2175_v1  ;;  %v1685_v6 = vadd.f32 %v3930_v33, %v4483_v62 }
 0x224   :  { %v1946_v54 = vpop.f32.mrb[104].mxu0  ;;  %v2674_v5 = vpop.f32.mrb[136].mxu1 }
 0x225   :  { %v4324_v12 = vadd.f32 %v1946_v54, %v1658_v15  ;;  %v2196_v63 = vadd.f32 %v2674_v5, %v4188_v16  ;;  %v1948_v35 = vpop.f32.mrb[105].mxu0  ;;  %v2187_v3 = vpop.f32.mrb[137].mxu1  ;;  %v4478_v16 = vld [vmem:[#allocation6_spill] sm:$0xff] }
 0x226   :  { %v2188_v23 = vadd.f32 %v2187_v3, %v4160_v45  ;;  %v1949_v43 = vpop.f32.mrb[106].mxu0  ;;  %v2675_v53 = vpop.f32.mrb[138].mxu1 }
 0x227   :  { %2325 = vst.msk [vmem:[%s4459_s3 + $0x150] sm:$0xff] %vm2282_vm2, %v2196_v63  ;;  %v4332_v39 = vadd.f32 %v1949_v43, %v1661_v17  ;;  %v2199_v9 = vadd.f32 %v2675_v53, %v4196_v44  ;;  %v1951_v37 = vpop.f32.mrb[107].mxu0  ;;  %v2190_v36 = vpop.f32.mrb[139].mxu1  ;;  %v1666_v44 = vadd.f32 %v3930_v33, %v4478_v16 }
 0x228   :  { %2323 = vst.msk [vmem:[%s4459_s3 + $0x140] sm:$0xff] %vm2282_vm2, %v2188_v23  ;;  %v2191_v45 = vadd.f32 %v2190_v36, %v4168_v25 }
 0x229   :  { %2326 = vst.msk [vmem:[%s4459_s3 + $0x158] sm:$0xff] %vm2282_vm2, %v2199_v9  ;;  %v4485_v9 = vld [vmem:[#allocation13_spill] sm:$0xff] }
 0x22a   :  { %2324 = vst.msk [vmem:[%s4459_s3 + $0x148] sm:$0xff] %vm2282_vm2, %v2191_v45  ;;  %v1693_v37 = vadd.f32 %v3930_v33, %v4485_v9 }
 0x22c   :  { %v1954_v40 = vpop.f32.mrb[108].mxu0  ;;  %v2678_v20 = vpop.f32.mrb[140].mxu1 }
 0x22d   :  { %v1955_v59 = vadd.f32 %v1954_v40, %v1666_v44  ;;  %v2212_v25 = vadd.f32 %v2678_v20, %v4244_v27  ;;  %v1956_v30 = vpop.f32.mrb[109].mxu0  ;;  %v2203_v29 = vpop.f32.mrb[141].mxu1 }
 0x22e   :  { %v2204_v49 = vadd.f32 %v2203_v29, %v4216_v61  ;;  %v1957_v28 = vpop.f32.mrb[110].mxu0  ;;  %v2679_v56 = vpop.f32.mrb[142].mxu1  ;;  %v4480_v61 = vld [vmem:[#allocation8_spill] sm:$0xff]  ;;  %v4486_v29 = vld [vmem:[#allocation14_spill] sm:$0xff] }
 0x22f   :  { %2329 = vst.msk [vmem:[%s4459_s3 + $0x170] sm:$0xff] %vm2282_vm2, %v2212_v25  ;;  %v1958_v10 = vadd.f32 %v1957_v28, %v1669_v4  ;;  %v2215_v24 = vadd.f32 %v2679_v56, %v4252_v13  ;;  %v1959_v48 = vpop.f32.mrb[111].mxu0  ;;  %v2206_v0 = vpop.f32.mrb[143].mxu1  ;;  %v1674_v13 = vadd.f32 %v3930_v33, %v4480_v61 }
 0x230   :  { %2327 = vst.msk [vmem:[%s4459_s3 + $0x160] sm:$0xff] %vm2282_vm2, %v2204_v49  ;;  %v2207_v27 = vadd.f32 %v2206_v0, %v4224_v60  ;;  %v1698_v49 = vadd.f32 %v3930_v33, %v4486_v29 }
 0x231   :  { %2330 = vst.msk [vmem:[%s4459_s3 + $0x178] sm:$0xff] %vm2282_vm2, %v2215_v24 }
 0x232   :  { %2328 = vst.msk [vmem:[%s4459_s3 + $0x168] sm:$0xff] %vm2282_vm2, %v2207_v27 }
 0x234   :  { %v1962_v50 = vpop.f32.mrb[112].mxu0  ;;  %v2682_v2 = vpop.f32.mrb[144].mxu1 }
 0x235   :  { %v1963_v38 = vadd.f32 %v1962_v50, %v1674_v13  ;;  %v2228_v60 = vadd.f32 %v2682_v2, %v1939_v19  ;;  %v1964_v47 = vpop.f32.mrb[113].mxu0  ;;  %v2219_v8 = vpop.f32.mrb[145].mxu1 }
 0x236   :  { %v2220_v52 = vadd.f32 %v2219_v8, %v4272_v58  ;;  %v1965_v14 = vpop.f32.mrb[114].mxu0  ;;  %v2683_v22 = vpop.f32.mrb[146].mxu1  ;;  %v4482_v58 = vld [vmem:[#allocation10_spill] sm:$0xff] }
 0x237   :  { %2333 = vst.msk [vmem:[%s4459_s3 + $0x190] sm:$0xff] %vm2282_vm2, %v2228_v60  ;;  %v1966_v31 = vadd.f32 %v1965_v14, %v1677_v11  ;;  %v2231_v57 = vadd.f32 %v2683_v22, %v1942_v34  ;;  %v1967_v46 = vpop.f32.mrb[115].mxu0  ;;  %v2222_v18 = vpop.f32.mrb[147].mxu1  ;;  %v1682_v26 = vadd.f32 %v3930_v33, %v4482_v58 }
 0x238   :  { %2331 = vst.msk [vmem:[%s4459_s3 + $0x180] sm:$0xff] %vm2282_vm2, %v2220_v52  ;;  %v2223_v19 = vadd.f32 %v2222_v18, %v4280_v41 }
 0x239   :  { %2334 = vst.msk [vmem:[%s4459_s3 + $0x198] sm:$0xff] %vm2282_vm2, %v2231_v57 }
 0x23a   :  { %2332 = vst.msk [vmem:[%s4459_s3 + $0x188] sm:$0xff] %vm2282_vm2, %v2223_v19 }
 0x23c   :  { %v1970_v21 = vpop.f32.mrb[116].mxu0  ;;  %v2686_v34 = vpop.f32.mrb[148].mxu1 }
 0x23d   :  { %v1971_v42 = vadd.f32 %v1970_v21, %v1682_v26  ;;  %v2244_v41 = vadd.f32 %v2686_v34, %v1955_v59  ;;  %v1972_v1 = vpop.f32.mrb[117].mxu0  ;;  %v2235_v7 = vpop.f32.mrb[149].mxu1 }
 0x23e   :  { %v2236_v15 = vadd.f32 %v2235_v7, %v4324_v12  ;;  %v1973_v54 = vpop.f32.mrb[118].mxu0  ;;  %v2687_v5 = vpop.f32.mrb[150].mxu1  ;;  %v4484_v12 = vld [vmem:[#allocation12_spill] sm:$0xff] }
 0x23f   :  { %2337 = vst.msk [vmem:[%s4459_s3 + $0x1b0] sm:$0xff] %vm2282_vm2, %v2244_v41  ;;  %v1974_v55 = vadd.f32 %v1973_v54, %v1685_v6  ;;  %v2247_v17 = vadd.f32 %v2687_v5, %v1958_v10  ;;  %v1975_v63 = vpop.f32.mrb[119].mxu0  ;;  %v2238_v35 = vpop.f32.mrb[151].mxu1  ;;  %v1690_v23 = vadd.f32 %v3930_v33, %v4484_v12  ;;  %v4487_v10 = vld [vmem:[#allocation15_spill] sm:$0xff] }
 0x240   :  { %2335 = vst.msk [vmem:[%s4459_s3 + $0x1a0] sm:$0xff] %vm2282_vm2, %v2236_v15  ;;  %v2239_v3 = vadd.f32 %v2238_v35, %v4332_v39  ;;  %v1701_v24 = vadd.f32 %v3930_v33, %v4487_v10 }
 0x241   :  { %2338 = vst.msk [vmem:[%s4459_s3 + $0x1b8] sm:$0xff] %vm2282_vm2, %v2247_v17 }
 0x242   :  { %2336 = vst.msk [vmem:[%s4459_s3 + $0x1a8] sm:$0xff] %vm2282_vm2, %v2239_v3 }
 0x244   :  { %v1978_v43 = vpop.f32.mrb[120].mxu0  ;;  %v2690_v53 = vpop.f32.mrb[152].mxu1 }
 0x245   :  { %v1979_v36 = vadd.f32 %v1978_v43, %v1690_v23  ;;  %v2260_v39 = vadd.f32 %v2690_v53, %v1971_v42  ;;  %v1980_v45 = vpop.f32.mrb[121].mxu0  ;;  %v2251_v16 = vpop.f32.mrb[153].mxu1 }
 0x246   :  { %v2252_v44 = vadd.f32 %v2251_v16, %v1963_v38  ;;  %v1981_v40 = vpop.f32.mrb[122].mxu0  ;;  %v2691_v20 = vpop.f32.mrb[154].mxu1 }
 0x247   :  { %2341 = vst.msk [vmem:[%s4459_s3 + $0x1d0] sm:$0xff] %vm2282_vm2, %v2260_v39  ;;  %v1982_v51 = vadd.f32 %v1981_v40, %v1693_v37  ;;  %v2263_v4 = vadd.f32 %v2691_v20, %v1974_v55  ;;  %v1983_v59 = vpop.f32.mrb[123].mxu0  ;;  %v2254_v25 = vpop.f32.mrb[155].mxu1 }
 0x248   :  { %2339 = vst.msk [vmem:[%s4459_s3 + $0x1c0] sm:$0xff] %vm2282_vm2, %v2252_v44  ;;  %v2255_v30 = vadd.f32 %v2254_v25, %v1966_v31 }
 0x249   :  { %2342 = vst.msk [vmem:[%s4459_s3 + $0x1d8] sm:$0xff] %vm2282_vm2, %v2263_v4 }
 0x24a   :  { %2340 = vst.msk [vmem:[%s4459_s3 + $0x1c8] sm:$0xff] %vm2282_vm2, %v2255_v30 }
 0x24c   :  { %v1986_v28 = vpop.f32.mrb[124].mxu0  ;;  %v2694_v56 = vpop.f32.mrb[156].mxu1 }
 0x24d   :  { %v1987_v48 = vadd.f32 %v1986_v28, %v1698_v49  ;;  %v1988_v0 = vpop.f32.mrb[125].mxu0  ;;  %v2267_v27 = vpop.f32.mrb[157].mxu1 }
 0x24e   :  { %v2268_v61 = vadd.f32 %v2267_v27, %v1979_v36  ;;  %v1989_v13 = vpop.f32.mrb[126].mxu0  ;;  %v2695_v50 = vpop.f32.mrb[158].mxu1 }
 0x24f   :  { %v2276_v2 = vadd.f32 %v2694_v56, %v1987_v48  ;;  %v1990_v32 = vadd.f32 %v1989_v13, %v1701_v24  ;;  %v1991_v11 = vpop.f32.mrb[127].mxu0  ;;  %v2270_v38 = vpop.f32.mrb[159].mxu1 }
 0x250   :  { %2343 = vst.msk [vmem:[%s4459_s3 + $0x1e0] sm:$0xff] %vm2282_vm2, %v2268_v61  ;;  %v2271_v60 = vadd.f32 %v2270_v38, %v1982_v51 }
 0x251   :  { %2345 = vst.msk [vmem:[%s4459_s3 + $0x1f0] sm:$0xff] %vm2282_vm2, %v2276_v2  ;;  %v2279_v33 = vadd.f32 %v2695_v50, %v1990_v32 }
 0x252   :  { %2344 = vst.msk [vmem:[%s4459_s3 + $0x1e8] sm:$0xff] %vm2282_vm2, %v2271_v60 }
 0x253   :  { %2346 = vst.msk [vmem:[%s4459_s3 + $0x1f8] sm:$0xff] %vm2282_vm2, %v2279_v33 }

// kernel: inception_a_forward.6
= control target key start
LH: loop header
LB: loop body
LE: loop exit
PB: predicated region body
PF: predicated region fallthrough
CT: control target
= control target key end

     0   :  { %v2330_v0 = vmov 0   ;;  %vm774_vm0 = vcmask 261120   ;;  %vm1705_vm1 = vcmask 257024   ;;  %s3208_s1 = inlined_call_operand.vmem [shape: bf16[288,32], index: 1, kind: input, shape index: {}]   ;;  %s3209_s0 = inlined_call_operand.vmem [shape: bf16[512,288], index: 0, kind: input, shape index: {}]   ;;  %s3210_s2 = inlined_call_operand.vmem [shape: f32[1,32], index: 2, kind: input, shape index: {}]   ;;  %s3211_s3 = inlined_call_operand.vmem [shape: bf16[512,32], index: 3, kind: output, shape index: {}]  }
   0x1   :  { %871 = vmatprep.subr.bf16.mxu0 %v2330_v0  ;;  %2151 = vmatprep.subr.bf16.mxu1 %v2330_v0  ;;  %v2184_v1 = vld [vmem:[%s3208_s1] sm:$0xff]   ;;  %v2185_v2 = vld [vmem:[%s3208_s1 + $0x8] sm:$0xff]   ;;  %v2186_v3 = vld [vmem:[%s3208_s1 + $0x10] sm:$0xff]  }
   0x2   :  { %872 = vmatpush1.bf16.msra.mxu0 %v2184_v1  ;;  %2167 = vmatpush1.bf16.msra.mxu1 %v2184_v1  ;;  %v2187_v4 = vld [vmem:[%s3208_s1 + $0x18] sm:$0xff]   ;;  %v2188_v5 = vld [vmem:[%s3208_s1 + $0x20] sm:$0xff]   ;;  %v2189_v7 = vld [vmem:[%s3208_s1 + $0x28] sm:$0xff]  }
   0x3   :  { %873 = vmatprep.subr.bf16.mxu0 %v2330_v0  ;;  %2152 = vmatprep.subr.bf16.mxu1 %v2330_v0  ;;  %v2202_v6 = vld [vmem:[%s3209_s0 + $0x4] ss:$12 sps:$4 sm:$0xff]   ;;  %v2191_v10 = vld [vmem:[%s3208_s1 + $0x38] sm:$0xff]   ;;  %v2193_v12 = vld [vmem:[%s3208_s1 + $0x48] sm:$0xff]  }
   0x4   :  { %v2205_v8 = vld [vmem:[%s3209_s0 + $0x244] ss:$12 sps:$4 sm:$0xff]   ;;  %903 = vmatprep.mubr.bf16.mxu0 %v2202_v6  ;;  %v2195_v14 = vld [vmem:[%s3208_s1 + $0x58] sm:$0xff]   ;;  %v2197_v16 = vld [vmem:[%s3208_s1 + $0x68] sm:$0xff]  }
   0x5   :  { %1095 = vmatprep.mubr.bf16.mxu1 %v2205_v8  ;;  %v2190_v9 = vld [vmem:[%s3208_s1 + $0x30] sm:$0xff]   ;;  %v2192_v11 = vld [vmem:[%s3208_s1 + $0x40] sm:$0xff]   ;;  %v2199_v18 = vld [vmem:[%s3208_s1 + $0x78] sm:$0xff]  }
   0x6   :  { %874 = vmatpush1.bf16.msra.mxu0 %v2185_v2  ;;  %2168 = vmatpush1.bf16.msra.mxu1 %v2185_v2  ;;  %v2194_v13 = vld [vmem:[%s3208_s1 + $0x50] sm:$0xff]   ;;  %v2196_v15 = vld [vmem:[%s3208_s1 + $0x60] sm:$0xff]   ;;  %v2207_v22 = vld [vmem:[%s3209_s0 + $0x1c] ss:$12 sps:$4 sm:$0xff]  }
   0x7   :  { %875 = vmatprep.subr.bf16.mxu0 %v2330_v0  ;;  %2153 = vmatprep.subr.bf16.mxu1 %v2330_v0  ;;  %v2198_v17 = vld [vmem:[%s3208_s1 + $0x70] sm:$0xff]   ;;  %v2206_v19 = vld [vmem:[%s3208_s1 + $0x80] sm:$0xff]   ;;  %v2209_v23 = vld [vmem:[%s3209_s0 + $0x25c] ss:$12 sps:$4 sm:$0xff]  }
   0x8   :  { %v2200_v20 = vld [vmem:[%s3209_s0] ss:$12 sps:$4 sm:$0xff]   ;;  %v2211_v25 = vld [vmem:[%s3209_s0 + $0x18] ss:$12 sps:$4 sm:$0xff]   ;;  %v2217_v29 = vld [vmem:[%s3209_s0 + $0x30] ss:$12 sps:$4 sm:$0xff]  }
   0x9   :  { %v2203_v21 = vld [vmem:[%s3209_s0 + $0x240] ss:$12 sps:$4 sm:$0xff]   ;;  %v2212_v26 = vld [vmem:[%s3209_s0 + $0x258] ss:$12 sps:$4 sm:$0xff]   ;;  %v2218_v30 = vld [vmem:[%s3209_s0 + $0x270] ss:$12 sps:$4 sm:$0xff]  }
   0xa   :  { %876 = vmatpush1.bf16.msra.mxu0 %v2186_v3  ;;  %2169 = vmatpush1.bf16.msra.mxu1 %v2186_v3  ;;  %v2231_v24 = vld [vmem:[%s3208_s1 + $0x88] sm:$0xff]   ;;  %v2213_v27 = vld [vmem:[%s3209_s0 + $0x34] ss:$12 sps:$4 sm:$0xff]   ;;  %v2225_v35 = vld [vmem:[%s3209_s0 + $0x64] ss:$12 sps:$4 sm:$0xff]  }
   0xb   :  { %877 = vmatprep.subr.bf16.mxu0 %v2330_v0  ;;  %2154 = vmatprep.subr.bf16.mxu1 %v2330_v0  ;;  %v2215_v28 = vld [vmem:[%s3209_s0 + $0x274] ss:$12 sps:$4 sm:$0xff]   ;;  %v2219_v31 = vld [vmem:[%s3209_s0 + $0x4c] ss:$12 sps:$4 sm:$0xff]   ;;  %v2227_v36 = vld [vmem:[%s3209_s0 + $0x2a4] ss:$12 sps:$4 sm:$0xff]  }
   0xc   :  { %v2221_v32 = vld [vmem:[%s3209_s0 + $0x28c] ss:$12 sps:$4 sm:$0xff]   ;;  %v2223_v33 = vld [vmem:[%s3209_s0 + $0x48] ss:$12 sps:$4 sm:$0xff]   ;;  %v2242_v45 = vld [vmem:[%s3209_s0 + $0x90] ss:$12 sps:$4 sm:$0xff]  }
   0xd   :  { %v2224_v34 = vld [vmem:[%s3209_s0 + $0x288] ss:$12 sps:$4 sm:$0xff]   ;;  %v2229_v37 = vld [vmem:[%s3209_s0 + $0x60] ss:$12 sps:$4 sm:$0xff]   ;;  %v2236_v41 = vld [vmem:[%s3209_s0 + $0x78] ss:$12 sps:$4 sm:$0xff]  }
   0xe   :  { %878 = vmatpush1.bf16.msra.mxu0 %v2187_v4  ;;  %2170 = vmatpush1.bf16.msra.mxu1 %v2187_v4  ;;  %v2230_v38 = vld [vmem:[%s3209_s0 + $0x2a0] ss:$12 sps:$4 sm:$0xff]   ;;  %v2232_v39 = vld [vmem:[%s3209_s0 + $0x7c] ss:$12 sps:$4 sm:$0xff]   ;;  %v2237_v42 = vld [vmem:[%s3209_s0 + $0x2b8] ss:$12 sps:$4 sm:$0xff]  }
   0xf   :  { %879 = vmatprep.subr.bf16.mxu0 %v2330_v0  ;;  %2155 = vmatprep.subr.bf16.mxu1 %v2330_v0  ;;  %v2234_v40 = vld [vmem:[%s3209_s0 + $0x2bc] ss:$12 sps:$4 sm:$0xff]   ;;  %v2238_v43 = vld [vmem:[%s3209_s0 + $0x94] ss:$12 sps:$4 sm:$0xff]   ;;  %v2244_v47 = vld [vmem:[%s3209_s0 + $0xac] ss:$12 sps:$4 sm:$0xff]  }
  0x10   :  { %v2240_v44 = vld [vmem:[%s3209_s0 + $0x2d4] ss:$12 sps:$4 sm:$0xff]   ;;  %v2243_v46 = vld [vmem:[%s3209_s0 + $0x2d0] ss:$12 sps:$4 sm:$0xff]   ;;  %v2246_v48 = vld [vmem:[%s3209_s0 + $0x2ec] ss:$12 sps:$4 sm:$0xff]  }
  0x11   :  { %v2248_v49 = vld [vmem:[%s3209_s0 + $0xa8] ss:$12 sps:$4 sm:$0xff]   ;;  %v2250_v51 = vld [vmem:[%s3209_s0 + $0xc4] ss:$12 sps:$4 sm:$0xff]   ;;  %v2253_v53 = vld [vmem:[%s3209_s0 + $0xc0] ss:$12 sps:$4 sm:$0xff]  }
  0x12   :  { %880 = vmatpush1.bf16.msra.mxu0 %v2188_v5  ;;  %2171 = vmatpush1.bf16.msra.mxu1 %v2188_v5  ;;  %v2249_v50 = vld [vmem:[%s3209_s0 + $0x2e8] ss:$12 sps:$4 sm:$0xff]   ;;  %v2254_v54 = vld [vmem:[%s3209_s0 + $0x20] ss:$12 sps:$4 sm:$0xff]   ;;  %v2257_v56 = vld [vmem:[%s3209_s0 + $0x38] ss:$12 sps:$4 sm:$0xff]  }
  0x13   :  { %881 = vmatprep.subr.bf16.mxu0 %v2330_v0  ;;  %2156 = vmatprep.subr.bf16.mxu1 %v2330_v0  ;;  %v2252_v52 = vld [vmem:[%s3209_s0 + $0x8] ss:$12 sps:$4 sm:$0xff]   ;;  %v2258_v57 = vld [vmem:[%s3209_s0 + $0xd8] ss:$12 sps:$4 sm:$0xff]   ;;  %v2259_v58 = vld [vmem:[%s3209_s0 + $0x50] ss:$12 sps:$4 sm:$0xff]  }
  0x14   :  { %v2255_v55 = vld [vmem:[%s3209_s0 + $0xdc] ss:$12 sps:$4 sm:$0xff]   ;;  %v2260_v59 = vld [vmem:[%s3209_s0 + $0xf4] ss:$12 sps:$4 sm:$0xff]   ;;  %v2265_v63 = vld [vmem:[%s3209_s0 + $0x10c] ss:$12 sps:$4 sm:$0xff]  }
  0x15   :  { %v2262_v60 = vld [vmem:[%s3209_s0 + $0x68] ss:$12 sps:$4 sm:$0xff]   ;;  %v2263_v61 = vld [vmem:[%s3209_s0 + $0xf0] ss:$12 sps:$4 sm:$0xff]   ;;  %v2264_v62 = vld [vmem:[%s3209_s0 + $0x80] ss:$12 sps:$4 sm:$0xff]  }
  0x16   :  { %882 = vmatpush1.bf16.msra.mxu0 %v2189_v7  ;;  %2172 = vmatpush1.bf16.msra.mxu1 %v2189_v7  ;;  %v2268_v1 = vld [vmem:[%s3209_s0 + $0x108] ss:$12 sps:$4 sm:$0xff]   ;;  %v2269_v2 = vld [vmem:[%s3209_s0 + $0xb0] ss:$12 sps:$4 sm:$0xff]   ;;  %v2273_v5 = vld [vmem:[%s3209_s0 + $0x120] ss:$12 sps:$4 sm:$0xff]  }
  0x17   :  { %883 = vmatprep.subr.bf16.mxu0 %v2330_v0  ;;  %2157 = vmatprep.subr.bf16.mxu1 %v2330_v0  ;;  %v2270_v3 = vld [vmem:[%s3209_s0 + $0x124] ss:$12 sps:$4 sm:$0xff]   ;;  %v2272_v4 = vld [vmem:[%s3209_s0 + $0xc8] ss:$12 sps:$4 sm:$0xff]   ;;  %v2274_v6 = vld [vmem:[%s3209_s0 + $0xe0] ss:$12 sps:$4 sm:$0xff]  }
  0x18   :  { %v2275_v7 = vld [vmem:[%s3209_s0 + $0x13c] ss:$12 sps:$4 sm:$0xff]   ;;  %v2277_v8 = vld [vmem:[%s3209_s0 + $0xf8] ss:$12 sps:$4 sm:$0xff]  }
  0x1a   :  { %884 = vmatpush1.bf16.msra.mxu0 %v2190_v9  ;;  %2173 = vmatpush1.bf16.msra.mxu1 %v2190_v9  ;;  %v2278_v9 = vld [vmem:[%s3209_s0 + $0x138] ss:$12 sps:$4 sm:$0xff]  }
  0x1b   :  { %885 = vmatprep.subr.bf16.mxu0 %v2330_v0  ;;  %2158 = vmatprep.subr.bf16.mxu1 %v2330_v0 }
  0x1e   :  { %886 = vmatpush1.bf16.msra.mxu0 %v2191_v10  ;;  %2174 = vmatpush1.bf16.msra.mxu1 %v2191_v10  ;;  %v2279_v10 = vld [vmem:[%s3209_s0 + $0x110] ss:$12 sps:$4 sm:$0xff]  }
  0x1f   :  { %887 = vmatprep.subr.bf16.mxu0 %v2330_v0  ;;  %2159 = vmatprep.subr.bf16.mxu1 %v2330_v0 }
  0x22   :  { %888 = vmatpush1.bf16.msra.mxu0 %v2192_v11  ;;  %2175 = vmatpush1.bf16.msra.mxu1 %v2192_v11  ;;  %v2280_v11 = vld [vmem:[%s3209_s0 + $0x154] ss:$12 sps:$4 sm:$0xff]  }
  0x23   :  { %889 = vmatprep.subr.bf16.mxu0 %v2330_v0  ;;  %2160 = vmatprep.subr.bf16.mxu1 %v2330_v0 }
  0x26   :  { %890 = vmatpush1.bf16.msra.mxu0 %v2193_v12  ;;  %2176 = vmatpush1.bf16.msra.mxu1 %v2193_v12  ;;  %v2282_v12 = vld [vmem:[%s3209_s0 + $0x128] ss:$12 sps:$4 sm:$0xff]  }
  0x27   :  { %891 = vmatprep.subr.bf16.mxu0 %v2330_v0  ;;  %2161 = vmatprep.subr.bf16.mxu1 %v2330_v0 }
  0x2a   :  { %892 = vmatpush1.bf16.msra.mxu0 %v2194_v13  ;;  %2177 = vmatpush1.bf16.msra.mxu1 %v2194_v13  ;;  %v2283_v13 = vld [vmem:[%s3209_s0 + $0x150] ss:$12 sps:$4 sm:$0xff]  }
  0x2b   :  { %893 = vmatprep.subr.bf16.mxu0 %v2330_v0  ;;  %2162 = vmatprep.subr.bf16.mxu1 %v2330_v0 }
  0x2e   :  { %894 = vmatpush1.bf16.msra.mxu0 %v2195_v14  ;;  %2178 = vmatpush1.bf16.msra.mxu1 %v2195_v14  ;;  %v2284_v14 = vld [vmem:[%s3209_s0 + $0x140] ss:$12 sps:$4 sm:$0xff]  }
  0x2f   :  { %895 = vmatprep.subr.bf16.mxu0 %v2330_v0  ;;  %2163 = vmatprep.subr.bf16.mxu1 %v2330_v0 }
  0x32   :  { %896 = vmatpush1.bf16.msra.mxu0 %v2196_v15  ;;  %2179 = vmatpush1.bf16.msra.mxu1 %v2196_v15  ;;  %v2285_v15 = vld [vmem:[%s3209_s0 + $0x16c] ss:$12 sps:$4 sm:$0xff]  }
  0x33   :  { %897 = vmatprep.subr.bf16.mxu0 %v2330_v0  ;;  %2164 = vmatprep.subr.bf16.mxu1 %v2330_v0 }
  0x36   :  { %898 = vmatpush1.bf16.msra.mxu0 %v2197_v16  ;;  %2180 = vmatpush1.bf16.msra.mxu1 %v2197_v16  ;;  %v2287_v16 = vld [vmem:[%s3209_s0 + $0x158] ss:$12 sps:$4 sm:$0xff]  }
  0x37   :  { %899 = vmatprep.subr.bf16.mxu0 %v2330_v0  ;;  %2165 = vmatprep.subr.bf16.mxu1 %v2330_v0 }
  0x3a   :  { %900 = vmatpush1.bf16.msra.mxu0 %v2198_v17  ;;  %2181 = vmatpush1.bf16.msra.mxu1 %v2198_v17  ;;  %v2288_v17 = vld [vmem:[%s3209_s0 + $0x168] ss:$12 sps:$4 sm:$0xff]  }
  0x3b   :  { %901 = vmatprep.subr.bf16.mxu0 %v2330_v0  ;;  %2166 = vmatprep.subr.bf16.mxu1 %v2330_v0  ;;  %v2267_v0 = vld [vmem:[%s3209_s0 + $0x98] ss:$12 sps:$4 sm:$0xff]  }
  0x3e   :  { %902 = vmatpush1.bf16.msra.mxu0 %v2199_v18  ;;  %2182 = vmatpush1.bf16.msra.mxu1 %v2199_v18  ;;  %v2289_v18 = vld [vmem:[%s3209_s0 + $0x170] ss:$12 sps:$4 sm:$0xff]  }
  0x3f   :  { %2083 = vmatprep.subr.bf16.mxu1 %v2206_v19 }
  0x41   :  { %904 = vmatmul.mubr.bf16.vlgmr.msra.gmra.mrb[0].mxu0 %v2200_v20  ;;  %1096 = vmatmul.mubr.bf16.vlgmr.msra.gmra.mrb[0].mxu1 %v2203_v21  ;;  %v2292_v20 = vld [vmem:[%s3209_s0 + $0x188] ss:$12 sps:$4 sm:$0xff]   ;;  %v2293_v21 = vld [vmem:[%s3209_s0 + $0x180] ss:$12 sps:$4 sm:$0xff]  }
  0x42   :  { %2084 = vmatpush3.bf16.msra.mxu1 %v2206_v19  ;;  %911 = vmatprep.mubr.bf16.mxu0 %v2207_v22  ;;  %v2290_v19 = vld [vmem:[%s3209_s0 + $0x184] ss:$12 sps:$4 sm:$0xff]   ;;  %v2294_v22 = vld [vmem:[%s3209_s0 + $0x1a0] ss:$12 sps:$4 sm:$0xff]  }
  0x43   :  { %1103 = vmatprep.mubr.bf16.mxu1 %v2209_v23  ;;  %2085 = vmatprep.subr.bf16.mxu1 %v2231_v24  ;;  %v2295_v23 = vld [vmem:[%s3209_s0 + $0x19c] ss:$12 sps:$4 sm:$0xff]  }
  0x46   :  { %2086 = vmatpush3.bf16.msra.mxu1 %v2231_v24  ;;  %v2297_v24 = vld [vmem:[%s3209_s0 + $0x1b8] ss:$12 sps:$4 sm:$0xff]  }
  0x49   :  { %912 = vmatmul.mubr.bf16.gmra.mrb[4].mxu0 %v2211_v25  ;;  %1104 = vmatmul.mubr.bf16.gmra.mrb[4].mxu1 %v2212_v26  ;;  %v2298_v25 = vld [vmem:[%s3209_s0 + $0x198] ss:$12 sps:$4 sm:$0xff]   ;;  %v2299_v26 = vld [vmem:[%s3209_s0 + $0x1d0] ss:$12 sps:$4 sm:$0xff]  }
  0x4a   :  { %919 = vmatprep.mubr.bf16.mxu0 %v2213_v27  ;;  %1111 = vmatprep.mubr.bf16.mxu1 %v2215_v28  ;;  %v2300_v27 = vld [vmem:[%s3209_s0 + $0x1b4] ss:$12 sps:$4 sm:$0xff]  }
  0x4b   :  { %v2302_v28 = vld [vmem:[%s3209_s0 + $0x1e8] ss:$12 sps:$4 sm:$0xff]  }
  0x51   :  { %920 = vmatmul.mubr.bf16.gmra.mrb[8].mxu0 %v2217_v29  ;;  %1112 = vmatmul.mubr.bf16.gmra.mrb[8].mxu1 %v2218_v30  ;;  %v2303_v29 = vld [vmem:[%s3209_s0 + $0x1b0] ss:$12 sps:$4 sm:$0xff]   ;;  %v2304_v30 = vld [vmem:[%s3209_s0 + $0x200] ss:$12 sps:$4 sm:$0xff]  }
  0x52   :  { %927 = vmatprep.mubr.bf16.mxu0 %v2219_v31  ;;  %1119 = vmatprep.mubr.bf16.mxu1 %v2221_v32  ;;  %v2305_v31 = vld [vmem:[%s3209_s0 + $0x1cc] ss:$12 sps:$4 sm:$0xff]  }
  0x53   :  { %v2307_v32 = vld [vmem:[%s3209_s0 + $0x218] ss:$12 sps:$4 sm:$0xff]  }
  0x59   :  { %928 = vmatmul.mubr.bf16.gmra.mrb[12].mxu0 %v2223_v33  ;;  %1120 = vmatmul.mubr.bf16.gmra.mrb[12].mxu1 %v2224_v34  ;;  %v2308_v33 = vld [vmem:[%s3209_s0 + $0x1c8] ss:$12 sps:$4 sm:$0xff]   ;;  %v2309_v34 = vld [vmem:[%s3209_s0 + $0x230] ss:$12 sps:$4 sm:$0xff]  }
  0x5a   :  { %935 = vmatprep.mubr.bf16.mxu0 %v2225_v35  ;;  %1127 = vmatprep.mubr.bf16.mxu1 %v2227_v36  ;;  %v2310_v35 = vld [vmem:[%s3209_s0 + $0x1e4] ss:$12 sps:$4 sm:$0xff]   ;;  %v2312_v36 = vld [vmem:[%s3209_s0 + $0x248] ss:$12 sps:$4 sm:$0xff]  }
  0x61   :  { %936 = vmatmul.mubr.bf16.gmra.mrb[16].mxu0 %v2229_v37  ;;  %1128 = vmatmul.mubr.bf16.gmra.mrb[16].mxu1 %v2230_v38  ;;  %v2313_v37 = vld [vmem:[%s3209_s0 + $0x1e0] ss:$12 sps:$4 sm:$0xff]  }
  0x62   :  { %943 = vmatprep.mubr.bf16.mxu0 %v2232_v39  ;;  %1135 = vmatprep.mubr.bf16.mxu1 %v2234_v40  ;;  %v2314_v38 = vld [vmem:[%s3209_s0 + $0x260] ss:$12 sps:$4 sm:$0xff]   ;;  %v2315_v39 = vld [vmem:[%s3209_s0 + $0x1fc] ss:$12 sps:$4 sm:$0xff]   ;;  %v2317_v40 = vld [vmem:[%s3209_s0 + $0x278] ss:$12 sps:$4 sm:$0xff]  }
  0x69   :  { %944 = vmatmul.mubr.bf16.gmra.mrb[20].mxu0 %v2236_v41  ;;  %1136 = vmatmul.mubr.bf16.gmra.mrb[20].mxu1 %v2237_v42  ;;  %v2318_v41 = vld [vmem:[%s3209_s0 + $0x1f8] ss:$12 sps:$4 sm:$0xff]   ;;  %v2319_v42 = vld [vmem:[%s3209_s0 + $0x290] ss:$12 sps:$4 sm:$0xff]  }
  0x6a   :  { %951 = vmatprep.mubr.bf16.mxu0 %v2238_v43  ;;  %1143 = vmatprep.mubr.bf16.mxu1 %v2240_v44  ;;  %v2320_v43 = vld [vmem:[%s3209_s0 + $0x214] ss:$12 sps:$4 sm:$0xff]  }
  0x6b   :  { %v2322_v44 = vld [vmem:[%s3209_s0 + $0x2a8] ss:$12 sps:$4 sm:$0xff]  }
  0x71   :  { %952 = vmatmul.mubr.bf16.gmra.mrb[24].mxu0 %v2242_v45  ;;  %1144 = vmatmul.mubr.bf16.gmra.mrb[24].mxu1 %v2243_v46  ;;  %v2323_v45 = vld [vmem:[%s3209_s0 + $0x210] ss:$12 sps:$4 sm:$0xff]   ;;  %v2324_v46 = vld [vmem:[%s3209_s0 + $0x2c0] ss:$12 sps:$4 sm:$0xff]  }
  0x72   :  { %959 = vmatprep.mubr.bf16.mxu0 %v2244_v47  ;;  %1151 = vmatprep.mubr.bf16.mxu1 %v2246_v48  ;;  %v2325_v47 = vld [vmem:[%s3209_s0 + $0x22c] ss:$12 sps:$4 sm:$0xff]  }
  0x73   :  { %v2327_v48 = vld [vmem:[%s3209_s0 + $0x2d8] ss:$12 sps:$4 sm:$0xff]  }
  0x79   :  { %960 = vmatmul.mubr.bf16.gmra.mrb[28].mxu0 %v2248_v49  ;;  %1152 = vmatmul.mubr.bf16.gmra.mrb[28].mxu1 %v2249_v50  ;;  %v2328_v49 = vld [vmem:[%s3209_s0 + $0x228] ss:$12 sps:$4 sm:$0xff]   ;;  %v2329_v50 = vld [vmem:[%s3209_s0 + $0x2f0] ss:$12 sps:$4 sm:$0xff]  }
  0x7a   :  { %967 = vmatprep.mubr.bf16.mxu0 %v2250_v51  ;;  %2087 = vmatprep.mubr.msk.bf16.mxu1 %vm774_vm0, %v2252_v52 }
  0x81   :  { %968 = vmatmul.mubr.bf16.gmra.mrb[32].mxu0 %v2253_v53  ;;  %2088 = vmatmul.mubr.msk.bf16.vlgmr.msra.gmra.mrb[32].mxu1 %vm774_vm0, %v2254_v54 }
  0x82   :  { %975 = vmatprep.mubr.bf16.mxu0 %v2255_v55  ;;  %2091 = vmatprep.mubr.msk.bf16.mxu1 %vm774_vm0, %v2257_v56 }
  0x89   :  { %976 = vmatmul.mubr.bf16.gmra.mrb[36].mxu0 %v2258_v57  ;;  %2092 = vmatmul.mubr.msk.bf16.gmra.mrb[36].mxu1 %vm774_vm0, %v2259_v58 }
  0x8a   :  { %983 = vmatprep.mubr.bf16.mxu0 %v2260_v59  ;;  %2095 = vmatprep.mubr.msk.bf16.mxu1 %vm774_vm0, %v2262_v60 }
  0x91   :  { %984 = vmatmul.mubr.bf16.gmra.mrb[40].mxu0 %v2263_v61  ;;  %2096 = vmatmul.mubr.msk.bf16.gmra.mrb[40].mxu1 %vm774_vm0, %v2264_v62 }
  0x92   :  { %991 = vmatprep.mubr.bf16.mxu0 %v2265_v63  ;;  %2099 = vmatprep.mubr.msk.bf16.mxu1 %vm774_vm0, %v2267_v0 }
  0x99   :  { %992 = vmatmul.mubr.bf16.gmra.mrb[44].mxu0 %v2268_v1  ;;  %2100 = vmatmul.mubr.msk.bf16.gmra.mrb[44].mxu1 %vm774_vm0, %v2269_v2 }
  0x9a   :  { %999 = vmatprep.mubr.bf16.mxu0 %v2270_v3  ;;  %2103 = vmatprep.mubr.msk.bf16.mxu1 %vm774_vm0, %v2272_v4 }
  0xa1   :  { %1000 = vmatmul.mubr.bf16.gmra.mrb[48].mxu0 %v2273_v5  ;;  %2104 = vmatmul.mubr.msk.bf16.gmra.mrb[48].mxu1 %vm774_vm0, %v2274_v6 }
  0xa2   :  { %1007 = vmatprep.mubr.bf16.mxu0 %v2275_v7  ;;  %2107 = vmatprep.mubr.msk.bf16.mxu1 %vm774_vm0, %v2277_v8 }
  0xa9   :  { %1008 = vmatmul.mubr.bf16.gmra.mrb[52].mxu0 %v2278_v9  ;;  %2108 = vmatmul.mubr.msk.bf16.gmra.mrb[52].mxu1 %vm774_vm0, %v2279_v10 }
  0xaa   :  { %1015 = vmatprep.mubr.bf16.mxu0 %v2280_v11  ;;  %2111 = vmatprep.mubr.msk.bf16.mxu1 %vm774_vm0, %v2282_v12 }
  0xb1   :  { %1016 = vmatmul.mubr.bf16.gmra.mrb[56].mxu0 %v2283_v13  ;;  %2112 = vmatmul.mubr.msk.bf16.gmra.mrb[56].mxu1 %vm774_vm0, %v2284_v14 }
  0xb2   :  { %1023 = vmatprep.mubr.bf16.mxu0 %v2285_v15  ;;  %2115 = vmatprep.mubr.msk.bf16.mxu1 %vm774_vm0, %v2287_v16 }
  0xb9   :  { %1024 = vmatmul.mubr.bf16.gmra.mrb[60].mxu0 %v2288_v17  ;;  %2116 = vmatmul.mubr.msk.bf16.gmra.mrb[60].mxu1 %vm774_vm0, %v2289_v18 }
  0xba   :  { %1031 = vmatprep.mubr.bf16.mxu0 %v2290_v19  ;;  %2119 = vmatprep.mubr.msk.bf16.mxu1 %vm774_vm0, %v2292_v20 }
  0xc1   :  { %1032 = vmatmul.mubr.bf16.gmra.mrb[64].mxu0 %v2293_v21  ;;  %2120 = vmatmul.mubr.msk.bf16.gmra.mrb[64].mxu1 %vm774_vm0, %v2294_v22 }
  0xc2   :  { %1039 = vmatprep.mubr.bf16.mxu0 %v2295_v23  ;;  %2123 = vmatprep.mubr.msk.bf16.mxu1 %vm774_vm0, %v2297_v24 }
  0xc9   :  { %1040 = vmatmul.mubr.bf16.gmra.mrb[68].mxu0 %v2298_v25  ;;  %2124 = vmatmul.mubr.msk.bf16.gmra.mrb[68].mxu1 %vm774_vm0, %v2299_v26 }
  0xca   :  { %1047 = vmatprep.mubr.bf16.mxu0 %v2300_v27  ;;  %2127 = vmatprep.mubr.msk.bf16.mxu1 %vm774_vm0, %v2302_v28 }
  0xd1   :  { %1048 = vmatmul.mubr.bf16.gmra.mrb[72].mxu0 %v2303_v29  ;;  %2128 = vmatmul.mubr.msk.bf16.gmra.mrb[72].mxu1 %vm774_vm0, %v2304_v30 }
  0xd2   :  { %1055 = vmatprep.mubr.bf16.mxu0 %v2305_v31  ;;  %2131 = vmatprep.mubr.msk.bf16.mxu1 %vm774_vm0, %v2307_v32 }
  0xd9   :  { %1056 = vmatmul.mubr.bf16.gmra.mrb[76].mxu0 %v2308_v33  ;;  %2132 = vmatmul.mubr.msk.bf16.gmra.mrb[76].mxu1 %vm774_vm0, %v2309_v34 }
  0xda   :  { %1063 = vmatprep.mubr.bf16.mxu0 %v2310_v35  ;;  %2135 = vmatprep.mubr.msk.bf16.mxu1 %vm774_vm0, %v2312_v36 }
  0xe1   :  { %1064 = vmatmul.mubr.bf16.gmra.mrb[80].mxu0 %v2313_v37  ;;  %2136 = vmatmul.mubr.msk.bf16.gmra.mrb[80].mxu1 %vm774_vm0, %v2314_v38 }
  0xe2   :  { %1071 = vmatprep.mubr.bf16.mxu0 %v2315_v39  ;;  %2139 = vmatprep.mubr.msk.bf16.mxu1 %vm774_vm0, %v2317_v40 }
  0xe9   :  { %1072 = vmatmul.mubr.bf16.gmra.mrb[84].mxu0 %v2318_v41  ;;  %2140 = vmatmul.mubr.msk.bf16.gmra.mrb[84].mxu1 %vm774_vm0, %v2319_v42 }
  0xea   :  { %1079 = vmatprep.mubr.bf16.mxu0 %v2320_v43  ;;  %2143 = vmatprep.mubr.msk.bf16.mxu1 %vm774_vm0, %v2322_v44 }
  0xf1   :  { %1080 = vmatmul.mubr.bf16.gmra.mrb[88].mxu0 %v2323_v45  ;;  %2144 = vmatmul.mubr.msk.bf16.gmra.mrb[88].mxu1 %vm774_vm0, %v2324_v46 }
  0xf2   :  { %1087 = vmatprep.mubr.bf16.mxu0 %v2325_v47  ;;  %2147 = vmatprep.mubr.msk.bf16.mxu1 %vm774_vm0, %v2327_v48 }
  0xf9   :  { %1088 = vmatmul.mubr.bf16.gmra.mrb[92].mxu0 %v2328_v49  ;;  %2148 = vmatmul.mubr.msk.bf16.gmra.mrb[92].mxu1 %vm774_vm0, %v2329_v50 }
 0x114   :  { %v2757_v51 = vpop.f32.mrb[0].mxu0  ;;  %v2759_v52 = vpop.f32.mrb[0].mxu1 }
 0x115   :  { %v907_v53 = vpop.f32.mrb[1].mxu0  ;;  %v1099_v54 = vpop.f32.mrb[1].mxu1 }
 0x116   :  { %v2761_v55 = vpop.f32.mrb[2].mxu0  ;;  %v2763_v56 = vpop.f32.mrb[2].mxu1  ;;  %v2820_v53 = vld [vmem:[%s3210_s2] ss:$0 sm:$0xff] }
 0x117   :  { %v910_v57 = vpop.f32.mrb[3].mxu0  ;;  %v1102_v58 = vpop.f32.mrb[3].mxu1 }
 0x118   :  { %v906_v57 = vadd.f32 %v2820_v53, %v2757_v51 }
 0x11c   :  { %v913_v59 = vpop.f32.mrb[4].mxu0  ;;  %v2765_v60 = vpop.f32.mrb[4].mxu1 }
 0x11d   :  { %v915_v61 = vpop.f32.mrb[5].mxu0  ;;  %v1107_v62 = vpop.f32.mrb[5].mxu1  ;;  %v914_v54 = vadd.f32 %v2820_v53, %v913_v59 }
 0x11e   :  { %v916_v63 = vpop.f32.mrb[6].mxu0  ;;  %v2767_v0 = vpop.f32.mrb[6].mxu1 }
 0x11f   :  { %v918_v1 = vpop.f32.mrb[7].mxu0  ;;  %v1110_v2 = vpop.f32.mrb[7].mxu1  ;;  %v917_v62 = vadd.f32 %v2820_v53, %v916_v63 }
 0x124   :  { %v2769_v3 = vpop.f32.mrb[8].mxu0  ;;  %v2771_v4 = vpop.f32.mrb[8].mxu1 }
 0x125   :  { %v923_v5 = vpop.f32.mrb[9].mxu0  ;;  %v1115_v6 = vpop.f32.mrb[9].mxu1 }
 0x126   :  { %v2773_v7 = vpop.f32.mrb[10].mxu0  ;;  %v2775_v8 = vpop.f32.mrb[10].mxu1  ;;  %v909_v6 = vadd.f32 %v2820_v53, %v2761_v55 }
 0x127   :  { %v926_v9 = vpop.f32.mrb[11].mxu0  ;;  %v1118_v10 = vpop.f32.mrb[11].mxu1 }
 0x12c   :  { %v2777_v11 = vpop.f32.mrb[12].mxu0  ;;  %v2779_v12 = vpop.f32.mrb[12].mxu1 }
 0x12d   :  { %v931_v13 = vpop.f32.mrb[13].mxu0  ;;  %v1123_v14 = vpop.f32.mrb[13].mxu1 }
 0x12e   :  { %v2781_v15 = vpop.f32.mrb[14].mxu0  ;;  %v2783_v16 = vpop.f32.mrb[14].mxu1 }
 0x12f   :  { %v934_v17 = vpop.f32.mrb[15].mxu0  ;;  %v1126_v18 = vpop.f32.mrb[15].mxu1 }
 0x134   :  { %v2785_v19 = vpop.f32.mrb[16].mxu0  ;;  %v2787_v20 = vpop.f32.mrb[16].mxu1 }
 0x135   :  { %v939_v21 = vpop.f32.mrb[17].mxu0  ;;  %v1131_v22 = vpop.f32.mrb[17].mxu1 }
 0x136   :  { %v2789_v23 = vpop.f32.mrb[18].mxu0  ;;  %v2791_v24 = vpop.f32.mrb[18].mxu1  ;;  %v930_v22 = vadd.f32 %v2820_v53, %v2777_v11 }
 0x137   :  { %v942_v25 = vpop.f32.mrb[19].mxu0  ;;  %v1134_v26 = vpop.f32.mrb[19].mxu1 }
 0x138   :  { %v922_v25 = vadd.f32 %v2820_v53, %v2769_v3 }
 0x13c   :  { %v2793_v27 = vpop.f32.mrb[20].mxu0  ;;  %v2795_v28 = vpop.f32.mrb[20].mxu1 }
 0x13d   :  { %v947_v29 = vpop.f32.mrb[21].mxu0  ;;  %v1139_v30 = vpop.f32.mrb[21].mxu1 }
 0x13e   :  { %v2797_v31 = vpop.f32.mrb[22].mxu0  ;;  %v2799_v32 = vpop.f32.mrb[22].mxu1  ;;  %v933_v30 = vadd.f32 %v2820_v53, %v2781_v15 }
 0x13f   :  { %v950_v33 = vpop.f32.mrb[23].mxu0  ;;  %v1142_v34 = vpop.f32.mrb[23].mxu1 }
 0x144   :  { %v2801_v35 = vpop.f32.mrb[24].mxu0  ;;  %v2803_v36 = vpop.f32.mrb[24].mxu1 }
 0x145   :  { %v955_v37 = vpop.f32.mrb[25].mxu0  ;;  %v1147_v38 = vpop.f32.mrb[25].mxu1 }
 0x146   :  { %v2805_v39 = vpop.f32.mrb[26].mxu0  ;;  %v2807_v40 = vpop.f32.mrb[26].mxu1  ;;  %v925_v37 = vadd.f32 %v2820_v53, %v2773_v7 }
 0x147   :  { %v958_v41 = vpop.f32.mrb[27].mxu0  ;;  %v1150_v42 = vpop.f32.mrb[27].mxu1 }
 0x14c   :  { %v2809_v43 = vpop.f32.mrb[28].mxu0  ;;  %v2811_v44 = vpop.f32.mrb[28].mxu1 }
 0x14d   :  { %v963_v45 = vpop.f32.mrb[29].mxu0  ;;  %v1155_v46 = vpop.f32.mrb[29].mxu1 }
 0x14e   :  { %v2813_v47 = vpop.f32.mrb[30].mxu0  ;;  %v2815_v48 = vpop.f32.mrb[30].mxu1 }
 0x14f   :  { %v966_v49 = vpop.f32.mrb[31].mxu0  ;;  %v1158_v50 = vpop.f32.mrb[31].mxu1 }
 0x154   :  { %v2825_v58 = vpop.f32.mrb[32].mxu0  ;;  %v2089_v61 = vpop.f32.mrb[32].mxu1 }
 0x155   :  { %v1203_v1 = vadd.f32 %v2089_v61, %v914_v54  ;;  %v971_v2 = vpop.f32.mrb[33].mxu0  ;;  %v1194_v5 = vpop.f32.mrb[33].mxu1  ;;  %v938_v61 = vadd.f32 %v2820_v53, %v2785_v19 }
 0x156   :  { %v1195_v9 = vadd.f32 %v1194_v5, %v906_v57  ;;  %v2830_v10 = vpop.f32.mrb[34].mxu0  ;;  %v2090_v13 = vpop.f32.mrb[34].mxu1  ;;  %v946_v57 = vadd.f32 %v2820_v53, %v2793_v27  ;;  %v949_v2 = vadd.f32 %v2820_v53, %v2797_v31 }
 0x157   :  { %v1987_v59 = vpack.c.bf16 %v1203_v1, %v1203_v1  ;;  %v1206_v14 = vadd.f32 %v2090_v13, %v917_v62  ;;  %v974_v17 = vpop.f32.mrb[35].mxu0  ;;  %v1197_v51 = vpop.f32.mrb[35].mxu1 }
 0x158   :  { %v1985_v18 = vpack.c.bf16 %v1195_v9, %v1195_v9  ;;  %v1198_v21 = vadd.f32 %v1197_v51, %v909_v6  ;;  %v941_v9 = vadd.f32 %v2820_v53, %v2789_v23 }
 0x159   :  { %1708 = vst.msk [vmem:[%s3211_s3 + $0x8] sm:$0xf] %vm1705_vm1, %v1987_v59  ;;  %v1988_v63 = vpack.c.bf16 %v1206_v14, %v1206_v14 }
 0x15a   :  { %1706 = vst.msk [vmem:[%s3211_s3] sm:$0xf] %vm1705_vm1, %v1985_v18  ;;  %v1986_v55 = vpack.c.bf16 %v1198_v21, %v1198_v21 }
 0x15b   :  { %1709 = vst.msk [vmem:[%s3211_s3 + $0xc] sm:$0xf] %vm1705_vm1, %v1988_v63 }
 0x15c   :  { %1707 = vst.msk [vmem:[%s3211_s3 + $0x4] sm:$0xf] %vm1705_vm1, %v1986_v55  ;;  %v2852_v26 = vpop.f32.mrb[36].mxu0  ;;  %v2093_v29 = vpop.f32.mrb[36].mxu1  ;;  %v962_v55 = vadd.f32 %v2820_v53, %v2809_v43 }
 0x15d   :  { %v1219_v11 = vadd.f32 %v2093_v29, %v930_v22  ;;  %v979_v33 = vpop.f32.mrb[37].mxu0  ;;  %v1210_v34 = vpop.f32.mrb[37].mxu1  ;;  %v954_v22 = vadd.f32 %v2820_v53, %v2801_v35 }
 0x15e   :  { %v1211_v38 = vadd.f32 %v1210_v34, %v922_v25  ;;  %v2858_v41 = vpop.f32.mrb[38].mxu0  ;;  %v2094_v3 = vpop.f32.mrb[38].mxu1  ;;  %v957_v34 = vadd.f32 %v2820_v53, %v2805_v39 }
 0x15f   :  { %v1991_v42 = vpack.c.bf16 %v1219_v11, %v1219_v11  ;;  %v1222_v45 = vadd.f32 %v2094_v3, %v933_v30  ;;  %v982_v46 = vpop.f32.mrb[39].mxu0  ;;  %v1213_v49 = vpop.f32.mrb[39].mxu1  ;;  %v965_v30 = vadd.f32 %v2820_v53, %v2813_v47 }
 0x160   :  { %v1989_v50 = vpack.c.bf16 %v1211_v38, %v1211_v38  ;;  %v1214_v54 = vadd.f32 %v1213_v49, %v925_v37 }
 0x161   :  { %1712 = vst.msk [vmem:[%s3211_s3 + $0x18] sm:$0xf] %vm1705_vm1, %v1991_v42  ;;  %v1992_v15 = vpack.c.bf16 %v1222_v45, %v1222_v45 }
 0x162   :  { %1710 = vst.msk [vmem:[%s3211_s3 + $0x10] sm:$0xf] %vm1705_vm1, %v1989_v50  ;;  %v1990_v7 = vpack.c.bf16 %v1214_v54, %v1214_v54  ;;  %v978_v54 = vadd.f32 %v2820_v53, %v2852_v26 }
 0x163   :  { %1713 = vst.msk [vmem:[%s3211_s3 + $0x1c] sm:$0xf] %vm1705_vm1, %v1992_v15  ;;  %v970_v15 = vadd.f32 %v2820_v53, %v2825_v58 }
 0x164   :  { %1711 = vst.msk [vmem:[%s3211_s3 + $0x14] sm:$0xf] %vm1705_vm1, %v1990_v7  ;;  %v2880_v62 = vpop.f32.mrb[40].mxu0  ;;  %v2097_v1 = vpop.f32.mrb[40].mxu1 }
 0x165   :  { %v1235_v27 = vadd.f32 %v2097_v1, %v946_v57  ;;  %v987_v5 = vpop.f32.mrb[41].mxu0  ;;  %v1226_v6 = vpop.f32.mrb[41].mxu1 }
 0x166   :  { %v1227_v13 = vadd.f32 %v1226_v6, %v938_v61  ;;  %v2886_v59 = vpop.f32.mrb[42].mxu0  ;;  %v2098_v19 = vpop.f32.mrb[42].mxu1  ;;  %v981_v61 = vadd.f32 %v2820_v53, %v2858_v41 }
 0x167   :  { %v1995_v14 = vpack.c.bf16 %v1235_v27, %v1235_v27  ;;  %v1238_v17 = vadd.f32 %v2098_v19, %v949_v2  ;;  %v990_v51 = vpop.f32.mrb[43].mxu0  ;;  %v1229_v18 = vpop.f32.mrb[43].mxu1  ;;  %v973_v27 = vadd.f32 %v2820_v53, %v2830_v10 }
 0x168   :  { %v1993_v21 = vpack.c.bf16 %v1227_v13, %v1227_v13  ;;  %v1230_v63 = vadd.f32 %v1229_v18, %v941_v9 }
 0x169   :  { %1716 = vst.msk [vmem:[%s3211_s3 + $0x28] sm:$0xf] %vm1705_vm1, %v1995_v14  ;;  %v1996_v31 = vpack.c.bf16 %v1238_v17, %v1238_v17 }
 0x16a   :  { %1714 = vst.msk [vmem:[%s3211_s3 + $0x20] sm:$0xf] %vm1705_vm1, %v1993_v21  ;;  %v1994_v23 = vpack.c.bf16 %v1230_v63, %v1230_v63  ;;  %v986_v21 = vadd.f32 %v2820_v53, %v2880_v62 }
 0x16b   :  { %1717 = vst.msk [vmem:[%s3211_s3 + $0x2c] sm:$0xf] %vm1705_vm1, %v1996_v31 }
 0x16c   :  { %1715 = vst.msk [vmem:[%s3211_s3 + $0x24] sm:$0xf] %vm1705_vm1, %v1994_v23  ;;  %v993_v25 = vpop.f32.mrb[44].mxu0  ;;  %v2101_v29 = vpop.f32.mrb[44].mxu1 }
 0x16d   :  { %v1251_v11 = vadd.f32 %v2101_v29, %v962_v55  ;;  %v995_v43 = vpop.f32.mrb[45].mxu0  ;;  %v1242_v33 = vpop.f32.mrb[45].mxu1  ;;  %v994_v18 = vadd.f32 %v2820_v53, %v993_v25  ;;  %v989_v29 = vadd.f32 %v2820_v53, %v2886_v59 }
 0x16e   :  { %v1243_v37 = vadd.f32 %v1242_v33, %v954_v22  ;;  %v996_v38 = vpop.f32.mrb[46].mxu0  ;;  %v2102_v3 = vpop.f32.mrb[46].mxu1 }
 0x16f   :  { %v1999_v35 = vpack.c.bf16 %v1251_v11, %v1251_v11  ;;  %v1254_v42 = vadd.f32 %v2102_v3, %v965_v30  ;;  %v998_v45 = vpop.f32.mrb[47].mxu0  ;;  %v1245_v46 = vpop.f32.mrb[47].mxu1  ;;  %v997_v23 = vadd.f32 %v2820_v53, %v996_v38 }
 0x170   :  { %v1997_v49 = vpack.c.bf16 %v1243_v37, %v1243_v37  ;;  %v1246_v50 = vadd.f32 %v1245_v46, %v957_v34 }
 0x171   :  { %1720 = vst.msk [vmem:[%s3211_s3 + $0x38] sm:$0xf] %vm1705_vm1, %v1999_v35  ;;  %v2000_v47 = vpack.c.bf16 %v1254_v42, %v1254_v42 }
 0x172   :  { %1718 = vst.msk [vmem:[%s3211_s3 + $0x30] sm:$0xf] %vm1705_vm1, %v1997_v49  ;;  %v1998_v39 = vpack.c.bf16 %v1246_v50, %v1246_v50 }
 0x173   :  { %1721 = vst.msk [vmem:[%s3211_s3 + $0x3c] sm:$0xf] %vm1705_vm1, %v2000_v47 }
 0x174   :  { %1719 = vst.msk [vmem:[%s3211_s3 + $0x34] sm:$0xf] %vm1705_vm1, %v1998_v39  ;;  %v1001_v7 = vpop.f32.mrb[48].mxu0  ;;  %v2105_v57 = vpop.f32.mrb[48].mxu1 }
 0x175   :  { %v1267_v1 = vadd.f32 %v2105_v57, %v978_v54  ;;  %v1003_v26 = vpop.f32.mrb[49].mxu0  ;;  %v1258_v2 = vpop.f32.mrb[49].mxu1  ;;  %v1002_v45 = vadd.f32 %v2820_v53, %v1001_v7 }
 0x176   :  { %v1259_v5 = vadd.f32 %v1258_v2, %v970_v15  ;;  %v1004_v6 = vpop.f32.mrb[50].mxu0  ;;  %v2106_v9 = vpop.f32.mrb[50].mxu1 }
 0x177   :  { %v2003_v58 = vpack.c.bf16 %v1267_v1, %v1267_v1  ;;  %v1270_v13 = vadd.f32 %v2106_v9, %v981_v61  ;;  %v1006_v19 = vpop.f32.mrb[51].mxu0  ;;  %v1261_v14 = vpop.f32.mrb[51].mxu1  ;;  %v1005_v15 = vadd.f32 %v2820_v53, %v1004_v6 }
 0x178   :  { %v2001_v17 = vpack.c.bf16 %v1259_v5, %v1259_v5  ;;  %v1262_v51 = vadd.f32 %v1261_v14, %v973_v27 }
 0x179   :  { %1724 = vst.msk [vmem:[%s3211_s3 + $0x48] sm:$0xf] %vm1705_vm1, %v2003_v58  ;;  %v2004_v41 = vpack.c.bf16 %v1270_v13, %v1270_v13 }
 0x17a   :  { %1722 = vst.msk [vmem:[%s3211_s3 + $0x40] sm:$0xf] %vm1705_vm1, %v2001_v17  ;;  %v2002_v10 = vpack.c.bf16 %v1262_v51, %v1262_v51 }
 0x17b   :  { %1725 = vst.msk [vmem:[%s3211_s3 + $0x4c] sm:$0xf] %vm1705_vm1, %v2004_v41 }
 0x17c   :  { %1723 = vst.msk [vmem:[%s3211_s3 + $0x44] sm:$0xf] %vm1705_vm1, %v2002_v10  ;;  %v1009_v63 = vpop.f32.mrb[52].mxu0  ;;  %v2109_v31 = vpop.f32.mrb[52].mxu1 }
 0x17d   :  { %v1283_v55 = vadd.f32 %v2109_v31, %v994_v18  ;;  %v1011_v22 = vpop.f32.mrb[53].mxu0  ;;  %v1274_v25 = vpop.f32.mrb[53].mxu1  ;;  %v1010_v42 = vadd.f32 %v2820_v53, %v1009_v63 }
 0x17e   :  { %v1275_v30 = vadd.f32 %v1274_v25, %v986_v21  ;;  %v1012_v11 = vpop.f32.mrb[54].mxu0  ;;  %v2110_v43 = vpop.f32.mrb[54].mxu1 }
 0x17f   :  { %v2007_v33 = vpack.c.bf16 %v1283_v55, %v1283_v55  ;;  %v1286_v62 = vadd.f32 %v2110_v43, %v997_v23  ;;  %v1014_v34 = vpop.f32.mrb[55].mxu0  ;;  %v1277_v37 = vpop.f32.mrb[55].mxu1  ;;  %v1013_v50 = vadd.f32 %v2820_v53, %v1012_v11 }
 0x180   :  { %v2005_v3 = vpack.c.bf16 %v1275_v30, %v1275_v30  ;;  %v1278_v35 = vadd.f32 %v1277_v37, %v989_v29 }
 0x181   :  { %1728 = vst.msk [vmem:[%s3211_s3 + $0x58] sm:$0xf] %vm1705_vm1, %v2007_v33  ;;  %v2008_v38 = vpack.c.bf16 %v1286_v62, %v1286_v62 }
 0x182   :  { %1726 = vst.msk [vmem:[%s3211_s3 + $0x50] sm:$0xf] %vm1705_vm1, %v2005_v3  ;;  %v2006_v59 = vpack.c.bf16 %v1278_v35, %v1278_v35 }
 0x183   :  { %1729 = vst.msk [vmem:[%s3211_s3 + $0x5c] sm:$0xf] %vm1705_vm1, %v2008_v38 }
 0x184   :  { %1727 = vst.msk [vmem:[%s3211_s3 + $0x54] sm:$0xf] %vm1705_vm1, %v2006_v59  ;;  %v1017_v46 = vpop.f32.mrb[56].mxu0  ;;  %v2113_v49 = vpop.f32.mrb[56].mxu1 }
 0x185   :  { %v1299_v47 = vadd.f32 %v2113_v49, %v1010_v42  ;;  %v1019_v39 = vpop.f32.mrb[57].mxu0  ;;  %v1290_v54 = vpop.f32.mrb[57].mxu1  ;;  %v1018_v13 = vadd.f32 %v2820_v53, %v1017_v46 }
 0x186   :  { %v1291_v57 = vadd.f32 %v1290_v54, %v1002_v45  ;;  %v1020_v61 = vpop.f32.mrb[58].mxu0  ;;  %v2114_v1 = vpop.f32.mrb[58].mxu1 }
 0x187   :  { %v2011_v26 = vpack.c.bf16 %v1299_v47, %v1299_v47  ;;  %v1302_v2 = vadd.f32 %v2114_v1, %v1013_v50  ;;  %v1022_v7 = vpop.f32.mrb[59].mxu0  ;;  %v1293_v27 = vpop.f32.mrb[59].mxu1  ;;  %v1021_v10 = vadd.f32 %v2820_v53, %v1020_v61 }
 0x188   :  { %v2009_v5 = vpack.c.bf16 %v1291_v57, %v1291_v57  ;;  %v1294_v9 = vadd.f32 %v1293_v27, %v1005_v15 }
 0x189   :  { %1732 = vst.msk [vmem:[%s3211_s3 + $0x68] sm:$0xf] %vm1705_vm1, %v2011_v26  ;;  %v2012_v58 = vpack.c.bf16 %v1302_v2, %v1302_v2 }
 0x18a   :  { %1730 = vst.msk [vmem:[%s3211_s3 + $0x60] sm:$0xf] %vm1705_vm1, %v2009_v5  ;;  %v2010_v6 = vpack.c.bf16 %v1294_v9, %v1294_v9 }
 0x18b   :  { %1733 = vst.msk [vmem:[%s3211_s3 + $0x6c] sm:$0xf] %vm1705_vm1, %v2012_v58 }
 0x18c   :  { %1731 = vst.msk [vmem:[%s3211_s3 + $0x64] sm:$0xf] %vm1705_vm1, %v2010_v6  ;;  %v1025_v19 = vpop.f32.mrb[60].mxu0  ;;  %v2117_v14 = vpop.f32.mrb[60].mxu1 }
 0x18d   :  { %v1026_v17 = vadd.f32 %v2820_v53, %v1025_v19  ;;  %v1027_v51 = vpop.f32.mrb[61].mxu0  ;;  %v1306_v41 = vpop.f32.mrb[61].mxu1 }
 0x18e   :  { %v1307_v18 = vadd.f32 %v1306_v41, %v1018_v13  ;;  %v1028_v21 = vpop.f32.mrb[62].mxu0  ;;  %v2118_v63 = vpop.f32.mrb[62].mxu1 }
 0x18f   :  { %v1315_v31 = vadd.f32 %v2117_v14, %v1026_v17  ;;  %v1029_v23 = vadd.f32 %v2820_v53, %v1028_v21  ;;  %v1030_v55 = vpop.f32.mrb[63].mxu0  ;;  %v1309_v22 = vpop.f32.mrb[63].mxu1 }
 0x190   :  { %v2013_v25 = vpack.c.bf16 %v1307_v18, %v1307_v18  ;;  %v1310_v29 = vadd.f32 %v1309_v22, %v1021_v10 }
 0x191   :  { %v2015_v30 = vpack.c.bf16 %v1315_v31, %v1315_v31  ;;  %v1318_v11 = vadd.f32 %v2118_v63, %v1029_v23 }
 0x192   :  { %1734 = vst.msk [vmem:[%s3211_s3 + $0x70] sm:$0xf] %vm1705_vm1, %v2013_v25  ;;  %v2014_v43 = vpack.c.bf16 %v1310_v29, %v1310_v29 }
 0x193   :  { %1736 = vst.msk [vmem:[%s3211_s3 + $0x78] sm:$0xf] %vm1705_vm1, %v2015_v30  ;;  %v2016_v33 = vpack.c.bf16 %v1318_v11, %v1318_v11 }
 0x194   :  { %1735 = vst.msk [vmem:[%s3211_s3 + $0x74] sm:$0xf] %vm1705_vm1, %v2014_v43  ;;  %v1033_v62 = vpop.f32.mrb[64].mxu0  ;;  %v2121_v34 = vpop.f32.mrb[64].mxu1 }
 0x195   :  { %1737 = vst.msk [vmem:[%s3211_s3 + $0x7c] sm:$0xf] %vm1705_vm1, %v2016_v33  ;;  %v1034_v37 = vadd.f32 %v2820_v53, %v1033_v62  ;;  %v1035_v3 = vpop.f32.mrb[65].mxu0  ;;  %v1322_v35 = vpop.f32.mrb[65].mxu1 }
 0x196   :  { %v1036_v38 = vpop.f32.mrb[66].mxu0  ;;  %v2122_v59 = vpop.f32.mrb[66].mxu1 }
 0x197   :  { %v1323_v42 = vadd.f32 %v1322_v35, %v1034_v37  ;;  %v1037_v45 = vadd.f32 %v2820_v53, %v1036_v38  ;;  %v1038_v46 = vpop.f32.mrb[67].mxu0  ;;  %v1325_v49 = vpop.f32.mrb[67].mxu1 }
 0x199   :  { %v2017_v50 = vpack.c.bf16 %v1323_v42, %v1323_v42  ;;  %v1326_v47 = vadd.f32 %v1325_v49, %v1037_v45  ;;  %v1106_v45 = vadd.f32 %v2820_v53, %v2765_v60  ;;  %v1098_v49 = vadd.f32 %v2820_v53, %v2759_v52 }
 0x19b   :  { %1738 = vst.msk [vmem:[%s3211_s3 + $0x80] sm:$0xf] %vm1705_vm1, %v2017_v50  ;;  %v2018_v39 = vpack.c.bf16 %v1326_v47, %v1326_v47 }
 0x19c   :  { %v1041_v54 = vpop.f32.mrb[68].mxu0  ;;  %v2125_v15 = vpop.f32.mrb[68].mxu1 }
 0x19d   :  { %1739 = vst.msk [vmem:[%s3211_s3 + $0x84] sm:$0xf] %vm1705_vm1, %v2018_v39  ;;  %v1042_v57 = vadd.f32 %v2820_v53, %v1041_v54  ;;  %v1043_v61 = vpop.f32.mrb[69].mxu0  ;;  %v1338_v1 = vpop.f32.mrb[69].mxu1  ;;  %v1109_v39 = vadd.f32 %v2820_v53, %v2767_v0 }
 0x19e   :  { %v1044_v26 = vpop.f32.mrb[70].mxu0  ;;  %v2126_v2 = vpop.f32.mrb[70].mxu1  ;;  %v1101_v61 = vadd.f32 %v2820_v53, %v2763_v56 }
 0x19f   :  { %v1331_v7 = vadd.f32 %v2121_v34, %v1042_v57  ;;  %v1045_v27 = vadd.f32 %v2820_v53, %v1044_v26  ;;  %v1046_v5 = vpop.f32.mrb[71].mxu0  ;;  %v1341_v9 = vpop.f32.mrb[71].mxu1 }
 0x1a1   :  { %v2019_v58 = vpack.c.bf16 %v1331_v7, %v1331_v7  ;;  %v1334_v6 = vadd.f32 %v2122_v59, %v1045_v27 }
 0x1a3   :  { %1740 = vst.msk [vmem:[%s3211_s3 + $0x88] sm:$0xf] %vm1705_vm1, %v2019_v58  ;;  %v2020_v13 = vpack.c.bf16 %v1334_v6, %v1334_v6 }
 0x1a4   :  { %v1049_v19 = vpop.f32.mrb[72].mxu0  ;;  %v3030_v14 = vpop.f32.mrb[72].mxu1 }
 0x1a5   :  { %1741 = vst.msk [vmem:[%s3211_s3 + $0x8c] sm:$0xf] %vm1705_vm1, %v2020_v13  ;;  %v1050_v17 = vadd.f32 %v2820_v53, %v1049_v19  ;;  %v1051_v51 = vpop.f32.mrb[73].mxu0  ;;  %v1354_v41 = vpop.f32.mrb[73].mxu1 }
 0x1a6   :  { %v1052_v10 = vpop.f32.mrb[74].mxu0  ;;  %v3037_v18 = vpop.f32.mrb[74].mxu1  ;;  %v1122_v51 = vadd.f32 %v2820_v53, %v2779_v12 }
 0x1a7   :  { %v1339_v21 = vadd.f32 %v1338_v1, %v1050_v17  ;;  %v1053_v63 = vadd.f32 %v2820_v53, %v1052_v10  ;;  %v1054_v31 = vpop.f32.mrb[75].mxu0  ;;  %v1357_v23 = vpop.f32.mrb[75].mxu1  ;;  %v1114_v10 = vadd.f32 %v2820_v53, %v2771_v4 }
 0x1a9   :  { %v2021_v55 = vpack.c.bf16 %v1339_v21, %v1339_v21  ;;  %v1342_v22 = vadd.f32 %v1341_v9, %v1053_v63  ;;  %v1125_v63 = vadd.f32 %v2820_v53, %v2783_v16 }
 0x1ab   :  { %1742 = vst.msk [vmem:[%s3211_s3 + $0x90] sm:$0xf] %vm1705_vm1, %v2021_v55  ;;  %v2022_v25 = vpack.c.bf16 %v1342_v22, %v1342_v22  ;;  %v1117_v22 = vadd.f32 %v2820_v53, %v2775_v8 }
 0x1ac   :  { %v1057_v29 = vpop.f32.mrb[76].mxu0  ;;  %v3044_v30 = vpop.f32.mrb[76].mxu1 }
 0x1ad   :  { %1743 = vst.msk [vmem:[%s3211_s3 + $0x94] sm:$0xf] %vm1705_vm1, %v2022_v25  ;;  %v1058_v11 = vadd.f32 %v2820_v53, %v1057_v29  ;;  %v1059_v43 = vpop.f32.mrb[77].mxu0  ;;  %v3051_v33 = vpop.f32.mrb[77].mxu1 }
 0x1ae   :  { %v1060_v62 = vpop.f32.mrb[78].mxu0  ;;  %v3053_v34 = vpop.f32.mrb[78].mxu1 }
 0x1af   :  { %v1347_v37 = vadd.f32 %v2125_v15, %v1058_v11  ;;  %v1061_v3 = vadd.f32 %v2820_v53, %v1060_v62  ;;  %v1062_v35 = vpop.f32.mrb[79].mxu0  ;;  %v3056_v38 = vpop.f32.mrb[79].mxu1 }
 0x1b1   :  { %v2023_v59 = vpack.c.bf16 %v1347_v37, %v1347_v37  ;;  %v1350_v42 = vadd.f32 %v2126_v2, %v1061_v3 }
 0x1b3   :  { %1744 = vst.msk [vmem:[%s3211_s3 + $0x98] sm:$0xf] %vm1705_vm1, %v2023_v59  ;;  %v2024_v46 = vpack.c.bf16 %v1350_v42, %v1350_v42 }
 0x1b4   :  { %v1065_v50 = vpop.f32.mrb[80].mxu0  ;;  %v2137_v47 = vpop.f32.mrb[80].mxu1 }
 0x1b5   :  { %1745 = vst.msk [vmem:[%s3211_s3 + $0x9c] sm:$0xf] %vm1705_vm1, %v2024_v46  ;;  %v1066_v60 = vadd.f32 %v2820_v53, %v1065_v50  ;;  %v1395_v54 = vadd.f32 %v2137_v47, %v1106_v45  ;;  %v1067_v15 = vpop.f32.mrb[81].mxu0  ;;  %v1386_v57 = vpop.f32.mrb[81].mxu1 }
 0x1b6   :  { %v1387_v1 = vadd.f32 %v1386_v57, %v1098_v49  ;;  %v1068_v52 = vpop.f32.mrb[82].mxu0  ;;  %v2138_v26 = vpop.f32.mrb[82].mxu1  ;;  %v1138_v49 = vadd.f32 %v2820_v53, %v2795_v28  ;;  %v1133_v57 = vadd.f32 %v2820_v53, %v2791_v24 }
 0x1b7   :  { %v1355_v2 = vadd.f32 %v1354_v41, %v1066_v60  ;;  %v2035_v7 = vpack.c.bf16 %v1395_v54, %v1395_v54  ;;  %v1069_v0 = vadd.f32 %v2820_v53, %v1068_v52  ;;  %v1398_v27 = vadd.f32 %v2138_v26, %v1109_v39  ;;  %v1070_v5 = vpop.f32.mrb[83].mxu0  ;;  %v1389_v9 = vpop.f32.mrb[83].mxu1 }
 0x1b8   :  { %v2033_v58 = vpack.c.bf16 %v1387_v1, %v1387_v1  ;;  %v1390_v6 = vadd.f32 %v1389_v9, %v1101_v61  ;;  %v1141_v39 = vadd.f32 %v2820_v53, %v2799_v32 }
 0x1b9   :  { %v2025_v13 = vpack.c.bf16 %v1355_v2, %v1355_v2  ;;  %1756 = vst.msk [vmem:[%s3211_s3 + $0xc8] sm:$0xf] %vm1705_vm1, %v2035_v7  ;;  %v1358_v19 = vadd.f32 %v1357_v23, %v1069_v0  ;;  %v2036_v56 = vpack.c.bf16 %v1398_v27, %v1398_v27 }
 0x1ba   :  { %1754 = vst.msk [vmem:[%s3211_s3 + $0xc0] sm:$0xf] %vm1705_vm1, %v2033_v58  ;;  %v2034_v17 = vpack.c.bf16 %v1390_v6, %v1390_v6 }
 0x1bb   :  { %1746 = vst.msk [vmem:[%s3211_s3 + $0xa0] sm:$0xf] %vm1705_vm1, %v2025_v13  ;;  %v2026_v41 = vpack.c.bf16 %v1358_v19, %v1358_v19  ;;  %1757 = vst.msk [vmem:[%s3211_s3 + $0xcc] sm:$0xf] %vm1705_vm1, %v2036_v56  ;;  %v1154_v13 = vadd.f32 %v2820_v53, %v2811_v44 }
 0x1bc   :  { %1755 = vst.msk [vmem:[%s3211_s3 + $0xc4] sm:$0xf] %vm1705_vm1, %v2034_v17  ;;  %v1073_v12 = vpop.f32.mrb[84].mxu0  ;;  %v2141_v21 = vpop.f32.mrb[84].mxu1  ;;  %v1157_v17 = vadd.f32 %v2820_v53, %v2815_v48 }
 0x1bd   :  { %1747 = vst.msk [vmem:[%s3211_s3 + $0xa4] sm:$0xf] %vm1705_vm1, %v2026_v41  ;;  %v1074_v31 = vadd.f32 %v2820_v53, %v1073_v12  ;;  %v1411_v23 = vadd.f32 %v2141_v21, %v1122_v51  ;;  %v1075_v55 = vpop.f32.mrb[85].mxu0  ;;  %v1402_v4 = vpop.f32.mrb[85].mxu1  ;;  %v1149_v12 = vadd.f32 %v2820_v53, %v2807_v40 }
 0x1be   :  { %v1403_v25 = vadd.f32 %v1402_v4, %v1114_v10  ;;  %v1076_v29 = vpop.f32.mrb[86].mxu0  ;;  %v2142_v11 = vpop.f32.mrb[86].mxu1 }
 0x1bf   :  { %v1363_v43 = vadd.f32 %v3030_v14, %v1074_v31  ;;  %v2039_v62 = vpack.c.bf16 %v1411_v23, %v1411_v23  ;;  %v1077_v16 = vadd.f32 %v2820_v53, %v1076_v29  ;;  %v1414_v37 = vadd.f32 %v2142_v11, %v1125_v63  ;;  %v1078_v3 = vpop.f32.mrb[87].mxu0  ;;  %v1405_v35 = vpop.f32.mrb[87].mxu1 }
 0x1c0   :  { %v2037_v59 = vpack.c.bf16 %v1403_v25, %v1403_v25  ;;  %v1406_v42 = vadd.f32 %v1405_v35, %v1117_v22 }
 0x1c1   :  { %v2027_v45 = vpack.c.bf16 %v1363_v43, %v1363_v43  ;;  %1760 = vst.msk [vmem:[%s3211_s3 + $0xd8] sm:$0xf] %vm1705_vm1, %v2039_v62  ;;  %v1366_v8 = vadd.f32 %v3037_v18, %v1077_v16  ;;  %v2040_v46 = vpack.c.bf16 %v1414_v37, %v1414_v37  ;;  %v1130_v18 = vadd.f32 %v2820_v53, %v2787_v20 }
 0x1c2   :  { %1758 = vst.msk [vmem:[%s3211_s3 + $0xd0] sm:$0xf] %vm1705_vm1, %v2037_v59  ;;  %v2038_v14 = vpack.c.bf16 %v1406_v42, %v1406_v42 }
 0x1c3   :  { %1748 = vst.msk [vmem:[%s3211_s3 + $0xa8] sm:$0xf] %vm1705_vm1, %v2027_v45  ;;  %v2028_v50 = vpack.c.bf16 %v1366_v8, %v1366_v8  ;;  %1761 = vst.msk [vmem:[%s3211_s3 + $0xdc] sm:$0xf] %vm1705_vm1, %v2040_v46 }
 0x1c4   :  { %1759 = vst.msk [vmem:[%s3211_s3 + $0xd4] sm:$0xf] %vm1705_vm1, %v2038_v14  ;;  %v1081_v28 = vpop.f32.mrb[88].mxu0  ;;  %v2145_v47 = vpop.f32.mrb[88].mxu1 }
 0x1c5   :  { %1749 = vst.msk [vmem:[%s3211_s3 + $0xac] sm:$0xf] %vm1705_vm1, %v2028_v50  ;;  %v1082_v60 = vadd.f32 %v2820_v53, %v1081_v28  ;;  %v1427_v54 = vadd.f32 %v2145_v47, %v1138_v49  ;;  %v1083_v15 = vpop.f32.mrb[89].mxu0  ;;  %v1418_v20 = vpop.f32.mrb[89].mxu1 }
 0x1c6   :  { %v1419_v61 = vadd.f32 %v1418_v20, %v1130_v18  ;;  %v1084_v1 = vpop.f32.mrb[90].mxu0  ;;  %v2146_v52 = vpop.f32.mrb[90].mxu1 }
 0x1c7   :  { %v1371_v26 = vadd.f32 %v3051_v33, %v1082_v60  ;;  %v2043_v2 = vpack.c.bf16 %v1427_v54, %v1427_v54  ;;  %v1085_v32 = vadd.f32 %v2820_v53, %v1084_v1  ;;  %v1430_v7 = vadd.f32 %v2146_v52, %v1141_v39  ;;  %v1086_v0 = vpop.f32.mrb[91].mxu0  ;;  %v1421_v27 = vpop.f32.mrb[91].mxu1 }
 0x1c8   :  { %v2041_v5 = vpack.c.bf16 %v1419_v61, %v1419_v61  ;;  %v1422_v9 = vadd.f32 %v1421_v27, %v1133_v57 }
 0x1c9   :  { %v2029_v58 = vpack.c.bf16 %v1371_v26, %v1371_v26  ;;  %1764 = vst.msk [vmem:[%s3211_s3 + $0xe8] sm:$0xf] %vm1705_vm1, %v2043_v2  ;;  %v1374_v24 = vadd.f32 %v3056_v38, %v1085_v32  ;;  %v2044_v6 = vpack.c.bf16 %v1430_v7, %v1430_v7  ;;  %v1146_v38 = vadd.f32 %v2820_v53, %v2803_v36 }
 0x1ca   :  { %1762 = vst.msk [vmem:[%s3211_s3 + $0xe0] sm:$0xf] %vm1705_vm1, %v2041_v5  ;;  %v2042_v33 = vpack.c.bf16 %v1422_v9, %v1422_v9 }
 0x1cb   :  { %1750 = vst.msk [vmem:[%s3211_s3 + $0xb0] sm:$0xf] %vm1705_vm1, %v2029_v58  ;;  %v2030_v19 = vpack.c.bf16 %v1374_v24, %v1374_v24  ;;  %1765 = vst.msk [vmem:[%s3211_s3 + $0xec] sm:$0xf] %vm1705_vm1, %v2044_v6 }
 0x1cc   :  { %1763 = vst.msk [vmem:[%s3211_s3 + $0xe4] sm:$0xf] %vm1705_vm1, %v2042_v33  ;;  %v1089_v44 = vpop.f32.mrb[92].mxu0  ;;  %v2149_v56 = vpop.f32.mrb[92].mxu1 }
 0x1cd   :  { %1751 = vst.msk [vmem:[%s3211_s3 + $0xb4] sm:$0xf] %vm1705_vm1, %v2030_v19  ;;  %v1090_v51 = vadd.f32 %v2820_v53, %v1089_v44  ;;  %v1443_v41 = vadd.f32 %v2149_v56, %v1154_v13  ;;  %v1091_v10 = vpop.f32.mrb[93].mxu0  ;;  %v1434_v36 = vpop.f32.mrb[93].mxu1 }
 0x1ce   :  { %v1435_v21 = vadd.f32 %v1434_v36, %v1146_v38  ;;  %v1092_v63 = vpop.f32.mrb[94].mxu0  ;;  %v2150_v31 = vpop.f32.mrb[94].mxu1 }
 0x1cf   :  { %v1379_v23 = vadd.f32 %v3044_v30, %v1090_v51  ;;  %v2047_v55 = vpack.c.bf16 %v1443_v41, %v1443_v41  ;;  %v1093_v48 = vadd.f32 %v2820_v53, %v1092_v63  ;;  %v1446_v4 = vadd.f32 %v2150_v31, %v1157_v17  ;;  %v1094_v22 = vpop.f32.mrb[95].mxu0  ;;  %v1437_v25 = vpop.f32.mrb[95].mxu1 }
 0x1d0   :  { %v2045_v29 = vpack.c.bf16 %v1435_v21, %v1435_v21  ;;  %v1438_v11 = vadd.f32 %v1437_v25, %v1149_v12 }
 0x1d1   :  { %v2031_v43 = vpack.c.bf16 %v1379_v23, %v1379_v23  ;;  %1768 = vst.msk [vmem:[%s3211_s3 + $0xf8] sm:$0xf] %vm1705_vm1, %v2047_v55  ;;  %v1382_v40 = vadd.f32 %v3053_v34, %v1093_v48  ;;  %v2048_v62 = vpack.c.bf16 %v1446_v4, %v1446_v4 }
 0x1d2   :  { %1766 = vst.msk [vmem:[%s3211_s3 + $0xf0] sm:$0xf] %vm1705_vm1, %v2045_v29  ;;  %v2046_v53 = vpack.c.bf16 %v1438_v11, %v1438_v11 }
 0x1d3   :  { %1752 = vst.msk [vmem:[%s3211_s3 + $0xb8] sm:$0xf] %vm1705_vm1, %v2031_v43  ;;  %v2032_v30 = vpack.c.bf16 %v1382_v40, %v1382_v40  ;;  %1769 = vst.msk [vmem:[%s3211_s3 + $0xfc] sm:$0xf] %vm1705_vm1, %v2048_v62 }
 0x1d4   :  { %1767 = vst.msk [vmem:[%s3211_s3 + $0xf4] sm:$0xf] %vm1705_vm1, %v2046_v53 }
 0x1d5   :  { %1753 = vst.msk [vmem:[%s3211_s3 + $0xbc] sm:$0xf] %vm1705_vm1, %v2032_v30 }

// kernel: inception_a_forward.7
= control target key start
LH: loop header
LB: loop body
LE: loop exit
PB: predicated region body
PF: predicated region fallthrough
CT: control target
= control target key end

     0   :  { %v1945_v0 = vmov 0   ;;  %vm774_vm0 = vcmask 261120   ;;  %s2811_s1 = inlined_call_operand.vmem [shape: bf16[288,32], index: 1, kind: input, shape index: {}]   ;;  %s2812_s0 = inlined_call_operand.vmem [shape: bf16[512,288], index: 0, kind: input, shape index: {}]   ;;  %s2813_s2 = inlined_call_operand.vmem [shape: f32[1,32], index: 2, kind: input, shape index: {}]   ;;  %s2814_s3 = inlined_call_operand.vmem [shape: f32[512,32], index: 3, kind: output, shape index: {}]  }
   0x1   :  { %871 = vmatprep.subr.bf16.mxu0 %v1945_v0  ;;  %1766 = vmatprep.subr.bf16.mxu1 %v1945_v0  ;;  %v1799_v1 = vld [vmem:[%s2811_s1] sm:$0xff]   ;;  %v1800_v2 = vld [vmem:[%s2811_s1 + $0x8] sm:$0xff]   ;;  %v1801_v3 = vld [vmem:[%s2811_s1 + $0x10] sm:$0xff]  }
   0x2   :  { %872 = vmatpush1.bf16.msra.mxu0 %v1799_v1  ;;  %1782 = vmatpush1.bf16.msra.mxu1 %v1799_v1  ;;  %v1802_v4 = vld [vmem:[%s2811_s1 + $0x18] sm:$0xff]   ;;  %v1803_v5 = vld [vmem:[%s2811_s1 + $0x20] sm:$0xff]   ;;  %v1804_v7 = vld [vmem:[%s2811_s1 + $0x28] sm:$0xff]  }
   0x3   :  { %873 = vmatprep.subr.bf16.mxu0 %v1945_v0  ;;  %1767 = vmatprep.subr.bf16.mxu1 %v1945_v0  ;;  %v1817_v6 = vld [vmem:[%s2812_s0 + $0x4] ss:$12 sps:$4 sm:$0xff]   ;;  %v1806_v10 = vld [vmem:[%s2811_s1 + $0x38] sm:$0xff]   ;;  %v1808_v12 = vld [vmem:[%s2811_s1 + $0x48] sm:$0xff]  }
   0x4   :  { %v1820_v8 = vld [vmem:[%s2812_s0 + $0x244] ss:$12 sps:$4 sm:$0xff]   ;;  %903 = vmatprep.mubr.bf16.mxu0 %v1817_v6  ;;  %v1810_v14 = vld [vmem:[%s2811_s1 + $0x58] sm:$0xff]   ;;  %v1812_v16 = vld [vmem:[%s2811_s1 + $0x68] sm:$0xff]  }
   0x5   :  { %1095 = vmatprep.mubr.bf16.mxu1 %v1820_v8  ;;  %v1805_v9 = vld [vmem:[%s2811_s1 + $0x30] sm:$0xff]   ;;  %v1807_v11 = vld [vmem:[%s2811_s1 + $0x40] sm:$0xff]   ;;  %v1814_v18 = vld [vmem:[%s2811_s1 + $0x78] sm:$0xff]  }
   0x6   :  { %874 = vmatpush1.bf16.msra.mxu0 %v1800_v2  ;;  %1783 = vmatpush1.bf16.msra.mxu1 %v1800_v2  ;;  %v1809_v13 = vld [vmem:[%s2811_s1 + $0x50] sm:$0xff]   ;;  %v1811_v15 = vld [vmem:[%s2811_s1 + $0x60] sm:$0xff]   ;;  %v1822_v22 = vld [vmem:[%s2812_s0 + $0x1c] ss:$12 sps:$4 sm:$0xff]  }
   0x7   :  { %875 = vmatprep.subr.bf16.mxu0 %v1945_v0  ;;  %1768 = vmatprep.subr.bf16.mxu1 %v1945_v0  ;;  %v1813_v17 = vld [vmem:[%s2811_s1 + $0x70] sm:$0xff]   ;;  %v1821_v19 = vld [vmem:[%s2811_s1 + $0x80] sm:$0xff]   ;;  %v1824_v23 = vld [vmem:[%s2812_s0 + $0x25c] ss:$12 sps:$4 sm:$0xff]  }
   0x8   :  { %v1815_v20 = vld [vmem:[%s2812_s0] ss:$12 sps:$4 sm:$0xff]   ;;  %v1826_v25 = vld [vmem:[%s2812_s0 + $0x18] ss:$12 sps:$4 sm:$0xff]   ;;  %v1832_v29 = vld [vmem:[%s2812_s0 + $0x30] ss:$12 sps:$4 sm:$0xff]  }
   0x9   :  { %v1818_v21 = vld [vmem:[%s2812_s0 + $0x240] ss:$12 sps:$4 sm:$0xff]   ;;  %v1827_v26 = vld [vmem:[%s2812_s0 + $0x258] ss:$12 sps:$4 sm:$0xff]   ;;  %v1833_v30 = vld [vmem:[%s2812_s0 + $0x270] ss:$12 sps:$4 sm:$0xff]  }
   0xa   :  { %876 = vmatpush1.bf16.msra.mxu0 %v1801_v3  ;;  %1784 = vmatpush1.bf16.msra.mxu1 %v1801_v3  ;;  %v1846_v24 = vld [vmem:[%s2811_s1 + $0x88] sm:$0xff]   ;;  %v1828_v27 = vld [vmem:[%s2812_s0 + $0x34] ss:$12 sps:$4 sm:$0xff]   ;;  %v1840_v35 = vld [vmem:[%s2812_s0 + $0x64] ss:$12 sps:$4 sm:$0xff]  }
   0xb   :  { %877 = vmatprep.subr.bf16.mxu0 %v1945_v0  ;;  %1769 = vmatprep.subr.bf16.mxu1 %v1945_v0  ;;  %v1830_v28 = vld [vmem:[%s2812_s0 + $0x274] ss:$12 sps:$4 sm:$0xff]   ;;  %v1834_v31 = vld [vmem:[%s2812_s0 + $0x4c] ss:$12 sps:$4 sm:$0xff]   ;;  %v1842_v36 = vld [vmem:[%s2812_s0 + $0x2a4] ss:$12 sps:$4 sm:$0xff]  }
   0xc   :  { %v1836_v32 = vld [vmem:[%s2812_s0 + $0x28c] ss:$12 sps:$4 sm:$0xff]   ;;  %v1838_v33 = vld [vmem:[%s2812_s0 + $0x48] ss:$12 sps:$4 sm:$0xff]   ;;  %v1857_v45 = vld [vmem:[%s2812_s0 + $0x90] ss:$12 sps:$4 sm:$0xff]  }
   0xd   :  { %v1839_v34 = vld [vmem:[%s2812_s0 + $0x288] ss:$12 sps:$4 sm:$0xff]   ;;  %v1844_v37 = vld [vmem:[%s2812_s0 + $0x60] ss:$12 sps:$4 sm:$0xff]   ;;  %v1851_v41 = vld [vmem:[%s2812_s0 + $0x78] ss:$12 sps:$4 sm:$0xff]  }
   0xe   :  { %878 = vmatpush1.bf16.msra.mxu0 %v1802_v4  ;;  %1785 = vmatpush1.bf16.msra.mxu1 %v1802_v4  ;;  %v1845_v38 = vld [vmem:[%s2812_s0 + $0x2a0] ss:$12 sps:$4 sm:$0xff]   ;;  %v1847_v39 = vld [vmem:[%s2812_s0 + $0x7c] ss:$12 sps:$4 sm:$0xff]   ;;  %v1852_v42 = vld [vmem:[%s2812_s0 + $0x2b8] ss:$12 sps:$4 sm:$0xff]  }
   0xf   :  { %879 = vmatprep.subr.bf16.mxu0 %v1945_v0  ;;  %1770 = vmatprep.subr.bf16.mxu1 %v1945_v0  ;;  %v1849_v40 = vld [vmem:[%s2812_s0 + $0x2bc] ss:$12 sps:$4 sm:$0xff]   ;;  %v1853_v43 = vld [vmem:[%s2812_s0 + $0x94] ss:$12 sps:$4 sm:$0xff]   ;;  %v1859_v47 = vld [vmem:[%s2812_s0 + $0xac] ss:$12 sps:$4 sm:$0xff]  }
  0x10   :  { %v1855_v44 = vld [vmem:[%s2812_s0 + $0x2d4] ss:$12 sps:$4 sm:$0xff]   ;;  %v1858_v46 = vld [vmem:[%s2812_s0 + $0x2d0] ss:$12 sps:$4 sm:$0xff]   ;;  %v1861_v48 = vld [vmem:[%s2812_s0 + $0x2ec] ss:$12 sps:$4 sm:$0xff]  }
  0x11   :  { %v1863_v49 = vld [vmem:[%s2812_s0 + $0xa8] ss:$12 sps:$4 sm:$0xff]   ;;  %v1865_v51 = vld [vmem:[%s2812_s0 + $0xc4] ss:$12 sps:$4 sm:$0xff]   ;;  %v1868_v53 = vld [vmem:[%s2812_s0 + $0xc0] ss:$12 sps:$4 sm:$0xff]  }
  0x12   :  { %880 = vmatpush1.bf16.msra.mxu0 %v1803_v5  ;;  %1786 = vmatpush1.bf16.msra.mxu1 %v1803_v5  ;;  %v1864_v50 = vld [vmem:[%s2812_s0 + $0x2e8] ss:$12 sps:$4 sm:$0xff]   ;;  %v1869_v54 = vld [vmem:[%s2812_s0 + $0x20] ss:$12 sps:$4 sm:$0xff]   ;;  %v1872_v56 = vld [vmem:[%s2812_s0 + $0x38] ss:$12 sps:$4 sm:$0xff]  }
  0x13   :  { %881 = vmatprep.subr.bf16.mxu0 %v1945_v0  ;;  %1771 = vmatprep.subr.bf16.mxu1 %v1945_v0  ;;  %v1867_v52 = vld [vmem:[%s2812_s0 + $0x8] ss:$12 sps:$4 sm:$0xff]   ;;  %v1873_v57 = vld [vmem:[%s2812_s0 + $0xd8] ss:$12 sps:$4 sm:$0xff]   ;;  %v1874_v58 = vld [vmem:[%s2812_s0 + $0x50] ss:$12 sps:$4 sm:$0xff]  }
  0x14   :  { %v1870_v55 = vld [vmem:[%s2812_s0 + $0xdc] ss:$12 sps:$4 sm:$0xff]   ;;  %v1875_v59 = vld [vmem:[%s2812_s0 + $0xf4] ss:$12 sps:$4 sm:$0xff]   ;;  %v1880_v63 = vld [vmem:[%s2812_s0 + $0x10c] ss:$12 sps:$4 sm:$0xff]  }
  0x15   :  { %v1877_v60 = vld [vmem:[%s2812_s0 + $0x68] ss:$12 sps:$4 sm:$0xff]   ;;  %v1878_v61 = vld [vmem:[%s2812_s0 + $0xf0] ss:$12 sps:$4 sm:$0xff]   ;;  %v1879_v62 = vld [vmem:[%s2812_s0 + $0x80] ss:$12 sps:$4 sm:$0xff]  }
  0x16   :  { %882 = vmatpush1.bf16.msra.mxu0 %v1804_v7  ;;  %1787 = vmatpush1.bf16.msra.mxu1 %v1804_v7  ;;  %v1883_v1 = vld [vmem:[%s2812_s0 + $0x108] ss:$12 sps:$4 sm:$0xff]   ;;  %v1884_v2 = vld [vmem:[%s2812_s0 + $0xb0] ss:$12 sps:$4 sm:$0xff]   ;;  %v1888_v5 = vld [vmem:[%s2812_s0 + $0x120] ss:$12 sps:$4 sm:$0xff]  }
  0x17   :  { %883 = vmatprep.subr.bf16.mxu0 %v1945_v0  ;;  %1772 = vmatprep.subr.bf16.mxu1 %v1945_v0  ;;  %v1885_v3 = vld [vmem:[%s2812_s0 + $0x124] ss:$12 sps:$4 sm:$0xff]   ;;  %v1887_v4 = vld [vmem:[%s2812_s0 + $0xc8] ss:$12 sps:$4 sm:$0xff]   ;;  %v1889_v6 = vld [vmem:[%s2812_s0 + $0xe0] ss:$12 sps:$4 sm:$0xff]  }
  0x18   :  { %v1890_v7 = vld [vmem:[%s2812_s0 + $0x13c] ss:$12 sps:$4 sm:$0xff]   ;;  %v1892_v8 = vld [vmem:[%s2812_s0 + $0xf8] ss:$12 sps:$4 sm:$0xff]  }
  0x1a   :  { %884 = vmatpush1.bf16.msra.mxu0 %v1805_v9  ;;  %1788 = vmatpush1.bf16.msra.mxu1 %v1805_v9  ;;  %v1893_v9 = vld [vmem:[%s2812_s0 + $0x138] ss:$12 sps:$4 sm:$0xff]  }
  0x1b   :  { %885 = vmatprep.subr.bf16.mxu0 %v1945_v0  ;;  %1773 = vmatprep.subr.bf16.mxu1 %v1945_v0 }
  0x1e   :  { %886 = vmatpush1.bf16.msra.mxu0 %v1806_v10  ;;  %1789 = vmatpush1.bf16.msra.mxu1 %v1806_v10  ;;  %v1894_v10 = vld [vmem:[%s2812_s0 + $0x110] ss:$12 sps:$4 sm:$0xff]  }
  0x1f   :  { %887 = vmatprep.subr.bf16.mxu0 %v1945_v0  ;;  %1774 = vmatprep.subr.bf16.mxu1 %v1945_v0 }
  0x22   :  { %888 = vmatpush1.bf16.msra.mxu0 %v1807_v11  ;;  %1790 = vmatpush1.bf16.msra.mxu1 %v1807_v11  ;;  %v1895_v11 = vld [vmem:[%s2812_s0 + $0x154] ss:$12 sps:$4 sm:$0xff]  }
  0x23   :  { %889 = vmatprep.subr.bf16.mxu0 %v1945_v0  ;;  %1775 = vmatprep.subr.bf16.mxu1 %v1945_v0 }
  0x26   :  { %890 = vmatpush1.bf16.msra.mxu0 %v1808_v12  ;;  %1791 = vmatpush1.bf16.msra.mxu1 %v1808_v12  ;;  %v1897_v12 = vld [vmem:[%s2812_s0 + $0x128] ss:$12 sps:$4 sm:$0xff]  }
  0x27   :  { %891 = vmatprep.subr.bf16.mxu0 %v1945_v0  ;;  %1776 = vmatprep.subr.bf16.mxu1 %v1945_v0 }
  0x2a   :  { %892 = vmatpush1.bf16.msra.mxu0 %v1809_v13  ;;  %1792 = vmatpush1.bf16.msra.mxu1 %v1809_v13  ;;  %v1898_v13 = vld [vmem:[%s2812_s0 + $0x150] ss:$12 sps:$4 sm:$0xff]  }
  0x2b   :  { %893 = vmatprep.subr.bf16.mxu0 %v1945_v0  ;;  %1777 = vmatprep.subr.bf16.mxu1 %v1945_v0 }
  0x2e   :  { %894 = vmatpush1.bf16.msra.mxu0 %v1810_v14  ;;  %1793 = vmatpush1.bf16.msra.mxu1 %v1810_v14  ;;  %v1899_v14 = vld [vmem:[%s2812_s0 + $0x140] ss:$12 sps:$4 sm:$0xff]  }
  0x2f   :  { %895 = vmatprep.subr.bf16.mxu0 %v1945_v0  ;;  %1778 = vmatprep.subr.bf16.mxu1 %v1945_v0 }
  0x32   :  { %896 = vmatpush1.bf16.msra.mxu0 %v1811_v15  ;;  %1794 = vmatpush1.bf16.msra.mxu1 %v1811_v15  ;;  %v1900_v15 = vld [vmem:[%s2812_s0 + $0x16c] ss:$12 sps:$4 sm:$0xff]  }
  0x33   :  { %897 = vmatprep.subr.bf16.mxu0 %v1945_v0  ;;  %1779 = vmatprep.subr.bf16.mxu1 %v1945_v0 }
  0x36   :  { %898 = vmatpush1.bf16.msra.mxu0 %v1812_v16  ;;  %1795 = vmatpush1.bf16.msra.mxu1 %v1812_v16  ;;  %v1902_v16 = vld [vmem:[%s2812_s0 + $0x158] ss:$12 sps:$4 sm:$0xff]  }
  0x37   :  { %899 = vmatprep.subr.bf16.mxu0 %v1945_v0  ;;  %1780 = vmatprep.subr.bf16.mxu1 %v1945_v0 }
  0x3a   :  { %900 = vmatpush1.bf16.msra.mxu0 %v1813_v17  ;;  %1796 = vmatpush1.bf16.msra.mxu1 %v1813_v17  ;;  %v1903_v17 = vld [vmem:[%s2812_s0 + $0x168] ss:$12 sps:$4 sm:$0xff]  }
  0x3b   :  { %901 = vmatprep.subr.bf16.mxu0 %v1945_v0  ;;  %1781 = vmatprep.subr.bf16.mxu1 %v1945_v0  ;;  %v1882_v0 = vld [vmem:[%s2812_s0 + $0x98] ss:$12 sps:$4 sm:$0xff]  }
  0x3e   :  { %902 = vmatpush1.bf16.msra.mxu0 %v1814_v18  ;;  %1797 = vmatpush1.bf16.msra.mxu1 %v1814_v18  ;;  %v1904_v18 = vld [vmem:[%s2812_s0 + $0x170] ss:$12 sps:$4 sm:$0xff]  }
  0x3f   :  { %1698 = vmatprep.subr.bf16.mxu1 %v1821_v19 }
  0x41   :  { %904 = vmatmul.mubr.bf16.vlgmr.msra.gmra.mrb[0].mxu0 %v1815_v20  ;;  %1096 = vmatmul.mubr.bf16.vlgmr.msra.gmra.mrb[0].mxu1 %v1818_v21  ;;  %v1907_v20 = vld [vmem:[%s2812_s0 + $0x188] ss:$12 sps:$4 sm:$0xff]   ;;  %v1908_v21 = vld [vmem:[%s2812_s0 + $0x180] ss:$12 sps:$4 sm:$0xff]  }
  0x42   :  { %1699 = vmatpush3.bf16.msra.mxu1 %v1821_v19  ;;  %911 = vmatprep.mubr.bf16.mxu0 %v1822_v22  ;;  %v1905_v19 = vld [vmem:[%s2812_s0 + $0x184] ss:$12 sps:$4 sm:$0xff]   ;;  %v1909_v22 = vld [vmem:[%s2812_s0 + $0x1a0] ss:$12 sps:$4 sm:$0xff]  }
  0x43   :  { %1103 = vmatprep.mubr.bf16.mxu1 %v1824_v23  ;;  %1700 = vmatprep.subr.bf16.mxu1 %v1846_v24  ;;  %v1910_v23 = vld [vmem:[%s2812_s0 + $0x19c] ss:$12 sps:$4 sm:$0xff]  }
  0x46   :  { %1701 = vmatpush3.bf16.msra.mxu1 %v1846_v24  ;;  %v1912_v24 = vld [vmem:[%s2812_s0 + $0x1b8] ss:$12 sps:$4 sm:$0xff]  }
  0x49   :  { %912 = vmatmul.mubr.bf16.gmra.mrb[4].mxu0 %v1826_v25  ;;  %1104 = vmatmul.mubr.bf16.gmra.mrb[4].mxu1 %v1827_v26  ;;  %v1913_v25 = vld [vmem:[%s2812_s0 + $0x198] ss:$12 sps:$4 sm:$0xff]   ;;  %v1914_v26 = vld [vmem:[%s2812_s0 + $0x1d0] ss:$12 sps:$4 sm:$0xff]  }
  0x4a   :  { %919 = vmatprep.mubr.bf16.mxu0 %v1828_v27  ;;  %1111 = vmatprep.mubr.bf16.mxu1 %v1830_v28  ;;  %v1915_v27 = vld [vmem:[%s2812_s0 + $0x1b4] ss:$12 sps:$4 sm:$0xff]  }
  0x4b   :  { %v1917_v28 = vld [vmem:[%s2812_s0 + $0x1e8] ss:$12 sps:$4 sm:$0xff]  }
  0x51   :  { %920 = vmatmul.mubr.bf16.gmra.mrb[8].mxu0 %v1832_v29  ;;  %1112 = vmatmul.mubr.bf16.gmra.mrb[8].mxu1 %v1833_v30  ;;  %v1918_v29 = vld [vmem:[%s2812_s0 + $0x1b0] ss:$12 sps:$4 sm:$0xff]   ;;  %v1919_v30 = vld [vmem:[%s2812_s0 + $0x200] ss:$12 sps:$4 sm:$0xff]  }
  0x52   :  { %927 = vmatprep.mubr.bf16.mxu0 %v1834_v31  ;;  %1119 = vmatprep.mubr.bf16.mxu1 %v1836_v32  ;;  %v1920_v31 = vld [vmem:[%s2812_s0 + $0x1cc] ss:$12 sps:$4 sm:$0xff]  }
  0x53   :  { %v1922_v32 = vld [vmem:[%s2812_s0 + $0x218] ss:$12 sps:$4 sm:$0xff]  }
  0x59   :  { %928 = vmatmul.mubr.bf16.gmra.mrb[12].mxu0 %v1838_v33  ;;  %1120 = vmatmul.mubr.bf16.gmra.mrb[12].mxu1 %v1839_v34  ;;  %v1923_v33 = vld [vmem:[%s2812_s0 + $0x1c8] ss:$12 sps:$4 sm:$0xff]   ;;  %v1924_v34 = vld [vmem:[%s2812_s0 + $0x230] ss:$12 sps:$4 sm:$0xff]  }
  0x5a   :  { %935 = vmatprep.mubr.bf16.mxu0 %v1840_v35  ;;  %1127 = vmatprep.mubr.bf16.mxu1 %v1842_v36  ;;  %v1925_v35 = vld [vmem:[%s2812_s0 + $0x1e4] ss:$12 sps:$4 sm:$0xff]   ;;  %v1927_v36 = vld [vmem:[%s2812_s0 + $0x248] ss:$12 sps:$4 sm:$0xff]  }
  0x61   :  { %936 = vmatmul.mubr.bf16.gmra.mrb[16].mxu0 %v1844_v37  ;;  %1128 = vmatmul.mubr.bf16.gmra.mrb[16].mxu1 %v1845_v38  ;;  %v1928_v37 = vld [vmem:[%s2812_s0 + $0x1e0] ss:$12 sps:$4 sm:$0xff]  }
  0x62   :  { %943 = vmatprep.mubr.bf16.mxu0 %v1847_v39  ;;  %1135 = vmatprep.mubr.bf16.mxu1 %v1849_v40  ;;  %v1929_v38 = vld [vmem:[%s2812_s0 + $0x260] ss:$12 sps:$4 sm:$0xff]   ;;  %v1930_v39 = vld [vmem:[%s2812_s0 + $0x1fc] ss:$12 sps:$4 sm:$0xff]   ;;  %v1932_v40 = vld [vmem:[%s2812_s0 + $0x278] ss:$12 sps:$4 sm:$0xff]  }
  0x69   :  { %944 = vmatmul.mubr.bf16.gmra.mrb[20].mxu0 %v1851_v41  ;;  %1136 = vmatmul.mubr.bf16.gmra.mrb[20].mxu1 %v1852_v42  ;;  %v1933_v41 = vld [vmem:[%s2812_s0 + $0x1f8] ss:$12 sps:$4 sm:$0xff]   ;;  %v1934_v42 = vld [vmem:[%s2812_s0 + $0x290] ss:$12 sps:$4 sm:$0xff]  }
  0x6a   :  { %951 = vmatprep.mubr.bf16.mxu0 %v1853_v43  ;;  %1143 = vmatprep.mubr.bf16.mxu1 %v1855_v44  ;;  %v1935_v43 = vld [vmem:[%s2812_s0 + $0x214] ss:$12 sps:$4 sm:$0xff]  }
  0x6b   :  { %v1937_v44 = vld [vmem:[%s2812_s0 + $0x2a8] ss:$12 sps:$4 sm:$0xff]  }
  0x71   :  { %952 = vmatmul.mubr.bf16.gmra.mrb[24].mxu0 %v1857_v45  ;;  %1144 = vmatmul.mubr.bf16.gmra.mrb[24].mxu1 %v1858_v46  ;;  %v1938_v45 = vld [vmem:[%s2812_s0 + $0x210] ss:$12 sps:$4 sm:$0xff]   ;;  %v1939_v46 = vld [vmem:[%s2812_s0 + $0x2c0] ss:$12 sps:$4 sm:$0xff]  }
  0x72   :  { %959 = vmatprep.mubr.bf16.mxu0 %v1859_v47  ;;  %1151 = vmatprep.mubr.bf16.mxu1 %v1861_v48  ;;  %v1940_v47 = vld [vmem:[%s2812_s0 + $0x22c] ss:$12 sps:$4 sm:$0xff]  }
  0x73   :  { %v1942_v48 = vld [vmem:[%s2812_s0 + $0x2d8] ss:$12 sps:$4 sm:$0xff]  }
  0x79   :  { %960 = vmatmul.mubr.bf16.gmra.mrb[28].mxu0 %v1863_v49  ;;  %1152 = vmatmul.mubr.bf16.gmra.mrb[28].mxu1 %v1864_v50  ;;  %v1943_v49 = vld [vmem:[%s2812_s0 + $0x228] ss:$12 sps:$4 sm:$0xff]   ;;  %v1944_v50 = vld [vmem:[%s2812_s0 + $0x2f0] ss:$12 sps:$4 sm:$0xff]  }
  0x7a   :  { %967 = vmatprep.mubr.bf16.mxu0 %v1865_v51  ;;  %1702 = vmatprep.mubr.msk.bf16.mxu1 %vm774_vm0, %v1867_v52 }
  0x81   :  { %968 = vmatmul.mubr.bf16.gmra.mrb[32].mxu0 %v1868_v53  ;;  %1703 = vmatmul.mubr.msk.bf16.vlgmr.msra.gmra.mrb[32].mxu1 %vm774_vm0, %v1869_v54 }
  0x82   :  { %975 = vmatprep.mubr.bf16.mxu0 %v1870_v55  ;;  %1706 = vmatprep.mubr.msk.bf16.mxu1 %vm774_vm0, %v1872_v56 }
  0x89   :  { %976 = vmatmul.mubr.bf16.gmra.mrb[36].mxu0 %v1873_v57  ;;  %1707 = vmatmul.mubr.msk.bf16.gmra.mrb[36].mxu1 %vm774_vm0, %v1874_v58 }
  0x8a   :  { %983 = vmatprep.mubr.bf16.mxu0 %v1875_v59  ;;  %1710 = vmatprep.mubr.msk.bf16.mxu1 %vm774_vm0, %v1877_v60 }
  0x91   :  { %984 = vmatmul.mubr.bf16.gmra.mrb[40].mxu0 %v1878_v61  ;;  %1711 = vmatmul.mubr.msk.bf16.gmra.mrb[40].mxu1 %vm774_vm0, %v1879_v62 }
  0x92   :  { %991 = vmatprep.mubr.bf16.mxu0 %v1880_v63  ;;  %1714 = vmatprep.mubr.msk.bf16.mxu1 %vm774_vm0, %v1882_v0 }
  0x99   :  { %992 = vmatmul.mubr.bf16.gmra.mrb[44].mxu0 %v1883_v1  ;;  %1715 = vmatmul.mubr.msk.bf16.gmra.mrb[44].mxu1 %vm774_vm0, %v1884_v2 }
  0x9a   :  { %999 = vmatprep.mubr.bf16.mxu0 %v1885_v3  ;;  %1718 = vmatprep.mubr.msk.bf16.mxu1 %vm774_vm0, %v1887_v4 }
  0xa1   :  { %1000 = vmatmul.mubr.bf16.gmra.mrb[48].mxu0 %v1888_v5  ;;  %1719 = vmatmul.mubr.msk.bf16.gmra.mrb[48].mxu1 %vm774_vm0, %v1889_v6 }
  0xa2   :  { %1007 = vmatprep.mubr.bf16.mxu0 %v1890_v7  ;;  %1722 = vmatprep.mubr.msk.bf16.mxu1 %vm774_vm0, %v1892_v8 }
  0xa9   :  { %1008 = vmatmul.mubr.bf16.gmra.mrb[52].mxu0 %v1893_v9  ;;  %1723 = vmatmul.mubr.msk.bf16.gmra.mrb[52].mxu1 %vm774_vm0, %v1894_v10 }
  0xaa   :  { %1015 = vmatprep.mubr.bf16.mxu0 %v1895_v11  ;;  %1726 = vmatprep.mubr.msk.bf16.mxu1 %vm774_vm0, %v1897_v12 }
  0xb1   :  { %1016 = vmatmul.mubr.bf16.gmra.mrb[56].mxu0 %v1898_v13  ;;  %1727 = vmatmul.mubr.msk.bf16.gmra.mrb[56].mxu1 %vm774_vm0, %v1899_v14 }
  0xb2   :  { %1023 = vmatprep.mubr.bf16.mxu0 %v1900_v15  ;;  %1730 = vmatprep.mubr.msk.bf16.mxu1 %vm774_vm0, %v1902_v16 }
  0xb9   :  { %1024 = vmatmul.mubr.bf16.gmra.mrb[60].mxu0 %v1903_v17  ;;  %1731 = vmatmul.mubr.msk.bf16.gmra.mrb[60].mxu1 %vm774_vm0, %v1904_v18 }
  0xba   :  { %1031 = vmatprep.mubr.bf16.mxu0 %v1905_v19  ;;  %1734 = vmatprep.mubr.msk.bf16.mxu1 %vm774_vm0, %v1907_v20 }
  0xc1   :  { %1032 = vmatmul.mubr.bf16.gmra.mrb[64].mxu0 %v1908_v21  ;;  %1735 = vmatmul.mubr.msk.bf16.gmra.mrb[64].mxu1 %vm774_vm0, %v1909_v22 }
  0xc2   :  { %1039 = vmatprep.mubr.bf16.mxu0 %v1910_v23  ;;  %1738 = vmatprep.mubr.msk.bf16.mxu1 %vm774_vm0, %v1912_v24 }
  0xc9   :  { %1040 = vmatmul.mubr.bf16.gmra.mrb[68].mxu0 %v1913_v25  ;;  %1739 = vmatmul.mubr.msk.bf16.gmra.mrb[68].mxu1 %vm774_vm0, %v1914_v26 }
  0xca   :  { %1047 = vmatprep.mubr.bf16.mxu0 %v1915_v27  ;;  %1742 = vmatprep.mubr.msk.bf16.mxu1 %vm774_vm0, %v1917_v28 }
  0xd1   :  { %1048 = vmatmul.mubr.bf16.gmra.mrb[72].mxu0 %v1918_v29  ;;  %1743 = vmatmul.mubr.msk.bf16.gmra.mrb[72].mxu1 %vm774_vm0, %v1919_v30 }
  0xd2   :  { %1055 = vmatprep.mubr.bf16.mxu0 %v1920_v31  ;;  %1746 = vmatprep.mubr.msk.bf16.mxu1 %vm774_vm0, %v1922_v32 }
  0xd9   :  { %1056 = vmatmul.mubr.bf16.gmra.mrb[76].mxu0 %v1923_v33  ;;  %1747 = vmatmul.mubr.msk.bf16.gmra.mrb[76].mxu1 %vm774_vm0, %v1924_v34 }
  0xda   :  { %1063 = vmatprep.mubr.bf16.mxu0 %v1925_v35  ;;  %1750 = vmatprep.mubr.msk.bf16.mxu1 %vm774_vm0, %v1927_v36 }
  0xe1   :  { %1064 = vmatmul.mubr.bf16.gmra.mrb[80].mxu0 %v1928_v37  ;;  %1751 = vmatmul.mubr.msk.bf16.gmra.mrb[80].mxu1 %vm774_vm0, %v1929_v38 }
  0xe2   :  { %1071 = vmatprep.mubr.bf16.mxu0 %v1930_v39  ;;  %1754 = vmatprep.mubr.msk.bf16.mxu1 %vm774_vm0, %v1932_v40 }
  0xe9   :  { %1072 = vmatmul.mubr.bf16.gmra.mrb[84].mxu0 %v1933_v41  ;;  %1755 = vmatmul.mubr.msk.bf16.gmra.mrb[84].mxu1 %vm774_vm0, %v1934_v42 }
  0xea   :  { %1079 = vmatprep.mubr.bf16.mxu0 %v1935_v43  ;;  %1758 = vmatprep.mubr.msk.bf16.mxu1 %vm774_vm0, %v1937_v44 }
  0xf1   :  { %1080 = vmatmul.mubr.bf16.gmra.mrb[88].mxu0 %v1938_v45  ;;  %1759 = vmatmul.mubr.msk.bf16.gmra.mrb[88].mxu1 %vm774_vm0, %v1939_v46 }
  0xf2   :  { %1087 = vmatprep.mubr.bf16.mxu0 %v1940_v47  ;;  %1762 = vmatprep.mubr.msk.bf16.mxu1 %vm774_vm0, %v1942_v48 }
  0xf9   :  { %1088 = vmatmul.mubr.bf16.gmra.mrb[92].mxu0 %v1943_v49  ;;  %1763 = vmatmul.mubr.msk.bf16.gmra.mrb[92].mxu1 %vm774_vm0, %v1944_v50 }
 0x114   :  { %v2372_v51 = vpop.f32.mrb[0].mxu0  ;;  %v2374_v52 = vpop.f32.mrb[0].mxu1 }
 0x115   :  { %v907_v53 = vpop.f32.mrb[1].mxu0  ;;  %v1099_v54 = vpop.f32.mrb[1].mxu1 }
 0x116   :  { %v2376_v55 = vpop.f32.mrb[2].mxu0  ;;  %v2378_v56 = vpop.f32.mrb[2].mxu1  ;;  %v2435_v53 = vld [vmem:[%s2813_s2] ss:$0 sm:$0xff] }
 0x117   :  { %v910_v57 = vpop.f32.mrb[3].mxu0  ;;  %v1102_v58 = vpop.f32.mrb[3].mxu1 }
 0x118   :  { %v906_v57 = vadd.f32 %v2435_v53, %v2372_v51 }
 0x11c   :  { %v913_v59 = vpop.f32.mrb[4].mxu0  ;;  %v2380_v60 = vpop.f32.mrb[4].mxu1 }
 0x11d   :  { %v915_v61 = vpop.f32.mrb[5].mxu0  ;;  %v1107_v62 = vpop.f32.mrb[5].mxu1  ;;  %v914_v54 = vadd.f32 %v2435_v53, %v913_v59 }
 0x11e   :  { %v916_v63 = vpop.f32.mrb[6].mxu0  ;;  %v2382_v0 = vpop.f32.mrb[6].mxu1 }
 0x11f   :  { %v918_v1 = vpop.f32.mrb[7].mxu0  ;;  %v1110_v2 = vpop.f32.mrb[7].mxu1  ;;  %v917_v62 = vadd.f32 %v2435_v53, %v916_v63 }
 0x124   :  { %v2384_v3 = vpop.f32.mrb[8].mxu0  ;;  %v2386_v4 = vpop.f32.mrb[8].mxu1 }
 0x125   :  { %v923_v5 = vpop.f32.mrb[9].mxu0  ;;  %v1115_v6 = vpop.f32.mrb[9].mxu1 }
 0x126   :  { %v2388_v7 = vpop.f32.mrb[10].mxu0  ;;  %v2390_v8 = vpop.f32.mrb[10].mxu1  ;;  %v909_v6 = vadd.f32 %v2435_v53, %v2376_v55 }
 0x127   :  { %v926_v9 = vpop.f32.mrb[11].mxu0  ;;  %v1118_v10 = vpop.f32.mrb[11].mxu1 }
 0x12c   :  { %v2392_v11 = vpop.f32.mrb[12].mxu0  ;;  %v2394_v12 = vpop.f32.mrb[12].mxu1 }
 0x12d   :  { %v931_v13 = vpop.f32.mrb[13].mxu0  ;;  %v1123_v14 = vpop.f32.mrb[13].mxu1  ;;  %v930_v55 = vadd.f32 %v2435_v53, %v2392_v11 }
 0x12e   :  { %v2396_v15 = vpop.f32.mrb[14].mxu0  ;;  %v2398_v16 = vpop.f32.mrb[14].mxu1 }
 0x12f   :  { %v934_v17 = vpop.f32.mrb[15].mxu0  ;;  %v1126_v18 = vpop.f32.mrb[15].mxu1 }
 0x130   :  { %v922_v17 = vadd.f32 %v2435_v53, %v2384_v3 }
 0x134   :  { %v2400_v19 = vpop.f32.mrb[16].mxu0  ;;  %v2402_v20 = vpop.f32.mrb[16].mxu1 }
 0x135   :  { %v939_v21 = vpop.f32.mrb[17].mxu0  ;;  %v1131_v22 = vpop.f32.mrb[17].mxu1 }
 0x136   :  { %v2404_v23 = vpop.f32.mrb[18].mxu0  ;;  %v2406_v24 = vpop.f32.mrb[18].mxu1  ;;  %v933_v22 = vadd.f32 %v2435_v53, %v2396_v15 }
 0x137   :  { %v942_v25 = vpop.f32.mrb[19].mxu0  ;;  %v1134_v26 = vpop.f32.mrb[19].mxu1 }
 0x13c   :  { %v2408_v27 = vpop.f32.mrb[20].mxu0  ;;  %v2410_v28 = vpop.f32.mrb[20].mxu1 }
 0x13d   :  { %v947_v29 = vpop.f32.mrb[21].mxu0  ;;  %v1139_v30 = vpop.f32.mrb[21].mxu1 }
 0x13e   :  { %v2412_v31 = vpop.f32.mrb[22].mxu0  ;;  %v2414_v32 = vpop.f32.mrb[22].mxu1  ;;  %v925_v30 = vadd.f32 %v2435_v53, %v2388_v7  ;;  %v946_v7 = vadd.f32 %v2435_v53, %v2408_v27 }
 0x13f   :  { %v950_v33 = vpop.f32.mrb[23].mxu0  ;;  %v1142_v34 = vpop.f32.mrb[23].mxu1 }
 0x144   :  { %v2416_v35 = vpop.f32.mrb[24].mxu0  ;;  %v2418_v36 = vpop.f32.mrb[24].mxu1 }
 0x145   :  { %v955_v37 = vpop.f32.mrb[25].mxu0  ;;  %v1147_v38 = vpop.f32.mrb[25].mxu1 }
 0x146   :  { %v2420_v39 = vpop.f32.mrb[26].mxu0  ;;  %v2422_v40 = vpop.f32.mrb[26].mxu1 }
 0x147   :  { %v958_v41 = vpop.f32.mrb[27].mxu0  ;;  %v1150_v42 = vpop.f32.mrb[27].mxu1 }
 0x148   :  { %v938_v41 = vadd.f32 %v2435_v53, %v2400_v19 }
 0x14c   :  { %v2424_v43 = vpop.f32.mrb[28].mxu0  ;;  %v2426_v44 = vpop.f32.mrb[28].mxu1 }
 0x14d   :  { %v963_v45 = vpop.f32.mrb[29].mxu0  ;;  %v1155_v46 = vpop.f32.mrb[29].mxu1 }
 0x14e   :  { %v2428_v47 = vpop.f32.mrb[30].mxu0  ;;  %v2430_v48 = vpop.f32.mrb[30].mxu1  ;;  %v949_v46 = vadd.f32 %v2435_v53, %v2412_v31 }
 0x14f   :  { %v966_v49 = vpop.f32.mrb[31].mxu0  ;;  %v1158_v50 = vpop.f32.mrb[31].mxu1 }
 0x154   :  { %v2440_v58 = vpop.f32.mrb[32].mxu0  ;;  %v1704_v61 = vpop.f32.mrb[32].mxu1 }
 0x155   :  { %v1203_v1 = vadd.f32 %v1704_v61, %v914_v54  ;;  %v971_v2 = vpop.f32.mrb[33].mxu0  ;;  %v1194_v5 = vpop.f32.mrb[33].mxu1 }
 0x156   :  { %v1195_v9 = vadd.f32 %v1194_v5, %v906_v57  ;;  %v2445_v10 = vpop.f32.mrb[34].mxu0  ;;  %v1705_v13 = vpop.f32.mrb[34].mxu1  ;;  %v941_v57 = vadd.f32 %v2435_v53, %v2404_v23  ;;  %v962_v23 = vadd.f32 %v2435_v53, %v2424_v43  ;;  %v954_v5 = vadd.f32 %v2435_v53, %v2416_v35 }
 0x157   :  { %1451 = vst.msk [vmem:[%s2814_s3 + $0x10] sm:$0xff] %vm774_vm0, %v1203_v1  ;;  %v1206_v51 = vadd.f32 %v1705_v13, %v917_v62  ;;  %v974_v59 = vpop.f32.mrb[35].mxu0  ;;  %v1197_v14 = vpop.f32.mrb[35].mxu1  ;;  %v965_v13 = vadd.f32 %v2435_v53, %v2428_v47 }
 0x158   :  { %1449 = vst.msk [vmem:[%s2814_s3] sm:$0xff] %vm774_vm0, %v1195_v9  ;;  %v1198_v63 = vadd.f32 %v1197_v14, %v909_v6 }
 0x159   :  { %1452 = vst.msk [vmem:[%s2814_s3 + $0x18] sm:$0xff] %vm774_vm0, %v1206_v51 }
 0x15a   :  { %1450 = vst.msk [vmem:[%s2814_s3 + $0x8] sm:$0xff] %vm774_vm0, %v1198_v63  ;;  %v957_v63 = vadd.f32 %v2435_v53, %v2420_v39 }
 0x15c   :  { %v977_v18 = vpop.f32.mrb[36].mxu0  ;;  %v1708_v21 = vpop.f32.mrb[36].mxu1 }
 0x15d   :  { %v1219_v25 = vadd.f32 %v1708_v21, %v930_v55  ;;  %v979_v26 = vpop.f32.mrb[37].mxu0  ;;  %v1210_v29 = vpop.f32.mrb[37].mxu1  ;;  %v978_v39 = vadd.f32 %v2435_v53, %v977_v18 }
 0x15e   :  { %v1211_v33 = vadd.f32 %v1210_v29, %v922_v17  ;;  %v980_v34 = vpop.f32.mrb[38].mxu0  ;;  %v1709_v37 = vpop.f32.mrb[38].mxu1 }
 0x15f   :  { %1455 = vst.msk [vmem:[%s2814_s3 + $0x30] sm:$0xff] %vm774_vm0, %v1219_v25  ;;  %v1222_v3 = vadd.f32 %v1709_v37, %v933_v22  ;;  %v982_v11 = vpop.f32.mrb[39].mxu0  ;;  %v1213_v38 = vpop.f32.mrb[39].mxu1  ;;  %v970_v25 = vadd.f32 %v2435_v53, %v2440_v58 }
 0x160   :  { %1453 = vst.msk [vmem:[%s2814_s3 + $0x20] sm:$0xff] %vm774_vm0, %v1211_v33  ;;  %v1214_v15 = vadd.f32 %v1213_v38, %v925_v30  ;;  %v981_v30 = vadd.f32 %v2435_v53, %v980_v34  ;;  %v973_v11 = vadd.f32 %v2435_v53, %v2445_v10 }
 0x161   :  { %1456 = vst.msk [vmem:[%s2814_s3 + $0x38] sm:$0xff] %vm774_vm0, %v1222_v3 }
 0x162   :  { %1454 = vst.msk [vmem:[%s2814_s3 + $0x28] sm:$0xff] %vm774_vm0, %v1214_v15 }
 0x164   :  { %v985_v42 = vpop.f32.mrb[40].mxu0  ;;  %v1712_v45 = vpop.f32.mrb[40].mxu1 }
 0x165   :  { %v1235_v49 = vadd.f32 %v1712_v45, %v946_v7  ;;  %v987_v50 = vpop.f32.mrb[41].mxu0  ;;  %v1226_v54 = vpop.f32.mrb[41].mxu1  ;;  %v986_v45 = vadd.f32 %v2435_v53, %v985_v42 }
 0x166   :  { %v1227_v61 = vadd.f32 %v1226_v54, %v938_v41  ;;  %v988_v62 = vpop.f32.mrb[42].mxu0  ;;  %v1713_v1 = vpop.f32.mrb[42].mxu1 }
 0x167   :  { %1459 = vst.msk [vmem:[%s2814_s3 + $0x50] sm:$0xff] %vm774_vm0, %v1235_v49  ;;  %v1238_v19 = vadd.f32 %v1713_v1, %v949_v46  ;;  %v990_v27 = vpop.f32.mrb[43].mxu0  ;;  %v1229_v2 = vpop.f32.mrb[43].mxu1  ;;  %v989_v1 = vadd.f32 %v2435_v53, %v988_v62 }
 0x168   :  { %1457 = vst.msk [vmem:[%s2814_s3 + $0x40] sm:$0xff] %vm774_vm0, %v1227_v61  ;;  %v1230_v31 = vadd.f32 %v1229_v2, %v941_v57 }
 0x169   :  { %1460 = vst.msk [vmem:[%s2814_s3 + $0x58] sm:$0xff] %vm774_vm0, %v1238_v19 }
 0x16a   :  { %1458 = vst.msk [vmem:[%s2814_s3 + $0x48] sm:$0xff] %vm774_vm0, %v1230_v31 }
 0x16c   :  { %v993_v6 = vpop.f32.mrb[44].mxu0  ;;  %v1716_v9 = vpop.f32.mrb[44].mxu1 }
 0x16d   :  { %v1251_v51 = vadd.f32 %v1716_v9, %v962_v23  ;;  %v995_v59 = vpop.f32.mrb[45].mxu0  ;;  %v1242_v14 = vpop.f32.mrb[45].mxu1  ;;  %v994_v10 = vadd.f32 %v2435_v53, %v993_v6 }
 0x16e   :  { %v1243_v55 = vadd.f32 %v1242_v14, %v954_v5  ;;  %v996_v17 = vpop.f32.mrb[46].mxu0  ;;  %v1717_v21 = vpop.f32.mrb[46].mxu1 }
 0x16f   :  { %1463 = vst.msk [vmem:[%s2814_s3 + $0x70] sm:$0xff] %vm774_vm0, %v1251_v51  ;;  %v1254_v35 = vadd.f32 %v1717_v21, %v965_v13  ;;  %v998_v43 = vpop.f32.mrb[47].mxu0  ;;  %v1245_v22 = vpop.f32.mrb[47].mxu1  ;;  %v997_v50 = vadd.f32 %v2435_v53, %v996_v17 }
 0x170   :  { %1461 = vst.msk [vmem:[%s2814_s3 + $0x60] sm:$0xff] %vm774_vm0, %v1243_v55  ;;  %v1246_v47 = vadd.f32 %v1245_v22, %v957_v63 }
 0x171   :  { %1464 = vst.msk [vmem:[%s2814_s3 + $0x78] sm:$0xff] %vm774_vm0, %v1254_v35 }
 0x172   :  { %1462 = vst.msk [vmem:[%s2814_s3 + $0x68] sm:$0xff] %vm774_vm0, %v1246_v47 }
 0x174   :  { %v1001_v26 = vpop.f32.mrb[48].mxu0  ;;  %v1720_v29 = vpop.f32.mrb[48].mxu1 }
 0x175   :  { %v1267_v33 = vadd.f32 %v1720_v29, %v978_v39  ;;  %v1003_v37 = vpop.f32.mrb[49].mxu0  ;;  %v1258_v3 = vpop.f32.mrb[49].mxu1  ;;  %v1002_v6 = vadd.f32 %v2435_v53, %v1001_v26 }
 0x176   :  { %v1259_v38 = vadd.f32 %v1258_v3, %v970_v25  ;;  %v1004_v15 = vpop.f32.mrb[50].mxu0  ;;  %v1721_v7 = vpop.f32.mrb[50].mxu1 }
 0x177   :  { %1467 = vst.msk [vmem:[%s2814_s3 + $0x90] sm:$0xff] %vm774_vm0, %v1267_v33  ;;  %v1270_v18 = vadd.f32 %v1721_v7, %v981_v30  ;;  %v1006_v58 = vpop.f32.mrb[51].mxu0  ;;  %v1261_v41 = vpop.f32.mrb[51].mxu1  ;;  %v1005_v55 = vadd.f32 %v2435_v53, %v1004_v15 }
 0x178   :  { %1465 = vst.msk [vmem:[%s2814_s3 + $0x80] sm:$0xff] %vm774_vm0, %v1259_v38  ;;  %v1262_v34 = vadd.f32 %v1261_v41, %v973_v11 }
 0x179   :  { %1468 = vst.msk [vmem:[%s2814_s3 + $0x98] sm:$0xff] %vm774_vm0, %v1270_v18 }
 0x17a   :  { %1466 = vst.msk [vmem:[%s2814_s3 + $0x88] sm:$0xff] %vm774_vm0, %v1262_v34 }
 0x17c   :  { %v1009_v46 = vpop.f32.mrb[52].mxu0  ;;  %v1724_v49 = vpop.f32.mrb[52].mxu1 }
 0x17d   :  { %v1283_v54 = vadd.f32 %v1724_v49, %v994_v10  ;;  %v1011_v57 = vpop.f32.mrb[53].mxu0  ;;  %v1274_v61 = vpop.f32.mrb[53].mxu1  ;;  %v1010_v62 = vadd.f32 %v2435_v53, %v1009_v46 }
 0x17e   :  { %v1275_v19 = vadd.f32 %v1274_v61, %v986_v45  ;;  %v1012_v27 = vpop.f32.mrb[54].mxu0  ;;  %v1725_v2 = vpop.f32.mrb[54].mxu1 }
 0x17f   :  { %1471 = vst.msk [vmem:[%s2814_s3 + $0xb0] sm:$0xff] %vm774_vm0, %v1283_v54  ;;  %v1286_v31 = vadd.f32 %v1725_v2, %v997_v50  ;;  %v1014_v23 = vpop.f32.mrb[55].mxu0  ;;  %v1277_v42 = vpop.f32.mrb[55].mxu1  ;;  %v1013_v51 = vadd.f32 %v2435_v53, %v1012_v27 }
 0x180   :  { %1469 = vst.msk [vmem:[%s2814_s3 + $0xa0] sm:$0xff] %vm774_vm0, %v1275_v19  ;;  %v1278_v5 = vadd.f32 %v1277_v42, %v989_v1 }
 0x181   :  { %1472 = vst.msk [vmem:[%s2814_s3 + $0xb8] sm:$0xff] %vm774_vm0, %v1286_v31 }
 0x182   :  { %1470 = vst.msk [vmem:[%s2814_s3 + $0xa8] sm:$0xff] %vm774_vm0, %v1278_v5 }
 0x184   :  { %v1017_v9 = vpop.f32.mrb[56].mxu0  ;;  %v1728_v13 = vpop.f32.mrb[56].mxu1 }
 0x185   :  { %v1299_v59 = vadd.f32 %v1728_v13, %v1010_v62  ;;  %v1019_v14 = vpop.f32.mrb[57].mxu0  ;;  %v1290_v63 = vpop.f32.mrb[57].mxu1  ;;  %v1018_v25 = vadd.f32 %v2435_v53, %v1017_v9 }
 0x186   :  { %v1291_v17 = vadd.f32 %v1290_v63, %v1002_v6  ;;  %v1020_v21 = vpop.f32.mrb[58].mxu0  ;;  %v1729_v35 = vpop.f32.mrb[58].mxu1 }
 0x187   :  { %1475 = vst.msk [vmem:[%s2814_s3 + $0xd0] sm:$0xff] %vm774_vm0, %v1299_v59  ;;  %v1302_v43 = vadd.f32 %v1729_v35, %v1013_v51  ;;  %v1022_v22 = vpop.f32.mrb[59].mxu0  ;;  %v1293_v47 = vpop.f32.mrb[59].mxu1  ;;  %v1021_v3 = vadd.f32 %v2435_v53, %v1020_v21 }
 0x188   :  { %1473 = vst.msk [vmem:[%s2814_s3 + $0xc0] sm:$0xff] %vm774_vm0, %v1291_v17  ;;  %v1294_v39 = vadd.f32 %v1293_v47, %v1005_v55 }
 0x189   :  { %1476 = vst.msk [vmem:[%s2814_s3 + $0xd8] sm:$0xff] %vm774_vm0, %v1302_v43 }
 0x18a   :  { %1474 = vst.msk [vmem:[%s2814_s3 + $0xc8] sm:$0xff] %vm774_vm0, %v1294_v39 }
 0x18c   :  { %v1025_v26 = vpop.f32.mrb[60].mxu0  ;;  %v1732_v29 = vpop.f32.mrb[60].mxu1 }
 0x18d   :  { %v1026_v30 = vadd.f32 %v2435_v53, %v1025_v26  ;;  %v1027_v33 = vpop.f32.mrb[61].mxu0  ;;  %v1306_v37 = vpop.f32.mrb[61].mxu1 }
 0x18e   :  { %v1307_v11 = vadd.f32 %v1306_v37, %v1018_v25  ;;  %v1028_v38 = vpop.f32.mrb[62].mxu0  ;;  %v1733_v15 = vpop.f32.mrb[62].mxu1 }
 0x18f   :  { %v1315_v7 = vadd.f32 %v1732_v29, %v1026_v30  ;;  %v1029_v18 = vadd.f32 %v2435_v53, %v1028_v38  ;;  %v1030_v58 = vpop.f32.mrb[63].mxu0  ;;  %v1309_v41 = vpop.f32.mrb[63].mxu1 }
 0x190   :  { %1477 = vst.msk [vmem:[%s2814_s3 + $0xe0] sm:$0xff] %vm774_vm0, %v1307_v11  ;;  %v1310_v34 = vadd.f32 %v1309_v41, %v1021_v3 }
 0x191   :  { %1479 = vst.msk [vmem:[%s2814_s3 + $0xf0] sm:$0xff] %vm774_vm0, %v1315_v7  ;;  %v1318_v10 = vadd.f32 %v1733_v15, %v1029_v18 }
 0x192   :  { %1478 = vst.msk [vmem:[%s2814_s3 + $0xe8] sm:$0xff] %vm774_vm0, %v1310_v34 }
 0x193   :  { %1480 = vst.msk [vmem:[%s2814_s3 + $0xf8] sm:$0xff] %vm774_vm0, %v1318_v10 }
 0x194   :  { %v1033_v45 = vpop.f32.mrb[64].mxu0  ;;  %v1736_v46 = vpop.f32.mrb[64].mxu1 }
 0x195   :  { %v1034_v49 = vadd.f32 %v2435_v53, %v1033_v45  ;;  %v1035_v50 = vpop.f32.mrb[65].mxu0  ;;  %v1322_v54 = vpop.f32.mrb[65].mxu1 }
 0x196   :  { %v1036_v57 = vpop.f32.mrb[66].mxu0  ;;  %v1737_v61 = vpop.f32.mrb[66].mxu1 }
 0x197   :  { %v1323_v1 = vadd.f32 %v1322_v54, %v1034_v49  ;;  %v1037_v19 = vadd.f32 %v2435_v53, %v1036_v57  ;;  %v1038_v27 = vpop.f32.mrb[67].mxu0  ;;  %v1325_v2 = vpop.f32.mrb[67].mxu1  ;;  %v1098_v49 = vadd.f32 %v2435_v53, %v2374_v52  ;;  %v1109_v57 = vadd.f32 %v2435_v53, %v2382_v0 }
 0x199   :  { %1481 = vst.msk [vmem:[%s2814_s3 + $0x100] sm:$0xff] %vm774_vm0, %v1323_v1  ;;  %v1326_v31 = vadd.f32 %v1325_v2, %v1037_v19 }
 0x19b   :  { %1482 = vst.msk [vmem:[%s2814_s3 + $0x108] sm:$0xff] %vm774_vm0, %v1326_v31 }
 0x19c   :  { %v1041_v23 = vpop.f32.mrb[68].mxu0  ;;  %v1740_v42 = vpop.f32.mrb[68].mxu1 }
 0x19d   :  { %v1042_v5 = vadd.f32 %v2435_v53, %v1041_v23  ;;  %v1043_v62 = vpop.f32.mrb[69].mxu0  ;;  %v1338_v6 = vpop.f32.mrb[69].mxu1 }
 0x19e   :  { %v1044_v9 = vpop.f32.mrb[70].mxu0  ;;  %v1741_v13 = vpop.f32.mrb[70].mxu1 }
 0x19f   :  { %v1331_v51 = vadd.f32 %v1736_v46, %v1042_v5  ;;  %v1045_v59 = vadd.f32 %v2435_v53, %v1044_v9  ;;  %v1046_v14 = vpop.f32.mrb[71].mxu0  ;;  %v1341_v63 = vpop.f32.mrb[71].mxu1  ;;  %v1106_v46 = vadd.f32 %v2435_v53, %v2380_v60  ;;  %v1101_v60 = vadd.f32 %v2435_v53, %v2378_v56 }
 0x1a0   :  { %v1122_v9 = vadd.f32 %v2435_v53, %v2394_v12  ;;  %v1125_v14 = vadd.f32 %v2435_v53, %v2398_v16  ;;  %v1117_v12 = vadd.f32 %v2435_v53, %v2390_v8 }
 0x1a1   :  { %1483 = vst.msk [vmem:[%s2814_s3 + $0x110] sm:$0xff] %vm774_vm0, %v1331_v51  ;;  %v1334_v55 = vadd.f32 %v1737_v61, %v1045_v59 }
 0x1a3   :  { %1484 = vst.msk [vmem:[%s2814_s3 + $0x118] sm:$0xff] %vm774_vm0, %v1334_v55 }
 0x1a4   :  { %v1049_v17 = vpop.f32.mrb[72].mxu0  ;;  %v2637_v21 = vpop.f32.mrb[72].mxu1 }
 0x1a5   :  { %v1050_v35 = vadd.f32 %v2435_v53, %v1049_v17  ;;  %v1051_v43 = vpop.f32.mrb[73].mxu0  ;;  %v1354_v22 = vpop.f32.mrb[73].mxu1 }
 0x1a6   :  { %v1052_v47 = vpop.f32.mrb[74].mxu0  ;;  %v2640_v39 = vpop.f32.mrb[74].mxu1 }
 0x1a7   :  { %v1339_v25 = vadd.f32 %v1338_v6, %v1050_v35  ;;  %v1053_v26 = vadd.f32 %v2435_v53, %v1052_v47  ;;  %v1054_v29 = vpop.f32.mrb[75].mxu0  ;;  %v1357_v30 = vpop.f32.mrb[75].mxu1 }
 0x1a9   :  { %1485 = vst.msk [vmem:[%s2814_s3 + $0x120] sm:$0xff] %vm774_vm0, %v1339_v25  ;;  %v1342_v33 = vadd.f32 %v1341_v63, %v1053_v26 }
 0x1ab   :  { %1486 = vst.msk [vmem:[%s2814_s3 + $0x128] sm:$0xff] %vm774_vm0, %v1342_v33 }
 0x1ac   :  { %v1057_v37 = vpop.f32.mrb[76].mxu0  ;;  %v2651_v3 = vpop.f32.mrb[76].mxu1 }
 0x1ad   :  { %v1058_v11 = vadd.f32 %v2435_v53, %v1057_v37  ;;  %v1059_v38 = vpop.f32.mrb[77].mxu0  ;;  %v2654_v15 = vpop.f32.mrb[77].mxu1 }
 0x1ae   :  { %v1060_v7 = vpop.f32.mrb[78].mxu0  ;;  %v2656_v18 = vpop.f32.mrb[78].mxu1 }
 0x1af   :  { %v1347_v58 = vadd.f32 %v1740_v42, %v1058_v11  ;;  %v1061_v41 = vadd.f32 %v2435_v53, %v1060_v7  ;;  %v1062_v34 = vpop.f32.mrb[79].mxu0  ;;  %v2659_v10 = vpop.f32.mrb[79].mxu1  ;;  %v1141_v11 = vadd.f32 %v2435_v53, %v2414_v32 }
 0x1b1   :  { %1487 = vst.msk [vmem:[%s2814_s3 + $0x130] sm:$0xff] %vm774_vm0, %v1347_v58  ;;  %v1350_v45 = vadd.f32 %v1741_v13, %v1061_v41  ;;  %v1114_v13 = vadd.f32 %v2435_v53, %v2386_v4 }
 0x1b3   :  { %1488 = vst.msk [vmem:[%s2814_s3 + $0x138] sm:$0xff] %vm774_vm0, %v1350_v45 }
 0x1b4   :  { %v1065_v50 = vpop.f32.mrb[80].mxu0  ;;  %v1752_v54 = vpop.f32.mrb[80].mxu1 }
 0x1b5   :  { %v1066_v61 = vadd.f32 %v2435_v53, %v1065_v50  ;;  %v1395_v1 = vadd.f32 %v1752_v54, %v1106_v46  ;;  %v1067_v19 = vpop.f32.mrb[81].mxu0  ;;  %v1386_v27 = vpop.f32.mrb[81].mxu1 }
 0x1b6   :  { %v1387_v2 = vadd.f32 %v1386_v27, %v1098_v49  ;;  %v1068_v31 = vpop.f32.mrb[82].mxu0  ;;  %v1753_v23 = vpop.f32.mrb[82].mxu1  ;;  %v1157_v19 = vadd.f32 %v2435_v53, %v2430_v48 }
 0x1b7   :  { %v1355_v42 = vadd.f32 %v1354_v22, %v1066_v61  ;;  %1499 = vst.msk [vmem:[%s2814_s3 + $0x190] sm:$0xff] %vm774_vm0, %v1395_v1  ;;  %v1069_v52 = vadd.f32 %v2435_v53, %v1068_v31  ;;  %v1398_v0 = vadd.f32 %v1753_v23, %v1109_v57  ;;  %v1070_v5 = vpop.f32.mrb[83].mxu0  ;;  %v1389_v62 = vpop.f32.mrb[83].mxu1  ;;  %v1154_v57 = vadd.f32 %v2435_v53, %v2426_v44 }
 0x1b8   :  { %1497 = vst.msk [vmem:[%s2814_s3 + $0x180] sm:$0xff] %vm774_vm0, %v1387_v2  ;;  %v1390_v56 = vadd.f32 %v1389_v62, %v1101_v60  ;;  %v1149_v44 = vadd.f32 %v2435_v53, %v2422_v40 }
 0x1b9   :  { %1489 = vst.msk [vmem:[%s2814_s3 + $0x140] sm:$0xff] %vm774_vm0, %v1355_v42  ;;  %v1358_v6 = vadd.f32 %v1357_v30, %v1069_v52  ;;  %1500 = vst.msk [vmem:[%s2814_s3 + $0x198] sm:$0xff] %vm774_vm0, %v1398_v0  ;;  %v1138_v30 = vadd.f32 %v2435_v53, %v2410_v28  ;;  %v1133_v28 = vadd.f32 %v2435_v53, %v2406_v24 }
 0x1ba   :  { %1498 = vst.msk [vmem:[%s2814_s3 + $0x188] sm:$0xff] %vm774_vm0, %v1390_v56 }
 0x1bb   :  { %1490 = vst.msk [vmem:[%s2814_s3 + $0x148] sm:$0xff] %vm774_vm0, %v1358_v6 }
 0x1bc   :  { %v1073_v51 = vpop.f32.mrb[84].mxu0  ;;  %v1756_v59 = vpop.f32.mrb[84].mxu1 }
 0x1bd   :  { %v1074_v63 = vadd.f32 %v2435_v53, %v1073_v51  ;;  %v1411_v55 = vadd.f32 %v1756_v59, %v1122_v9  ;;  %v1075_v17 = vpop.f32.mrb[85].mxu0  ;;  %v1402_v35 = vpop.f32.mrb[85].mxu1 }
 0x1be   :  { %v1403_v43 = vadd.f32 %v1402_v35, %v1114_v13  ;;  %v1076_v22 = vpop.f32.mrb[86].mxu0  ;;  %v1757_v47 = vpop.f32.mrb[86].mxu1 }
 0x1bf   :  { %v1363_v25 = vadd.f32 %v2637_v21, %v1074_v63  ;;  %1503 = vst.msk [vmem:[%s2814_s3 + $0x1b0] sm:$0xff] %vm774_vm0, %v1411_v55  ;;  %v1077_v4 = vadd.f32 %v2435_v53, %v1076_v22  ;;  %v1414_v16 = vadd.f32 %v1757_v47, %v1125_v14  ;;  %v1078_v26 = vpop.f32.mrb[87].mxu0  ;;  %v1405_v29 = vpop.f32.mrb[87].mxu1 }
 0x1c0   :  { %1501 = vst.msk [vmem:[%s2814_s3 + $0x1a0] sm:$0xff] %vm774_vm0, %v1403_v43  ;;  %v1406_v8 = vadd.f32 %v1405_v29, %v1117_v12 }
 0x1c1   :  { %1491 = vst.msk [vmem:[%s2814_s3 + $0x150] sm:$0xff] %vm774_vm0, %v1363_v25  ;;  %v1366_v21 = vadd.f32 %v2640_v39, %v1077_v4  ;;  %1504 = vst.msk [vmem:[%s2814_s3 + $0x1b8] sm:$0xff] %vm774_vm0, %v1414_v16  ;;  %v1130_v39 = vadd.f32 %v2435_v53, %v2402_v20 }
 0x1c2   :  { %1502 = vst.msk [vmem:[%s2814_s3 + $0x1a8] sm:$0xff] %vm774_vm0, %v1406_v8 }
 0x1c3   :  { %1492 = vst.msk [vmem:[%s2814_s3 + $0x158] sm:$0xff] %vm774_vm0, %v1366_v21 }
 0x1c4   :  { %v1081_v33 = vpop.f32.mrb[88].mxu0  ;;  %v1760_v37 = vpop.f32.mrb[88].mxu1 }
 0x1c5   :  { %v1082_v38 = vadd.f32 %v2435_v53, %v1081_v33  ;;  %v1427_v7 = vadd.f32 %v1760_v37, %v1138_v30  ;;  %v1083_v58 = vpop.f32.mrb[89].mxu0  ;;  %v1418_v41 = vpop.f32.mrb[89].mxu1 }
 0x1c6   :  { %v1419_v34 = vadd.f32 %v1418_v41, %v1130_v39  ;;  %v1084_v45 = vpop.f32.mrb[90].mxu0  ;;  %v1761_v46 = vpop.f32.mrb[90].mxu1 }
 0x1c7   :  { %v1371_v49 = vadd.f32 %v2654_v15, %v1082_v38  ;;  %1507 = vst.msk [vmem:[%s2814_s3 + $0x1d0] sm:$0xff] %vm774_vm0, %v1427_v7  ;;  %v1085_v20 = vadd.f32 %v2435_v53, %v1084_v45  ;;  %v1430_v32 = vadd.f32 %v1761_v46, %v1141_v11  ;;  %v1086_v50 = vpop.f32.mrb[91].mxu0  ;;  %v1421_v54 = vpop.f32.mrb[91].mxu1 }
 0x1c8   :  { %1505 = vst.msk [vmem:[%s2814_s3 + $0x1c0] sm:$0xff] %vm774_vm0, %v1419_v34  ;;  %v1422_v24 = vadd.f32 %v1421_v54, %v1133_v28 }
 0x1c9   :  { %1493 = vst.msk [vmem:[%s2814_s3 + $0x160] sm:$0xff] %vm774_vm0, %v1371_v49  ;;  %v1374_v15 = vadd.f32 %v2659_v10, %v1085_v20  ;;  %1508 = vst.msk [vmem:[%s2814_s3 + $0x1d8] sm:$0xff] %vm774_vm0, %v1430_v32  ;;  %v1146_v10 = vadd.f32 %v2435_v53, %v2418_v36 }
 0x1ca   :  { %1506 = vst.msk [vmem:[%s2814_s3 + $0x1c8] sm:$0xff] %vm774_vm0, %v1422_v24 }
 0x1cb   :  { %1494 = vst.msk [vmem:[%s2814_s3 + $0x168] sm:$0xff] %vm774_vm0, %v1374_v15 }
 0x1cc   :  { %v1089_v61 = vpop.f32.mrb[92].mxu0  ;;  %v1764_v1 = vpop.f32.mrb[92].mxu1 }
 0x1cd   :  { %v1090_v27 = vadd.f32 %v2435_v53, %v1089_v61  ;;  %v1443_v60 = vadd.f32 %v1764_v1, %v1154_v57  ;;  %v1091_v2 = vpop.f32.mrb[93].mxu0  ;;  %v1434_v31 = vpop.f32.mrb[93].mxu1 }
 0x1ce   :  { %v1435_v23 = vadd.f32 %v1434_v31, %v1146_v10  ;;  %v1092_v42 = vpop.f32.mrb[94].mxu0  ;;  %v1765_v52 = vpop.f32.mrb[94].mxu1 }
 0x1cf   :  { %v1379_v0 = vadd.f32 %v2651_v3, %v1090_v27  ;;  %1511 = vst.msk [vmem:[%s2814_s3 + $0x1f0] sm:$0xff] %vm774_vm0, %v1443_v60  ;;  %v1093_v36 = vadd.f32 %v2435_v53, %v1092_v42  ;;  %v1446_v48 = vadd.f32 %v1765_v52, %v1157_v19  ;;  %v1094_v5 = vpop.f32.mrb[95].mxu0  ;;  %v1437_v62 = vpop.f32.mrb[95].mxu1 }
 0x1d0   :  { %1509 = vst.msk [vmem:[%s2814_s3 + $0x1e0] sm:$0xff] %vm774_vm0, %v1435_v23  ;;  %v1438_v40 = vadd.f32 %v1437_v62, %v1149_v44 }
 0x1d1   :  { %1495 = vst.msk [vmem:[%s2814_s3 + $0x170] sm:$0xff] %vm774_vm0, %v1379_v0  ;;  %v1382_v3 = vadd.f32 %v2656_v18, %v1093_v36  ;;  %1512 = vst.msk [vmem:[%s2814_s3 + $0x1f8] sm:$0xff] %vm774_vm0, %v1446_v48 }
 0x1d2   :  { %1510 = vst.msk [vmem:[%s2814_s3 + $0x1e8] sm:$0xff] %vm774_vm0, %v1438_v40 }
 0x1d3   :  { %1496 = vst.msk [vmem:[%s2814_s3 + $0x178] sm:$0xff] %vm774_vm0, %v1382_v3 }

</bundles_post_ra>
